<compile_context>
chip_gen: v7x
topology: tpu7x:2x2x1
jax: 0.10.0
libtpu: 0.0.40
codegen_flags: <defaults>
</compile_context>

<pallas_src>
import jax
import jax.numpy as jnp
from jax.experimental import pallas as pl
from jax.experimental.pallas import tpu as pltpu


def _round_up(v, m):
    return (v + m - 1) // m * m


def _adapter_kernel(paths_ref, w_ref, b_ref, out_ref):
    # paths_ref : [TB, K]          flattened paths tile (K = n_paths*(n_steps+1))
    # w_ref     : [K, output_dim]  fused weight, row index = p*(n_steps+1)+t
    # b_ref     : [1, output_dim]  bias with b_agg folded in
    # out_ref   : [TB, output_dim]
    out = jnp.dot(paths_ref[...], w_ref[...], preferred_element_type=jnp.float32)
    out_ref[...] = (out + b_ref[...]).astype(out_ref.dtype)


def _call_kernel(paths_flat, w_c, b_eff, *, tb, vmem_limit, single_buffer_weights):
    b_pad, k = paths_flat.shape
    out_dim = w_c.shape[1]
    grid = (b_pad // tb,)

    if single_buffer_weights:
        # Constant block index across the grid -> no re-DMA; 1 buffer saves VMEM.
        w_spec = pl.BlockSpec((k, out_dim), lambda i: (0, 0),
                              pipeline_mode=pl.Buffered(1))
        b_spec = pl.BlockSpec((1, out_dim), lambda i: (0, 0),
                              pipeline_mode=pl.Buffered(1))
    else:
        w_spec = pl.BlockSpec((k, out_dim), lambda i: (0, 0))
        b_spec = pl.BlockSpec((1, out_dim), lambda i: (0, 0))

    return pl.pallas_call(
        _adapter_kernel,
        out_shape=jax.ShapeDtypeStruct((b_pad, out_dim), jnp.float32),
        grid_spec=pltpu.PrefetchScalarGridSpec(
            num_scalar_prefetch=0,
            grid=grid,
            in_specs=[
                pl.BlockSpec((tb, k), lambda i: (i, 0)),   # flattened paths tile
                w_spec,                                    # fused weight
                b_spec,                                    # folded bias
            ],
            out_specs=pl.BlockSpec((tb, out_dim), lambda i: (i, 0)),
        ),
        compiler_params=pltpu.CompilerParams(
            dimension_semantics=("parallel",),
            vmem_limit_bytes=vmem_limit),
    )(paths_flat, w_c, b_eff)


def bicep_adapter_forward(x, paths, params, *, tb=None):
    """x: [B, input_dim] or [B, S, input_dim]; paths: [B, n_paths, n_steps+1].

    x is accepted for interface fidelity only: in the torch fallback the feedback
    sigmoid is computed per sample and discarded (the paths are randn), so it
    cannot affect the output and is not computed here.
    """
    if x is not None and x.ndim == 3:
        x = x[:, -1, :]                      # last timestep, as in torch (unused)

    B, n_paths, n_steps_p1 = paths.shape
    K = n_paths * n_steps_p1
    w_agg, b_agg = params["w_agg"], params["b_agg"]      # [T, 1], [1, 1]
    w_out, b_out = params["w_out"], params["b_out"]      # [n_paths, out], [1, out]
    output_dim = w_out.shape[1]

    # ---- Host-side folds (exact, free under jit) ------------------------------
    # Fused weight rows follow the row-major flatten order of [n_paths, T]
    # (index p*T + t), matching paths.reshape(B, n_paths*T).
    w_c = (w_out[:, None, :] * w_agg[None, :, :]).reshape(K, output_dim)
    b_eff = b_out + b_agg[0, 0] * jnp.sum(w_out, axis=0, keepdims=True)
    paths_flat = paths.reshape(B, K)         # contiguous -> free reshape

    # ---- Device-aware VMEM budget / tile sizing --------------------------------
    try:
        vmem_phys = int(pltpu.get_tpu_info().vmem_capacity_bytes)
    except Exception:
        vmem_phys = 64 << 20                 # conservative: assume v7x (64 MiB)
    # ~5/8 of physical: ~40 MiB on v7x, ~80 MiB on v5e/v6e's 128 MiB.
    vmem_cap = max(32 << 20, (vmem_phys * 5) // 8)

    if tb is None:
        tb = 1024 if vmem_phys >= (96 << 20) else 512

    b_ceil = _round_up(B, 8)
    tb = max(8, min(_round_up(tb, 8), b_ceil))
    # Megacore (v7x has 2 TCs): cap the tile so the "parallel" grid axis keeps
    # >=4 steps when the batch allows it, so both cores get work.
    tb = max(8, min(tb, _round_up(max(b_ceil // 4, 8), 8)))

    # Padded (8,128) VMEM footprint of all blocks; shrink tb until it fits the cap.
    k_pad = _round_up(K, 128)
    out_pad = _round_up(output_dim, 128)
    w_buf = _round_up(K, 8) * out_pad * 4
    b_buf = 8 * out_pad * 4

    def _needed(tb_):
        paths_buf = tb_ * k_pad * 4
        o_buf = tb_ * out_pad * 4
        # conservative: assume 2 buffers everywhere + 4 MiB headroom
        return 2 * paths_buf + 2 * (w_buf + b_buf) + 2 * o_buf + (4 << 20)

    while tb > 8 and _needed(tb) > vmem_cap:
        tb = max(8, _round_up(tb // 2, 8))
    vmem_limit = int(min(max(_needed(tb), 16 << 20), vmem_cap))

    # Pad batch to a multiple of tb (padded rows sliced off after the call).
    b_pad = _round_up(B, tb)
    if b_pad != B:
        paths_flat = jnp.pad(paths_flat, ((0, b_pad - B), (0, 0)))

    try:
        out = _call_kernel(paths_flat, w_c, b_eff, tb=tb, vmem_limit=vmem_limit,
                           single_buffer_weights=True)
    except Exception:
        # Fallback if pipeline_mode=pl.Buffered(1) is rejected by this Pallas build.
        out = _call_kernel(paths_flat, w_c, b_eff, tb=tb, vmem_limit=vmem_limit,
                           single_buffer_weights=False)

    return out[:B]


def init_params(key, input_dim, output_dim, n_paths, n_steps):
    """Deterministic init mimicking nn.Linear's U(-1/sqrt(fan_in), +1/sqrt(fan_in)).

    w_in / b_in (input_processor) are kept for module fidelity but are not consumed
    by the kernel (their result is discarded in the fallback branch).
    """
    ks = jax.random.split(key, 6)

    def lin(kw, kb, fan_in, fan_out):
        bound = 1.0 / jnp.sqrt(fan_in)
        w = jax.random.uniform(kw, (fan_in, fan_out), jnp.float32, -bound, bound)
        b = jax.random.uniform(kb, (1, fan_out), jnp.float32, -bound, bound)
        return w, b

    w_in, b_in = lin(ks[0], ks[1], input_dim, 1)            # input_processor
    w_agg, b_agg = lin(ks[2], ks[3], n_steps + 1, 1)        # path_aggregator
    w_out, b_out = lin(ks[4], ks[5], n_paths, output_dim)   # output_mapper
    return dict(w_in=w_in, b_in=b_in, w_agg=w_agg, b_agg=b_agg,
                w_out=w_out, b_out=b_out)


def _reference_forward(x, paths, p):
    if x.ndim == 3:
        x = x[:, -1, :]
    # feedback computed but unused (matches torch fallback semantics)
    _ = jax.nn.sigmoid(x @ p["w_in"] + p["b_in"])
    agg = jnp.einsum("bpt,to->bpo", paths, p["w_agg"]) + p["b_agg"]   # [B, n_paths, 1]
    stacked = agg[..., 0]                                             # [B, n_paths]
    return stacked @ p["w_out"] + p["b_out"]                          # [B, output_dim]


if __name__ == "__main__":
    input_dim, output_dim = 16, 8
    n_paths, n_steps = 100, 50

    key = jax.random.PRNGKey(0)
    k_params, k_x, k_paths = jax.random.split(key, 3)
    params = init_params(k_params, input_dim, output_dim, n_paths, n_steps)

    # Case 1: module's canonical small shape (batch=2, seq=8).
    batch, seq = 2, 8
    x = jax.random.normal(k_x, (batch, seq, input_dim), jnp.float32)
    paths = jax.random.normal(k_paths, (batch, n_paths, n_steps + 1), jnp.float32)
    out = jax.block_until_ready(bicep_adapter_forward(x, paths, params))
    ref = _reference_forward(x, paths, params)
    assert out.shape == (batch, output_dim)
    assert jnp.allclose(out, ref, rtol=1e-3, atol=1e-3)

    # Case 2: non-multiple batch to exercise grid > 1 and batch padding.
    batch2 = 10
    k_x2, k_p2 = jax.random.split(jax.random.PRNGKey(1), 2)
    x2 = jax.random.normal(k_x2, (batch2, input_dim), jnp.float32)
    paths2 = jax.random.normal(k_p2, (batch2, n_paths, n_steps + 1), jnp.float32)
    out2 = jax.block_until_ready(bicep_adapter_forward(x2, paths2, params))
    ref2 = _reference_forward(x2, paths2, params)
    assert out2.shape == (batch2, output_dim)
    assert jnp.allclose(out2, ref2, rtol=1e-3, atol=1e-3)

    print("KERNEL_OK")
</pallas_src>

<mosaic_0001>
module attributes {stable_mosaic.version = 11 : i64} {
  func.func @_adapter_kernel(%arg0: i32, %arg1: memref<8x5100xf32, #tpu.memory_space<vmem>>, %arg2: memref<5100x8xf32, #tpu.memory_space<vmem>>, %arg3: memref<1x8xf32, #tpu.memory_space<vmem>>, %arg4: memref<8x8xf32, #tpu.memory_space<vmem>>) attributes {dimension_semantics = [#tpu.dimension_semantics<parallel>], iteration_bounds = array<i64: 1>, scalar_prefetch = 0 : i64, scratch_operands = 0 : i64, tpu.core_type = #tpu.core_type<tc>, window_params = [{transform_indices = @transform_0, window_bounds = array<i64: 8, 5100>}, {pipeline_mode = #tpu.pipeline_mode<synchronous>, transform_indices = @transform_1, window_bounds = array<i64: 5100, 8>}, {pipeline_mode = #tpu.pipeline_mode<synchronous>, transform_indices = @transform_2, window_bounds = array<i64: 1, 8>}, {transform_indices = @transform_3, window_bounds = array<i64: 8, 8>}]} {
    %c0 = arith.constant 0 : index
    %c0_0 = arith.constant 0 : index
    %0 = vector.load %arg1[%c0, %c0_0] : memref<8x5100xf32, #tpu.memory_space<vmem>>, vector<8x5100xf32>
    %c0_1 = arith.constant 0 : index
    %c0_2 = arith.constant 0 : index
    %1 = vector.load %arg2[%c0_1, %c0_2] : memref<5100x8xf32, #tpu.memory_space<vmem>>, vector<5100x8xf32>
    %cst = arith.constant dense<0.000000e+00> : vector<8x8xf32>
    %2 = tpu.matmul %0, %1, %cst {dimension_numbers = #tpu.dot_dimension_numbers<[1], [0], [0], [1], [0, 0, 1, 1], [], []>} : vector<8x5100xf32>, vector<5100x8xf32>, vector<8x8xf32> -> vector<8x8xf32>
    %c0_3 = arith.constant 0 : index
    %c0_4 = arith.constant 0 : index
    %3 = vector.load %arg3[%c0_3, %c0_4] : memref<1x8xf32, #tpu.memory_space<vmem>>, vector<1x8xf32>
    %4 = vector.broadcast %3 : vector<1x8xf32> to vector<8x8xf32>
    %5 = arith.addf %2, %4 : vector<8x8xf32>
    %c0_5 = arith.constant 0 : index
    %c0_6 = arith.constant 0 : index
    %6 = vector.load %arg4[%c0_5, %c0_6] : memref<8x8xf32, #tpu.memory_space<vmem>>, vector<8x8xf32>
    tpu.vector_store %arg4[%c0_5, %c0_6], %5 {strides = array<i32>} : memref<8x8xf32, #tpu.memory_space<vmem>>, vector<8x8xf32>,
    return
  }
  func.func @transform_0(%arg0: i32) -> (i32, i32) {
    %c0_i32 = arith.constant 0 : i32
    %c0_i32_0 = arith.constant 0 : i32
    return %arg0, %c0_i32 : i32, i32
  }
  func.func @transform_1(%arg0: i32) -> (i32, i32) {
    %c0_i32 = arith.constant 0 : i32
    %c0_i32_0 = arith.constant 0 : i32
    %c0_i32_1 = arith.constant 0 : i32
    return %c0_i32, %c0_i32_0 : i32, i32
  }
  func.func @transform_2(%arg0: i32) -> (i32, i32) {
    %c0_i32 = arith.constant 0 : i32
    %c0_i32_0 = arith.constant 0 : i32
    %c0_i32_1 = arith.constant 0 : i32
    return %c0_i32, %c0_i32_0 : i32, i32
  }
  func.func @transform_3(%arg0: i32) -> (i32, i32) {
    %c0_i32 = arith.constant 0 : i32
    %c0_i32_0 = arith.constant 0 : i32
    return %arg0, %c0_i32 : i32, i32
  }
}

module attributes {stable_mosaic.version = 11 : i64} {
  func.func @_adapter_kernel(%arg0: i32, %arg1: memref<8x5100xf32, #tpu.memory_space<vmem>>, %arg2: memref<5100x8xf32, #tpu.memory_space<vmem>>, %arg3: memref<1x8xf32, #tpu.memory_space<vmem>>, %arg4: memref<8x8xf32, #tpu.memory_space<vmem>>) attributes {dimension_semantics = [#tpu.dimension_semantics<parallel>], iteration_bounds = array<i64: 1>, scalar_prefetch = 0 : i64, scratch_operands = 0 : i64, tpu.core_type = #tpu.core_type<tc>, window_params = [{transform_indices = @transform_0, window_bounds = array<i64: 8, 5100>}, {pipeline_mode = #tpu.pipeline_mode<synchronous>, transform_indices = @transform_1, window_bounds = array<i64: 5100, 8>}, {pipeline_mode = #tpu.pipeline_mode<synchronous>, transform_indices = @transform_2, window_bounds = array<i64: 1, 8>}, {transform_indices = @transform_3, window_bounds = array<i64: 8, 8>}]} {
    %c0 = arith.constant 0 : index
    %c0_0 = arith.constant 0 : index
    %0 = vector.load %arg1[%c0, %c0_0] : memref<8x5100xf32, #tpu.memory_space<vmem>>, vector<8x5100xf32>
    %c0_1 = arith.constant 0 : index
    %c0_2 = arith.constant 0 : index
    %1 = vector.load %arg2[%c0_1, %c0_2] : memref<5100x8xf32, #tpu.memory_space<vmem>>, vector<5100x8xf32>
    %cst = arith.constant dense<0.000000e+00> : vector<8x8xf32>
    %2 = tpu.matmul %0, %1, %cst {dimension_numbers = #tpu.dot_dimension_numbers<[1], [0], [0], [1], [0, 0, 1, 1], [], []>} : vector<8x5100xf32>, vector<5100x8xf32>, vector<8x8xf32> -> vector<8x8xf32>
    %c0_3 = arith.constant 0 : index
    %c0_4 = arith.constant 0 : index
    %3 = vector.load %arg3[%c0_3, %c0_4] : memref<1x8xf32, #tpu.memory_space<vmem>>, vector<1x8xf32>
    %4 = vector.broadcast %3 : vector<1x8xf32> to vector<8x8xf32>
    %5 = arith.addf %2, %4 : vector<8x8xf32>
    %c0_5 = arith.constant 0 : index
    %c0_6 = arith.constant 0 : index
    %6 = vector.load %arg4[%c0_5, %c0_6] : memref<8x8xf32, #tpu.memory_space<vmem>>, vector<8x8xf32>
    tpu.vector_store %arg4[%c0_5, %c0_6], %5 {strides = array<i32>} : memref<8x8xf32, #tpu.memory_space<vmem>>, vector<8x8xf32>,
    return
  }
  func.func @transform_0(%arg0: i32) -> (i32, i32) {
    %c0_i32 = arith.constant 0 : i32
    %c0_i32_0 = arith.constant 0 : i32
    return %arg0, %c0_i32 : i32, i32
  }
  func.func @transform_1(%arg0: i32) -> (i32, i32) {
    %c0_i32 = arith.constant 0 : i32
    %c0_i32_0 = arith.constant 0 : i32
    %c0_i32_1 = arith.constant 0 : i32
    return %c0_i32, %c0_i32_0 : i32, i32
  }
  func.func @transform_2(%arg0: i32) -> (i32, i32) {
    %c0_i32 = arith.constant 0 : i32
    %c0_i32_0 = arith.constant 0 : i32
    %c0_i32_1 = arith.constant 0 : i32
    return %c0_i32, %c0_i32_0 : i32, i32
  }
  func.func @transform_3(%arg0: i32) -> (i32, i32) {
    %c0_i32 = arith.constant 0 : i32
    %c0_i32_0 = arith.constant 0 : i32
    return %arg0, %c0_i32 : i32, i32
  }
}

</mosaic_0001>

<bundles_post_ra>
// kernel: tpu_custom_call.1
= control target key start
LH: loop header
LB: loop body
LE: loop exit
PB: predicated region body
PF: predicated region fallthrough
CT: control target
= control target key end

     0   :  { %s5566_s0 = inlined_call_operand.vmem [shape: f32[8,5100], index: 0, kind: input, shape index: {}]   ;;  %s5567_s1 = inlined_call_operand.vmem [shape: f32[5100,8], index: 1, kind: input, shape index: {}]   ;;  %s5568_s2 = inlined_call_operand.vmem [shape: f32[1,8], index: 2, kind: input, shape index: {}]   ;;  %s5569_s3 = inlined_call_operand.hbm [shape: f32[8,8], index: 3, kind: output, shape index: {}]  }
   0x1   :  { %v71_v0 = vld [vmem:[%s5567_s1 + $0x80] sm:$0xff]  ;;  %v72_v1 = vld [vmem:[%s5567_s1 + $0x88] sm:$0xff]  ;;  %v73_v11 = vld [vmem:[%s5567_s1 + $0x90] sm:$0xff] }
   0x2   :  { %v103_v2 = vld [vmem:[%s5567_s1 + $0x180] sm:$0xff]  ;;  %v2792_v3 = vpack.c.bf16 %v72_v1, %v71_v0  ;;  %v104_v4 = vld [vmem:[%s5567_s1 + $0x188] sm:$0xff]  ;;  %v74_v13 = vld [vmem:[%s5567_s1 + $0x98] sm:$0xff] }
   0x3   :  { %v55_v5 = vld [vmem:[%s5567_s1] sm:$0xff]  ;;  %v56_v6 = vld [vmem:[%s5567_s1 + $0x8] sm:$0xff]  ;;  %v2824_v7 = vpack.c.bf16 %v104_v4, %v103_v2  ;;  %v105_v14 = vld [vmem:[%s5567_s1 + $0x190] sm:$0xff]  ;;  %v2796_v16 = vpack.c.bf16 %v74_v13, %v73_v11 }
   0x4   :  { %v2794_v8 = vpack.c.bf16 %v56_v6, %v55_v5  ;;  %v87_v9 = vld [vmem:[%s5567_s1 + $0x100] sm:$0xff]  ;;  %v88_v10 = vld [vmem:[%s5567_s1 + $0x108] sm:$0xff]  ;;  %2793 = vmatprep.subr.bf16.mxu0 %v2792_v3  ;;  %v106_v15 = vld [vmem:[%s5567_s1 + $0x198] sm:$0xff] }
   0x5   :  { %v2826_v12 = vpack.c.bf16 %v88_v10, %v87_v9  ;;  %2825 = vmatprep.subr.bf16.mxu1 %v2824_v7  ;;  %v2828_v17 = vpack.c.bf16 %v106_v15, %v105_v14  ;;  %v57_v18 = vld [vmem:[%s5567_s1 + $0x10] sm:$0xff]  ;;  %v58_v19 = vld [vmem:[%s5567_s1 + $0x18] sm:$0xff]  ;;  %v75_v23 = vld [vmem:[%s5567_s1 + $0xa0] sm:$0xff] }
   0x6   :  { %2795 = vmatpush3.bf16.msra.mxu0 %v2794_v8  ;;  %v89_v20 = vld [vmem:[%s5567_s1 + $0x110] sm:$0xff]  ;;  %v2798_v21 = vpack.c.bf16 %v58_v19, %v57_v18  ;;  %v90_v22 = vld [vmem:[%s5567_s1 + $0x118] sm:$0xff]  ;;  %v76_v24 = vld [vmem:[%s5567_s1 + $0xa8] sm:$0xff] }
   0x7   :  { %2827 = vmatpush3.bf16.msra.mxu1 %v2826_v12  ;;  %2797 = vmatprep.subr.bf16.mxu0 %v2796_v16  ;;  %v2830_v25 = vpack.c.bf16 %v90_v22, %v89_v20  ;;  %v2800_v26 = vpack.c.bf16 %v76_v24, %v75_v23  ;;  %v107_v27 = vld [vmem:[%s5567_s1 + $0x1a0] sm:$0xff]  ;;  %v108_v28 = vld [vmem:[%s5567_s1 + $0x1a8] sm:$0xff]  ;;  %v77_v35 = vld [vmem:[%s5567_s1 + $0xb0] sm:$0xff] }
   0x8   :  { %2829 = vmatprep.subr.bf16.mxu1 %v2828_v17  ;;  %v59_v29 = vld [vmem:[%s5567_s1 + $0x20] sm:$0xff]  ;;  %v2832_v30 = vpack.c.bf16 %v108_v28, %v107_v27  ;;  %v60_v31 = vld [vmem:[%s5567_s1 + $0x28] sm:$0xff]  ;;  %v78_v36 = vld [vmem:[%s5567_s1 + $0xb8] sm:$0xff] }
   0x9   :  { %v91_v32 = vld [vmem:[%s5567_s1 + $0x120] sm:$0xff]  ;;  %v92_v33 = vld [vmem:[%s5567_s1 + $0x128] sm:$0xff]  ;;  %v2802_v34 = vpack.c.bf16 %v60_v31, %v59_v29  ;;  %v109_v37 = vld [vmem:[%s5567_s1 + $0x1b0] sm:$0xff]  ;;  %v2804_v39 = vpack.c.bf16 %v78_v36, %v77_v35 }
   0xa   :  { %2799 = vmatpush3.bf16.msra.mxu0 %v2798_v21  ;;  %v2834_v38 = vpack.c.bf16 %v92_v33, %v91_v32  ;;  %v110_v40 = vld [vmem:[%s5567_s1 + $0x1b8] sm:$0xff]  ;;  %v61_v41 = vld [vmem:[%s5567_s1 + $0x30] sm:$0xff]  ;;  %v79_v46 = vld [vmem:[%s5567_s1 + $0xc0] sm:$0xff] }
   0xb   :  { %2831 = vmatpush3.bf16.msra.mxu1 %v2830_v25  ;;  %2801 = vmatprep.subr.bf16.mxu0 %v2800_v26  ;;  %v62_v42 = vld [vmem:[%s5567_s1 + $0x38] sm:$0xff]  ;;  %v2836_v43 = vpack.c.bf16 %v110_v40, %v109_v37  ;;  %v93_v44 = vld [vmem:[%s5567_s1 + $0x130] sm:$0xff]  ;;  %v80_v47 = vld [vmem:[%s5567_s1 + $0xc8] sm:$0xff] }
   0xc   :  { %2833 = vmatprep.subr.bf16.mxu1 %v2832_v30  ;;  %v94_v45 = vld [vmem:[%s5567_s1 + $0x138] sm:$0xff]  ;;  %v111_v48 = vld [vmem:[%s5567_s1 + $0x1c0] sm:$0xff]  ;;  %v112_v49 = vld [vmem:[%s5567_s1 + $0x1c8] sm:$0xff]  ;;  %v2806_v50 = vpack.c.bf16 %v62_v42, %v61_v41  ;;  %v2808_v52 = vpack.c.bf16 %v80_v47, %v79_v46 }
   0xd   :  { %v2838_v51 = vpack.c.bf16 %v94_v45, %v93_v44  ;;  %v63_v53 = vld [vmem:[%s5567_s1 + $0x40] sm:$0xff]  ;;  %v64_v54 = vld [vmem:[%s5567_s1 + $0x48] sm:$0xff]  ;;  %v2840_v56 = vpack.c.bf16 %v112_v49, %v111_v48  ;;  %v81_v58 = vld [vmem:[%s5567_s1 + $0xd0] sm:$0xff] }
   0xe   :  { %2803 = vmatpush3.bf16.msra.mxu0 %v2802_v34  ;;  %v95_v55 = vld [vmem:[%s5567_s1 + $0x140] sm:$0xff]  ;;  %v96_v57 = vld [vmem:[%s5567_s1 + $0x148] sm:$0xff]  ;;  %v82_v59 = vld [vmem:[%s5567_s1 + $0xd8] sm:$0xff]  ;;  %v2810_v62 = vpack.c.bf16 %v64_v54, %v63_v53 }
   0xf   :  { %2835 = vmatpush3.bf16.msra.mxu1 %v2834_v38  ;;  %2805 = vmatprep.subr.bf16.mxu0 %v2804_v39  ;;  %v113_v60 = vld [vmem:[%s5567_s1 + $0x1d0] sm:$0xff]  ;;  %v114_v61 = vld [vmem:[%s5567_s1 + $0x1d8] sm:$0xff]  ;;  %v2842_v63 = vpack.c.bf16 %v96_v57, %v95_v55  ;;  %v2812_v0 = vpack.c.bf16 %v82_v59, %v81_v58  ;;  %v83_v6 = vld [vmem:[%s5567_s1 + $0xe0] sm:$0xff] }
  0x10   :  { %2837 = vmatprep.subr.bf16.mxu1 %v2836_v43  ;;  %v65_v1 = vld [vmem:[%s5567_s1 + $0x50] sm:$0xff]  ;;  %v66_v2 = vld [vmem:[%s5567_s1 + $0x58] sm:$0xff]  ;;  %v2844_v4 = vpack.c.bf16 %v114_v61, %v113_v60  ;;  %v84_v7 = vld [vmem:[%s5567_s1 + $0xe8] sm:$0xff] }
  0x11   :  { %v97_v3 = vld [vmem:[%s5567_s1 + $0x150] sm:$0xff]  ;;  %v98_v5 = vld [vmem:[%s5567_s1 + $0x158] sm:$0xff]  ;;  %v115_v8 = vld [vmem:[%s5567_s1 + $0x1e0] sm:$0xff]  ;;  %v2814_v10 = vpack.c.bf16 %v66_v2, %v65_v1  ;;  %v2816_v14 = vpack.c.bf16 %v84_v7, %v83_v6 }
  0x12   :  { %2807 = vmatpush3.bf16.msra.mxu0 %v2806_v50  ;;  %v116_v9 = vld [vmem:[%s5567_s1 + $0x1e8] sm:$0xff]  ;;  %v67_v11 = vld [vmem:[%s5567_s1 + $0x60] sm:$0xff]  ;;  %v2846_v13 = vpack.c.bf16 %v98_v5, %v97_v3  ;;  %v18_v17 = vld [vmem:[%s5566_s0 + $0x18] sm:$0xff] }
  0x13   :  { %2839 = vmatpush3.bf16.msra.mxu1 %v2838_v51  ;;  %2809 = vmatprep.subr.bf16.mxu0 %v2808_v52  ;;  %v68_v12 = vld [vmem:[%s5567_s1 + $0x68] sm:$0xff]  ;;  %v99_v15 = vld [vmem:[%s5567_s1 + $0x160] sm:$0xff]  ;;  %v2848_v18 = vpack.c.bf16 %v116_v9, %v115_v8  ;;  %v85_v20 = vld [vmem:[%s5567_s1 + $0xf0] sm:$0xff] }
  0x14   :  { %2841 = vmatprep.subr.bf16.mxu1 %v2840_v56  ;;  %v16_v16 = vld [vmem:[%s5566_s0 + $0x8] sm:$0xff]  ;;  %v86_v21 = vld [vmem:[%s5567_s1 + $0xf8] sm:$0xff]  ;;  %v117_v22 = vld [vmem:[%s5567_s1 + $0x1f0] sm:$0xff]  ;;  %842 = vmatprep.mubr.f32.mxu1 %v18_v17  ;;  %v2818_v24 = vpack.c.bf16 %v68_v12, %v67_v11 }
  0x15   :  { %v100_v19 = vld [vmem:[%s5567_s1 + $0x168] sm:$0xff]  ;;  %772 = vmatprep.mubr.f32.mxu0 %v16_v16  ;;  %v118_v23 = vld [vmem:[%s5567_s1 + $0x1f8] sm:$0xff]  ;;  %v2820_v26 = vpack.c.bf16 %v86_v21, %v85_v20  ;;  %v69_v27 = vld [vmem:[%s5567_s1 + $0x70] sm:$0xff] }
  0x16   :  { %2811 = vmatpush3.bf16.msra.mxu0 %v2810_v62  ;;  %v2850_v25 = vpack.c.bf16 %v100_v19, %v99_v15  ;;  %v70_v28 = vld [vmem:[%s5567_s1 + $0x78] sm:$0xff]  ;;  %v101_v29 = vld [vmem:[%s5567_s1 + $0x170] sm:$0xff]  ;;  %v2852_v30 = vpack.c.bf16 %v118_v23, %v117_v22  ;;  %v135_v32 = vld [vmem:[%s5567_s1 + $0x280] sm:$0xff] }
  0x17   :  { %2843 = vmatpush3.bf16.msra.mxu1 %v2842_v63  ;;  %2813 = vmatprep.subr.bf16.mxu0 %v2812_v0  ;;  %v102_v31 = vld [vmem:[%s5567_s1 + $0x178] sm:$0xff]  ;;  %v136_v33 = vld [vmem:[%s5567_s1 + $0x288] sm:$0xff]  ;;  %v167_v34 = vld [vmem:[%s5567_s1 + $0x380] sm:$0xff]  ;;  %v2822_v36 = vpack.c.bf16 %v70_v28, %v69_v27 }
  0x18   :  { %2845 = vmatprep.subr.bf16.mxu1 %v2844_v4  ;;  %v168_v35 = vld [vmem:[%s5567_s1 + $0x388] sm:$0xff]  ;;  %v2854_v37 = vpack.c.bf16 %v102_v31, %v101_v29  ;;  %v2856_v38 = vpack.c.bf16 %v136_v33, %v135_v32  ;;  %v119_v39 = vld [vmem:[%s5567_s1 + $0x200] sm:$0xff]  ;;  %v137_v44 = vld [vmem:[%s5567_s1 + $0x290] sm:$0xff] }
  0x19   :  { %v120_v40 = vld [vmem:[%s5567_s1 + $0x208] sm:$0xff]  ;;  %v151_v41 = vld [vmem:[%s5567_s1 + $0x300] sm:$0xff]  ;;  %v2888_v42 = vpack.c.bf16 %v168_v35, %v167_v34  ;;  %v138_v45 = vld [vmem:[%s5567_s1 + $0x298] sm:$0xff] }
  0x1a   :  { %2815 = vmatpush3.bf16.msra.mxu0 %v2814_v10  ;;  %v152_v43 = vld [vmem:[%s5567_s1 + $0x308] sm:$0xff]  ;;  %v169_v46 = vld [vmem:[%s5567_s1 + $0x390] sm:$0xff]  ;;  %v170_v47 = vld [vmem:[%s5567_s1 + $0x398] sm:$0xff]  ;;  %v2858_v50 = vpack.c.bf16 %v120_v40, %v119_v39  ;;  %v2860_v52 = vpack.c.bf16 %v138_v45, %v137_v44 }
  0x1b   :  { %2847 = vmatpush3.bf16.msra.mxu1 %v2846_v13  ;;  %2817 = vmatprep.subr.bf16.mxu0 %v2816_v14  ;;  %v15_v48 = vld [vmem:[%s5566_s0] sm:$0xff]  ;;  %v17_v49 = vld [vmem:[%s5566_s0 + $0x10] sm:$0xff]  ;;  %v2890_v51 = vpack.c.bf16 %v152_v43, %v151_v41  ;;  %v122_v54 = vld [vmem:[%s5567_s1 + $0x218] sm:$0xff]  ;;  %v2892_v56 = vpack.c.bf16 %v170_v47, %v169_v46 }
  0x1c   :  { %2849 = vmatprep.subr.bf16.mxu1 %v2848_v18  ;;  %v121_v53 = vld [vmem:[%s5567_s1 + $0x210] sm:$0xff]  ;;  %v154_v57 = vld [vmem:[%s5567_s1 + $0x318] sm:$0xff]  ;;  %v139_v58 = vld [vmem:[%s5567_s1 + $0x2a0] sm:$0xff] }
  0x1d   :  { %v153_v55 = vld [vmem:[%s5567_s1 + $0x310] sm:$0xff]  ;;  %v140_v59 = vld [vmem:[%s5567_s1 + $0x2a8] sm:$0xff]  ;;  %v171_v60 = vld [vmem:[%s5567_s1 + $0x3a0] sm:$0xff]  ;;  %v2862_v62 = vpack.c.bf16 %v122_v54, %v121_v53 }
  0x1e   :  { %2819 = vmatpush3.bf16.msra.mxu0 %v2818_v24  ;;  %v172_v61 = vld [vmem:[%s5567_s1 + $0x3a8] sm:$0xff]  ;;  %v2894_v63 = vpack.c.bf16 %v154_v57, %v153_v55  ;;  %v2864_v0 = vpack.c.bf16 %v140_v59, %v139_v58  ;;  %v123_v1 = vld [vmem:[%s5567_s1 + $0x220] sm:$0xff]  ;;  %v141_v6 = vld [vmem:[%s5567_s1 + $0x2b0] sm:$0xff] }
  0x1f   :  { %2851 = vmatpush3.bf16.msra.mxu1 %v2850_v25  ;;  %2821 = vmatprep.subr.bf16.mxu0 %v2820_v26  ;;  %v124_v2 = vld [vmem:[%s5567_s1 + $0x228] sm:$0xff]  ;;  %v155_v3 = vld [vmem:[%s5567_s1 + $0x320] sm:$0xff]  ;;  %v2896_v4 = vpack.c.bf16 %v172_v61, %v171_v60  ;;  %v142_v7 = vld [vmem:[%s5567_s1 + $0x2b8] sm:$0xff] }
  0x20   :  { %2853 = vmatprep.subr.bf16.mxu1 %v2852_v30  ;;  %v156_v5 = vld [vmem:[%s5567_s1 + $0x328] sm:$0xff]  ;;  %v173_v8 = vld [vmem:[%s5567_s1 + $0x3b0] sm:$0xff]  ;;  %v174_v9 = vld [vmem:[%s5567_s1 + $0x3b8] sm:$0xff]  ;;  %v2866_v10 = vpack.c.bf16 %v124_v2, %v123_v1  ;;  %v2868_v12 = vpack.c.bf16 %v142_v7, %v141_v6 }
  0x21   :  { %v2898_v11 = vpack.c.bf16 %v156_v5, %v155_v3  ;;  %v125_v13 = vld [vmem:[%s5567_s1 + $0x230] sm:$0xff]  ;;  %v126_v14 = vld [vmem:[%s5567_s1 + $0x238] sm:$0xff]  ;;  %v2900_v16 = vpack.c.bf16 %v174_v9, %v173_v8  ;;  %v143_v18 = vld [vmem:[%s5567_s1 + $0x2c0] sm:$0xff] }
  0x22   :  { %2823 = vmatpush3.bf16.msra.mxu0 %v2822_v36  ;;  %v157_v15 = vld [vmem:[%s5567_s1 + $0x330] sm:$0xff]  ;;  %v158_v17 = vld [vmem:[%s5567_s1 + $0x338] sm:$0xff]  ;;  %v144_v19 = vld [vmem:[%s5567_s1 + $0x2c8] sm:$0xff]  ;;  %v2870_v22 = vpack.c.bf16 %v126_v14, %v125_v13 }
  0x23   :  { %2855 = vmatpush3.bf16.msra.mxu1 %v2854_v37  ;;  %2857 = vmatprep.subr.bf16.mxu0 %v2856_v38  ;;  %v175_v20 = vld [vmem:[%s5567_s1 + $0x3c0] sm:$0xff]  ;;  %v176_v21 = vld [vmem:[%s5567_s1 + $0x3c8] sm:$0xff]  ;;  %v22_v24 = vld [vmem:[%s5566_s0 + $0x38] sm:$0xff]  ;;  %v2902_v25 = vpack.c.bf16 %v158_v17, %v157_v15  ;;  %v2872_v26 = vpack.c.bf16 %v144_v19, %v143_v18 }
  0x24   :  { %2889 = vmatprep.subr.bf16.mxu1 %v2888_v42  ;;  %v20_v23 = vld [vmem:[%s5566_s0 + $0x28] sm:$0xff]  ;;  %v127_v27 = vld [vmem:[%s5567_s1 + $0x240] sm:$0xff]  ;;  %v2904_v30 = vpack.c.bf16 %v176_v21, %v175_v20  ;;  %v145_v32 = vld [vmem:[%s5567_s1 + $0x2d0] sm:$0xff] }
  0x25   :  { %773 = vmatmul.mubr.f32.vlgmr.msra.gmra.mrb[0].mxu0 %v15_v48  ;;  %v128_v28 = vld [vmem:[%s5567_s1 + $0x248] sm:$0xff]  ;;  %v159_v29 = vld [vmem:[%s5567_s1 + $0x340] sm:$0xff]  ;;  %v146_v33 = vld [vmem:[%s5567_s1 + $0x2d8] sm:$0xff] }
  0x26   :  { %843 = vmatmul.mubr.f32.vlgmr.msra.gmra.mrb[0].mxu1 %v17_v49  ;;  %2859 = vmatpush3.bf16.msra.mxu0 %v2858_v50  ;;  %v160_v31 = vld [vmem:[%s5567_s1 + $0x348] sm:$0xff]  ;;  %v177_v34 = vld [vmem:[%s5567_s1 + $0x3d0] sm:$0xff]  ;;  %v178_v35 = vld [vmem:[%s5567_s1 + $0x3d8] sm:$0xff]  ;;  %v2874_v36 = vpack.c.bf16 %v128_v28, %v127_v27  ;;  %v2876_v38 = vpack.c.bf16 %v146_v33, %v145_v32 }
  0x27   :  { %2891 = vmatpush3.bf16.msra.mxu1 %v2890_v51  ;;  %2861 = vmatprep.subr.bf16.mxu0 %v2860_v52  ;;  %v2906_v37 = vpack.c.bf16 %v160_v31, %v159_v29  ;;  %v129_v39 = vld [vmem:[%s5567_s1 + $0x250] sm:$0xff]  ;;  %v130_v40 = vld [vmem:[%s5567_s1 + $0x258] sm:$0xff]  ;;  %v2908_v42 = vpack.c.bf16 %v178_v35, %v177_v34  ;;  %v147_v44 = vld [vmem:[%s5567_s1 + $0x2e0] sm:$0xff] }
  0x28   :  { %2893 = vmatprep.subr.bf16.mxu1 %v2892_v56  ;;  %912 = vmatprep.mubr.f32.mxu0 %v20_v23  ;;  %v161_v41 = vld [vmem:[%s5567_s1 + $0x350] sm:$0xff]  ;;  %v162_v43 = vld [vmem:[%s5567_s1 + $0x358] sm:$0xff]  ;;  %v148_v45 = vld [vmem:[%s5567_s1 + $0x2e8] sm:$0xff]  ;;  %v2878_v48 = vpack.c.bf16 %v130_v40, %v129_v39 }
  0x29   :  { %982 = vmatprep.mubr.f32.mxu1 %v22_v24  ;;  %v179_v46 = vld [vmem:[%s5567_s1 + $0x3e0] sm:$0xff]  ;;  %v180_v47 = vld [vmem:[%s5567_s1 + $0x3e8] sm:$0xff]  ;;  %v2910_v49 = vpack.c.bf16 %v162_v43, %v161_v41  ;;  %v2880_v50 = vpack.c.bf16 %v148_v45, %v147_v44  ;;  %v149_v56 = vld [vmem:[%s5567_s1 + $0x2f0] sm:$0xff] }
  0x2a   :  { %2863 = vmatpush3.bf16.msra.mxu0 %v2862_v62  ;;  %v131_v51 = vld [vmem:[%s5567_s1 + $0x260] sm:$0xff]  ;;  %v132_v52 = vld [vmem:[%s5567_s1 + $0x268] sm:$0xff]  ;;  %v2912_v54 = vpack.c.bf16 %v180_v47, %v179_v46  ;;  %v150_v57 = vld [vmem:[%s5567_s1 + $0x2f8] sm:$0xff] }
  0x2b   :  { %2895 = vmatpush3.bf16.msra.mxu1 %v2894_v63  ;;  %2865 = vmatprep.subr.bf16.mxu0 %v2864_v0  ;;  %v163_v53 = vld [vmem:[%s5567_s1 + $0x360] sm:$0xff]  ;;  %v164_v55 = vld [vmem:[%s5567_s1 + $0x368] sm:$0xff]  ;;  %v181_v58 = vld [vmem:[%s5567_s1 + $0x3f0] sm:$0xff]  ;;  %v2882_v60 = vpack.c.bf16 %v132_v52, %v131_v51  ;;  %v2884_v62 = vpack.c.bf16 %v150_v57, %v149_v56 }
  0x2c   :  { %2897 = vmatprep.subr.bf16.mxu1 %v2896_v4  ;;  %v182_v59 = vld [vmem:[%s5567_s1 + $0x3f8] sm:$0xff]  ;;  %v2914_v61 = vpack.c.bf16 %v164_v55, %v163_v53  ;;  %v133_v63 = vld [vmem:[%s5567_s1 + $0x270] sm:$0xff]  ;;  %v199_v4 = vld [vmem:[%s5567_s1 + $0x480] sm:$0xff] }
  0x2d   :  { %v134_v0 = vld [vmem:[%s5567_s1 + $0x278] sm:$0xff]  ;;  %v165_v1 = vld [vmem:[%s5567_s1 + $0x370] sm:$0xff]  ;;  %v2916_v2 = vpack.c.bf16 %v182_v59, %v181_v58  ;;  %v200_v5 = vld [vmem:[%s5567_s1 + $0x488] sm:$0xff] }
  0x2e   :  { %2867 = vmatpush3.bf16.msra.mxu0 %v2866_v10  ;;  %v166_v3 = vld [vmem:[%s5567_s1 + $0x378] sm:$0xff]  ;;  %v231_v6 = vld [vmem:[%s5567_s1 + $0x580] sm:$0xff]  ;;  %v232_v7 = vld [vmem:[%s5567_s1 + $0x588] sm:$0xff]  ;;  %v2886_v8 = vpack.c.bf16 %v134_v0, %v133_v63  ;;  %v2920_v10 = vpack.c.bf16 %v200_v5, %v199_v4 }
  0x2f   :  { %2899 = vmatpush3.bf16.msra.mxu1 %v2898_v11  ;;  %2869 = vmatprep.subr.bf16.mxu0 %v2868_v12  ;;  %v2918_v9 = vpack.c.bf16 %v166_v3, %v165_v1  ;;  %v183_v11 = vld [vmem:[%s5567_s1 + $0x400] sm:$0xff]  ;;  %v184_v12 = vld [vmem:[%s5567_s1 + $0x408] sm:$0xff]  ;;  %v2952_v14 = vpack.c.bf16 %v232_v7, %v231_v6  ;;  %v202_v17 = vld [vmem:[%s5567_s1 + $0x498] sm:$0xff] }
  0x30   :  { %2901 = vmatprep.subr.bf16.mxu1 %v2900_v16  ;;  %v215_v13 = vld [vmem:[%s5567_s1 + $0x500] sm:$0xff]  ;;  %v216_v15 = vld [vmem:[%s5567_s1 + $0x508] sm:$0xff]  ;;  %v201_v16 = vld [vmem:[%s5567_s1 + $0x490] sm:$0xff] }
  0x31   :  { %v233_v18 = vld [vmem:[%s5567_s1 + $0x590] sm:$0xff]  ;;  %v234_v19 = vld [vmem:[%s5567_s1 + $0x598] sm:$0xff]  ;;  %v19_v20 = vld [vmem:[%s5566_s0 + $0x20] sm:$0xff]  ;;  %v2954_v23 = vpack.c.bf16 %v216_v15, %v215_v13  ;;  %v2924_v24 = vpack.c.bf16 %v202_v17, %v201_v16 }
  0x32   :  { %2871 = vmatpush3.bf16.msra.mxu0 %v2870_v22  ;;  %v21_v21 = vld [vmem:[%s5566_s0 + $0x30] sm:$0xff]  ;;  %v2922_v22 = vpack.c.bf16 %v184_v12, %v183_v11  ;;  %v2956_v28 = vpack.c.bf16 %v234_v19, %v233_v18  ;;  %v218_v29 = vld [vmem:[%s5567_s1 + $0x518] sm:$0xff]  ;;  %v204_v31 = vld [vmem:[%s5567_s1 + $0x4a8] sm:$0xff] }
  0x33   :  { %2903 = vmatpush3.bf16.msra.mxu1 %v2902_v25  ;;  %2873 = vmatprep.subr.bf16.mxu0 %v2872_v26  ;;  %v185_v25 = vld [vmem:[%s5567_s1 + $0x410] sm:$0xff]  ;;  %v186_v26 = vld [vmem:[%s5567_s1 + $0x418] sm:$0xff]  ;;  %v235_v32 = vld [vmem:[%s5567_s1 + $0x5a0] sm:$0xff] }
  0x34   :  { %2905 = vmatprep.subr.bf16.mxu1 %v2904_v30  ;;  %v217_v27 = vld [vmem:[%s5567_s1 + $0x510] sm:$0xff]  ;;  %v203_v30 = vld [vmem:[%s5567_s1 + $0x4a0] sm:$0xff]  ;;  %v236_v33 = vld [vmem:[%s5567_s1 + $0x5a8] sm:$0xff]  ;;  %v2926_v35 = vpack.c.bf16 %v186_v26, %v185_v25 }
  0x35   :  { %v24_v34 = vld [vmem:[%s5566_s0 + $0x48] sm:$0xff]  ;;  %v187_v39 = vld [vmem:[%s5567_s1 + $0x420] sm:$0xff]  ;;  %v205_v44 = vld [vmem:[%s5567_s1 + $0x4b0] sm:$0xff] }
  0x36   :  { %2875 = vmatpush3.bf16.msra.mxu0 %v2874_v36  ;;  %v26_v36 = vld [vmem:[%s5566_s0 + $0x58] sm:$0xff]  ;;  %v188_v40 = vld [vmem:[%s5567_s1 + $0x428] sm:$0xff]  ;;  %v219_v41 = vld [vmem:[%s5567_s1 + $0x520] sm:$0xff] }
  0x37   :  { %2907 = vmatpush3.bf16.msra.mxu1 %v2906_v37  ;;  %2877 = vmatprep.subr.bf16.mxu0 %v2876_v38  ;;  %v2958_v37 = vpack.c.bf16 %v218_v29, %v217_v27  ;;  %v2928_v38 = vpack.c.bf16 %v204_v31, %v203_v30  ;;  %v220_v43 = vld [vmem:[%s5567_s1 + $0x528] sm:$0xff]  ;;  %v206_v45 = vld [vmem:[%s5567_s1 + $0x4b8] sm:$0xff]  ;;  %v237_v46 = vld [vmem:[%s5567_s1 + $0x5b0] sm:$0xff] }
  0x38   :  { %2909 = vmatprep.subr.bf16.mxu1 %v2908_v42  ;;  %v2960_v42 = vpack.c.bf16 %v236_v33, %v235_v32  ;;  %v238_v47 = vld [vmem:[%s5567_s1 + $0x5b8] sm:$0xff]  ;;  %v189_v51 = vld [vmem:[%s5567_s1 + $0x430] sm:$0xff]  ;;  %v207_v56 = vld [vmem:[%s5567_s1 + $0x4c0] sm:$0xff] }
  0x39   :  { %v190_v52 = vld [vmem:[%s5567_s1 + $0x438] sm:$0xff]  ;;  %v221_v53 = vld [vmem:[%s5567_s1 + $0x530] sm:$0xff]  ;;  %v208_v57 = vld [vmem:[%s5567_s1 + $0x4c8] sm:$0xff] }
  0x3a   :  { %2879 = vmatpush3.bf16.msra.mxu0 %v2878_v48  ;;  %v2930_v48 = vpack.c.bf16 %v188_v40, %v187_v39  ;;  %v222_v55 = vld [vmem:[%s5567_s1 + $0x538] sm:$0xff]  ;;  %v239_v58 = vld [vmem:[%s5567_s1 + $0x5c0] sm:$0xff]  ;;  %v240_v59 = vld [vmem:[%s5567_s1 + $0x5c8] sm:$0xff] }
  0x3b   :  { %2911 = vmatpush3.bf16.msra.mxu1 %v2910_v49  ;;  %2881 = vmatprep.subr.bf16.mxu0 %v2880_v50  ;;  %v2962_v49 = vpack.c.bf16 %v220_v43, %v219_v41  ;;  %v2932_v50 = vpack.c.bf16 %v206_v45, %v205_v44  ;;  %v191_v63 = vld [vmem:[%s5567_s1 + $0x440] sm:$0xff]  ;;  %v192_v0 = vld [vmem:[%s5567_s1 + $0x448] sm:$0xff]  ;;  %v209_v4 = vld [vmem:[%s5567_s1 + $0x4d0] sm:$0xff] }
  0x3c   :  { %2913 = vmatprep.subr.bf16.mxu1 %v2912_v54  ;;  %v2964_v54 = vpack.c.bf16 %v238_v47, %v237_v46  ;;  %v223_v1 = vld [vmem:[%s5567_s1 + $0x540] sm:$0xff]  ;;  %v224_v3 = vld [vmem:[%s5567_s1 + $0x548] sm:$0xff]  ;;  %v210_v5 = vld [vmem:[%s5567_s1 + $0x4d8] sm:$0xff] }
  0x3d   :  { %v241_v6 = vld [vmem:[%s5567_s1 + $0x5d0] sm:$0xff]  ;;  %v242_v7 = vld [vmem:[%s5567_s1 + $0x5d8] sm:$0xff]  ;;  %v211_v16 = vld [vmem:[%s5567_s1 + $0x4e0] sm:$0xff] }
  0x3e   :  { %2883 = vmatpush3.bf16.msra.mxu0 %v2882_v60  ;;  %v2934_v60 = vpack.c.bf16 %v190_v52, %v189_v51  ;;  %v193_v11 = vld [vmem:[%s5567_s1 + $0x450] sm:$0xff]  ;;  %v194_v12 = vld [vmem:[%s5567_s1 + $0x458] sm:$0xff]  ;;  %v212_v17 = vld [vmem:[%s5567_s1 + $0x4e8] sm:$0xff] }
  0x3f   :  { %2915 = vmatpush3.bf16.msra.mxu1 %v2914_v61  ;;  %2885 = vmatprep.subr.bf16.mxu0 %v2884_v62  ;;  %v2966_v61 = vpack.c.bf16 %v222_v55, %v221_v53  ;;  %v2936_v62 = vpack.c.bf16 %v208_v57, %v207_v56  ;;  %v225_v13 = vld [vmem:[%s5567_s1 + $0x550] sm:$0xff]  ;;  %v226_v15 = vld [vmem:[%s5567_s1 + $0x558] sm:$0xff]  ;;  %v243_v18 = vld [vmem:[%s5567_s1 + $0x5e0] sm:$0xff] }
  0x40   :  { %2917 = vmatprep.subr.bf16.mxu1 %v2916_v2  ;;  %v2968_v2 = vpack.c.bf16 %v240_v59, %v239_v58  ;;  %v244_v19 = vld [vmem:[%s5567_s1 + $0x5e8] sm:$0xff]  ;;  %v227_v25 = vld [vmem:[%s5567_s1 + $0x560] sm:$0xff]  ;;  %v214_v29 = vld [vmem:[%s5567_s1 + $0x4f8] sm:$0xff] }
  0x41   :  { %v2976_v26 = vpack.c.bf16 %v244_v19, %v243_v18  ;;  %v228_v27 = vld [vmem:[%s5567_s1 + $0x568] sm:$0xff]  ;;  %v245_v30 = vld [vmem:[%s5567_s1 + $0x5f0] sm:$0xff]  ;;  %v246_v31 = vld [vmem:[%s5567_s1 + $0x5f8] sm:$0xff] }
  0x42   :  { %2887 = vmatpush3.bf16.msra.mxu0 %v2886_v8  ;;  %v2938_v8 = vpack.c.bf16 %v192_v0, %v191_v63  ;;  %v2978_v33 = vpack.c.bf16 %v228_v27, %v227_v25  ;;  %v230_v39 = vld [vmem:[%s5567_s1 + $0x578] sm:$0xff]  ;;  %v263_v40 = vld [vmem:[%s5567_s1 + $0x680] sm:$0xff]  ;;  %v264_v41 = vld [vmem:[%s5567_s1 + $0x688] sm:$0xff] }
  0x43   :  { %2919 = vmatpush3.bf16.msra.mxu1 %v2918_v9  ;;  %2921 = vmatprep.subr.bf16.mxu0 %v2920_v10  ;;  %v2970_v9 = vpack.c.bf16 %v224_v3, %v223_v1  ;;  %v2940_v10 = vpack.c.bf16 %v210_v5, %v209_v4  ;;  %v296_v43 = vld [vmem:[%s5567_s1 + $0x788] sm:$0xff]  ;;  %v2984_v46 = vpack.c.bf16 %v264_v41, %v263_v40  ;;  %v247_v47 = vld [vmem:[%s5567_s1 + $0x600] sm:$0xff]  ;;  %v265_v52 = vld [vmem:[%s5567_s1 + $0x690] sm:$0xff] }
  0x44   :  { %2953 = vmatprep.subr.bf16.mxu1 %v2952_v14  ;;  %v2972_v14 = vpack.c.bf16 %v242_v7, %v241_v6  ;;  %v280_v51 = vld [vmem:[%s5567_s1 + $0x708] sm:$0xff]  ;;  %v266_v53 = vld [vmem:[%s5567_s1 + $0x698] sm:$0xff]  ;;  %v23_v56 = vld [vmem:[%s5566_s0 + $0x40] sm:$0xff] }
  0x45   :  { %913 = vmatmul.mubr.f32.vlgmr.msra.gmra.mrb[2].mxu0 %v19_v20  ;;  %v2942_v20 = vpack.c.bf16 %v194_v12, %v193_v11  ;;  %v298_v55 = vld [vmem:[%s5567_s1 + $0x798] sm:$0xff]  ;;  %v25_v57 = vld [vmem:[%s5566_s0 + $0x50] sm:$0xff]  ;;  %v268_v3 = vld [vmem:[%s5567_s1 + $0x6a8] sm:$0xff] }
  0x46   :  { %983 = vmatmul.mubr.f32.vlgmr.msra.gmra.mrb[2].mxu1 %v21_v21  ;;  %2923 = vmatpush3.bf16.msra.mxu0 %v2922_v22  ;;  %v2974_v21 = vpack.c.bf16 %v226_v15, %v225_v13  ;;  %v2944_v22 = vpack.c.bf16 %v212_v17, %v211_v16  ;;  %v281_v63 = vld [vmem:[%s5567_s1 + $0x710] sm:$0xff]  ;;  %v282_v1 = vld [vmem:[%s5567_s1 + $0x718] sm:$0xff]  ;;  %v299_v4 = vld [vmem:[%s5567_s1 + $0x7a0] sm:$0xff] }
  0x47   :  { %2955 = vmatpush3.bf16.msra.mxu1 %v2954_v23  ;;  %2925 = vmatprep.subr.bf16.mxu0 %v2924_v24  ;;  %v195_v23 = vld [vmem:[%s5567_s1 + $0x460] sm:$0xff]  ;;  %v196_v24 = vld [vmem:[%s5567_s1 + $0x468] sm:$0xff]  ;;  %v269_v16 = vld [vmem:[%s5567_s1 + $0x6b0] sm:$0xff] }
  0x48   :  { %2957 = vmatprep.subr.bf16.mxu1 %v2956_v28  ;;  %1052 = vmatprep.mubr.f32.mxu0 %v24_v34  ;;  %v213_v28 = vld [vmem:[%s5567_s1 + $0x4f0] sm:$0xff]  ;;  %v2946_v32 = vpack.c.bf16 %v196_v24, %v195_v23  ;;  %v300_v5 = vld [vmem:[%s5567_s1 + $0x7a8] sm:$0xff]  ;;  %v251_v11 = vld [vmem:[%s5567_s1 + $0x620] sm:$0xff] }
  0x49   :  { %1122 = vmatprep.mubr.f32.mxu1 %v26_v36  ;;  %v2948_v34 = vpack.c.bf16 %v214_v29, %v213_v28  ;;  %v198_v36 = vld [vmem:[%s5567_s1 + $0x478] sm:$0xff]  ;;  %v28_v6 = vld [vmem:[%s5566_s0 + $0x68] sm:$0xff]  ;;  %v283_v13 = vld [vmem:[%s5567_s1 + $0x720] sm:$0xff] }
  0x4a   :  { %2927 = vmatpush3.bf16.msra.mxu0 %v2926_v35  ;;  %v197_v35 = vld [vmem:[%s5567_s1 + $0x470] sm:$0xff]  ;;  %v252_v12 = vld [vmem:[%s5567_s1 + $0x628] sm:$0xff]  ;;  %v270_v17 = vld [vmem:[%s5567_s1 + $0x6b8] sm:$0xff] }
  0x4b   :  { %2959 = vmatpush3.bf16.msra.mxu1 %v2958_v37  ;;  %2929 = vmatprep.subr.bf16.mxu0 %v2928_v38  ;;  %v229_v37 = vld [vmem:[%s5567_s1 + $0x570] sm:$0xff]  ;;  %v2980_v38 = vpack.c.bf16 %v246_v31, %v245_v30  ;;  %v2950_v44 = vpack.c.bf16 %v198_v36, %v197_v35  ;;  %v284_v15 = vld [vmem:[%s5567_s1 + $0x728] sm:$0xff]  ;;  %v302_v19 = vld [vmem:[%s5567_s1 + $0x7b8] sm:$0xff] }
  0x4c   :  { %2961 = vmatprep.subr.bf16.mxu1 %v2960_v42  ;;  %v295_v42 = vld [vmem:[%s5567_s1 + $0x780] sm:$0xff]  ;;  %v2982_v45 = vpack.c.bf16 %v230_v39, %v229_v37  ;;  %v301_v18 = vld [vmem:[%s5567_s1 + $0x7b0] sm:$0xff]  ;;  %v254_v24 = vld [vmem:[%s5567_s1 + $0x638] sm:$0xff] }
  0x4d   :  { %v253_v23 = vld [vmem:[%s5567_s1 + $0x630] sm:$0xff]  ;;  %v286_v27 = vld [vmem:[%s5567_s1 + $0x738] sm:$0xff]  ;;  %v271_v28 = vld [vmem:[%s5567_s1 + $0x6c0] sm:$0xff] }
  0x4e   :  { %2931 = vmatpush3.bf16.msra.mxu0 %v2930_v48  ;;  %v248_v48 = vld [vmem:[%s5567_s1 + $0x608] sm:$0xff]  ;;  %v285_v25 = vld [vmem:[%s5567_s1 + $0x730] sm:$0xff]  ;;  %v303_v30 = vld [vmem:[%s5567_s1 + $0x7c0] sm:$0xff] }
  0x4f   :  { %2963 = vmatpush3.bf16.msra.mxu1 %v2962_v49  ;;  %2933 = vmatprep.subr.bf16.mxu0 %v2932_v50  ;;  %v279_v49 = vld [vmem:[%s5567_s1 + $0x700] sm:$0xff]  ;;  %v3016_v50 = vpack.c.bf16 %v296_v43, %v295_v42  ;;  %v2986_v58 = vpack.c.bf16 %v248_v48, %v247_v47  ;;  %v272_v29 = vld [vmem:[%s5567_s1 + $0x6c8] sm:$0xff]  ;;  %v273_v40 = vld [vmem:[%s5567_s1 + $0x6d0] sm:$0xff] }
  0x50   :  { %2965 = vmatprep.subr.bf16.mxu1 %v2964_v54  ;;  %v297_v54 = vld [vmem:[%s5567_s1 + $0x790] sm:$0xff]  ;;  %v3018_v59 = vpack.c.bf16 %v280_v51, %v279_v49  ;;  %v304_v31 = vld [vmem:[%s5567_s1 + $0x7c8] sm:$0xff]  ;;  %v255_v35 = vld [vmem:[%s5567_s1 + $0x640] sm:$0xff] }
  0x51   :  { %v3020_v0 = vpack.c.bf16 %v298_v55, %v297_v54  ;;  %v256_v36 = vld [vmem:[%s5567_s1 + $0x648] sm:$0xff]  ;;  %v287_v37 = vld [vmem:[%s5567_s1 + $0x740] sm:$0xff]  ;;  %v274_v41 = vld [vmem:[%s5567_s1 + $0x6d8] sm:$0xff] }
  0x52   :  { %2935 = vmatpush3.bf16.msra.mxu0 %v2934_v60  ;;  %v2988_v60 = vpack.c.bf16 %v266_v53, %v265_v52  ;;  %v288_v39 = vld [vmem:[%s5567_s1 + $0x748] sm:$0xff]  ;;  %v305_v42 = vld [vmem:[%s5567_s1 + $0x7d0] sm:$0xff]  ;;  %v306_v43 = vld [vmem:[%s5567_s1 + $0x7d8] sm:$0xff] }
  0x53   :  { %2967 = vmatpush3.bf16.msra.mxu1 %v2966_v61  ;;  %2937 = vmatprep.subr.bf16.mxu0 %v2936_v62  ;;  %v249_v61 = vld [vmem:[%s5567_s1 + $0x610] sm:$0xff]  ;;  %v250_v62 = vld [vmem:[%s5567_s1 + $0x618] sm:$0xff]  ;;  %v275_v52 = vld [vmem:[%s5567_s1 + $0x6e0] sm:$0xff] }
  0x54   :  { %2969 = vmatprep.subr.bf16.mxu1 %v2968_v2  ;;  %v267_v2 = vld [vmem:[%s5567_s1 + $0x6a0] sm:$0xff]  ;;  %v2990_v7 = vpack.c.bf16 %v250_v62, %v249_v61  ;;  %v257_v47 = vld [vmem:[%s5567_s1 + $0x650] sm:$0xff]  ;;  %v258_v48 = vld [vmem:[%s5567_s1 + $0x658] sm:$0xff] }
  0x55   :  { %v289_v49 = vld [vmem:[%s5567_s1 + $0x750] sm:$0xff]  ;;  %v290_v51 = vld [vmem:[%s5567_s1 + $0x758] sm:$0xff]  ;;  %v276_v53 = vld [vmem:[%s5567_s1 + $0x6e8] sm:$0xff] }
  0x56   :  { %2939 = vmatpush3.bf16.msra.mxu0 %v2938_v8  ;;  %v30_v8 = vld [vmem:[%s5566_s0 + $0x78] sm:$0xff]  ;;  %v307_v54 = vld [vmem:[%s5567_s1 + $0x7e0] sm:$0xff]  ;;  %v308_v55 = vld [vmem:[%s5567_s1 + $0x7e8] sm:$0xff] }
  0x57   :  { %2971 = vmatpush3.bf16.msra.mxu1 %v2970_v9  ;;  %2941 = vmatprep.subr.bf16.mxu0 %v2940_v10  ;;  %v3022_v9 = vpack.c.bf16 %v282_v1, %v281_v63  ;;  %v2992_v10 = vpack.c.bf16 %v268_v3, %v267_v2  ;;  %v291_v61 = vld [vmem:[%s5567_s1 + $0x760] sm:$0xff]  ;;  %v3040_v62 = vpack.c.bf16 %v308_v55, %v307_v54  ;;  %v292_v63 = vld [vmem:[%s5567_s1 + $0x768] sm:$0xff]  ;;  %v278_v1 = vld [vmem:[%s5567_s1 + $0x6f8] sm:$0xff] }
  0x58   :  { %2973 = vmatprep.subr.bf16.mxu1 %v2972_v14  ;;  %v3024_v14 = vpack.c.bf16 %v300_v5, %v299_v4  ;;  %v309_v2 = vld [vmem:[%s5567_s1 + $0x7f0] sm:$0xff]  ;;  %v310_v3 = vld [vmem:[%s5567_s1 + $0x7f8] sm:$0xff]  ;;  %v3042_v5 = vpack.c.bf16 %v292_v63, %v291_v61 }
  0x59   :  { %v365_v54 = vld [vmem:[%s5567_s1 + $0x9b0] sm:$0xff]  ;;  %v366_v55 = vld [vmem:[%s5567_s1 + $0x9b8] sm:$0xff] }
  0x5a   :  { %2943 = vmatpush3.bf16.msra.mxu0 %v2942_v20  ;;  %v2994_v20 = vpack.c.bf16 %v252_v12, %v251_v11  ;;  %v294_v11 = vld [vmem:[%s5567_s1 + $0x778] sm:$0xff]  ;;  %v327_v12 = vld [vmem:[%s5567_s1 + $0x880] sm:$0xff]  ;;  %v349_v61 = vld [vmem:[%s5567_s1 + $0x930] sm:$0xff] }
  0x5b   :  { %2975 = vmatpush3.bf16.msra.mxu1 %v2974_v21  ;;  %2945 = vmatprep.subr.bf16.mxu0 %v2944_v22  ;;  %v3026_v21 = vpack.c.bf16 %v284_v15, %v283_v13  ;;  %v2996_v22 = vpack.c.bf16 %v270_v17, %v269_v16  ;;  %v328_v13 = vld [vmem:[%s5567_s1 + $0x888] sm:$0xff]  ;;  %v350_v63 = vld [vmem:[%s5567_s1 + $0x938] sm:$0xff] }
  0x5c   :  { %2977 = vmatprep.subr.bf16.mxu1 %v2976_v26  ;;  %v3028_v26 = vpack.c.bf16 %v302_v19, %v301_v18  ;;  %v360_v15 = vld [vmem:[%s5567_s1 + $0x988] sm:$0xff]  ;;  %v3048_v18 = vpack.c.bf16 %v328_v13, %v327_v12  ;;  %v311_v19 = vld [vmem:[%s5567_s1 + $0x800] sm:$0xff]  ;;  %v337_v12 = vld [vmem:[%s5567_s1 + $0x8d0] sm:$0xff] }
  0x5d   :  { %v338_v13 = vld [vmem:[%s5567_s1 + $0x8d8] sm:$0xff] }
  0x5e   :  { %2947 = vmatpush3.bf16.msra.mxu0 %v2946_v32  ;;  %v2998_v32 = vpack.c.bf16 %v254_v24, %v253_v23  ;;  %v344_v23 = vld [vmem:[%s5567_s1 + $0x908] sm:$0xff]  ;;  %v329_v24 = vld [vmem:[%s5567_s1 + $0x890] sm:$0xff] }
  0x5f   :  { %2979 = vmatpush3.bf16.msra.mxu1 %v2978_v33  ;;  %2949 = vmatprep.subr.bf16.mxu0 %v2948_v34  ;;  %v3030_v33 = vpack.c.bf16 %v286_v27, %v285_v25  ;;  %v3000_v34 = vpack.c.bf16 %v272_v29, %v271_v28  ;;  %v330_v25 = vld [vmem:[%s5567_s1 + $0x898] sm:$0xff]  ;;  %v27_v28 = vld [vmem:[%s5566_s0 + $0x60] sm:$0xff]  ;;  %v29_v29 = vld [vmem:[%s5566_s0 + $0x70] sm:$0xff] }
  0x60   :  { %2981 = vmatprep.subr.bf16.mxu1 %v2980_v38  ;;  %v3032_v38 = vpack.c.bf16 %v304_v31, %v303_v30  ;;  %v362_v27 = vld [vmem:[%s5567_s1 + $0x998] sm:$0xff] }
  0x62   :  { %2951 = vmatpush3.bf16.msra.mxu0 %v2950_v44  ;;  %v3002_v44 = vpack.c.bf16 %v256_v36, %v255_v35  ;;  %v345_v35 = vld [vmem:[%s5567_s1 + $0x910] sm:$0xff] }
  0x63   :  { %2983 = vmatpush3.bf16.msra.mxu1 %v2982_v45  ;;  %2985 = vmatprep.subr.bf16.mxu0 %v2984_v46  ;;  %v3034_v45 = vpack.c.bf16 %v288_v39, %v287_v37  ;;  %v3004_v46 = vpack.c.bf16 %v274_v41, %v273_v40  ;;  %v346_v37 = vld [vmem:[%s5567_s1 + $0x918] sm:$0xff]  ;;  %v332_v39 = vld [vmem:[%s5567_s1 + $0x8a8] sm:$0xff]  ;;  %v363_v40 = vld [vmem:[%s5567_s1 + $0x9a0] sm:$0xff] }
  0x64   :  { %3017 = vmatprep.subr.bf16.mxu1 %v3016_v50  ;;  %v3036_v50 = vpack.c.bf16 %v306_v43, %v305_v42  ;;  %v364_v41 = vld [vmem:[%s5567_s1 + $0x9a8] sm:$0xff] }
  0x65   :  { %1053 = vmatmul.mubr.f32.vlgmr.msra.gmra.mrb[4].mxu0 %v23_v56  ;;  %v3006_v56 = vpack.c.bf16 %v258_v48, %v257_v47  ;;  %v32_v42 = vld [vmem:[%s5566_s0 + $0x88] sm:$0xff]  ;;  %v315_v47 = vld [vmem:[%s5567_s1 + $0x820] sm:$0xff] }
  0x66   :  { %1123 = vmatmul.mubr.f32.vlgmr.msra.gmra.mrb[4].mxu1 %v25_v57  ;;  %2987 = vmatpush3.bf16.msra.mxu0 %v2986_v58  ;;  %v3038_v57 = vpack.c.bf16 %v290_v51, %v289_v49  ;;  %v3008_v58 = vpack.c.bf16 %v276_v53, %v275_v52  ;;  %v316_v48 = vld [vmem:[%s5567_s1 + $0x828] sm:$0xff]  ;;  %v347_v49 = vld [vmem:[%s5567_s1 + $0x920] sm:$0xff]  ;;  %v333_v52 = vld [vmem:[%s5567_s1 + $0x8b0] sm:$0xff] }
  0x67   :  { %3019 = vmatpush3.bf16.msra.mxu1 %v3018_v59  ;;  %2989 = vmatprep.subr.bf16.mxu0 %v2988_v60  ;;  %v259_v59 = vld [vmem:[%s5567_s1 + $0x660] sm:$0xff]  ;;  %v260_v60 = vld [vmem:[%s5567_s1 + $0x668] sm:$0xff]  ;;  %v334_v53 = vld [vmem:[%s5567_s1 + $0x8b8] sm:$0xff] }
  0x68   :  { %3021 = vmatprep.subr.bf16.mxu1 %v3020_v0  ;;  %1192 = vmatprep.mubr.f32.mxu0 %v28_v6  ;;  %v277_v0 = vld [vmem:[%s5567_s1 + $0x6f0] sm:$0xff]  ;;  %v3010_v4 = vpack.c.bf16 %v260_v60, %v259_v59  ;;  %v348_v51 = vld [vmem:[%s5567_s1 + $0x928] sm:$0xff]  ;;  %v318_v60 = vld [vmem:[%s5567_s1 + $0x838] sm:$0xff] }
  0x69   :  { %1262 = vmatprep.mubr.f32.mxu1 %v30_v8  ;;  %v3012_v6 = vpack.c.bf16 %v278_v1, %v277_v0  ;;  %v262_v8 = vld [vmem:[%s5567_s1 + $0x678] sm:$0xff]  ;;  %v317_v59 = vld [vmem:[%s5567_s1 + $0x830] sm:$0xff]  ;;  %v335_v0 = vld [vmem:[%s5567_s1 + $0x8c0] sm:$0xff] }
  0x6a   :  { %2991 = vmatpush3.bf16.msra.mxu0 %v2990_v7  ;;  %v261_v7 = vld [vmem:[%s5567_s1 + $0x670] sm:$0xff]  ;;  %v336_v1 = vld [vmem:[%s5567_s1 + $0x8c8] sm:$0xff] }
  0x6b   :  { %3023 = vmatpush3.bf16.msra.mxu1 %v3022_v9  ;;  %2993 = vmatprep.subr.bf16.mxu0 %v2992_v10  ;;  %v293_v9 = vld [vmem:[%s5567_s1 + $0x770] sm:$0xff]  ;;  %v3044_v10 = vpack.c.bf16 %v310_v3, %v309_v2  ;;  %v3014_v16 = vpack.c.bf16 %v262_v8, %v261_v7  ;;  %v367_v2 = vld [vmem:[%s5567_s1 + $0x9c0] sm:$0xff]  ;;  %v368_v3 = vld [vmem:[%s5567_s1 + $0x9c8] sm:$0xff] }
  0x6c   :  { %3025 = vmatprep.subr.bf16.mxu1 %v3024_v14  ;;  %v359_v14 = vld [vmem:[%s5567_s1 + $0x980] sm:$0xff]  ;;  %v3046_v17 = vpack.c.bf16 %v294_v11, %v293_v9  ;;  %v320_v8 = vld [vmem:[%s5567_s1 + $0x848] sm:$0xff] }
  0x6d   :  { %v319_v7 = vld [vmem:[%s5567_s1 + $0x840] sm:$0xff]  ;;  %v352_v11 = vld [vmem:[%s5567_s1 + $0x948] sm:$0xff] }
  0x6e   :  { %2995 = vmatpush3.bf16.msra.mxu0 %v2994_v20  ;;  %v312_v20 = vld [vmem:[%s5567_s1 + $0x808] sm:$0xff]  ;;  %v351_v9 = vld [vmem:[%s5567_s1 + $0x940] sm:$0xff] }
  0x6f   :  { %3027 = vmatpush3.bf16.msra.mxu1 %v3026_v21  ;;  %2997 = vmatprep.subr.bf16.mxu0 %v2996_v22  ;;  %v343_v21 = vld [vmem:[%s5567_s1 + $0x900] sm:$0xff]  ;;  %v3080_v22 = vpack.c.bf16 %v360_v15, %v359_v14  ;;  %v3050_v30 = vpack.c.bf16 %v312_v20, %v311_v19  ;;  %v369_v14 = vld [vmem:[%s5567_s1 + $0x9d0] sm:$0xff]  ;;  %v370_v15 = vld [vmem:[%s5567_s1 + $0x9d8] sm:$0xff] }
  0x70   :  { %3029 = vmatprep.subr.bf16.mxu1 %v3028_v26  ;;  %v361_v26 = vld [vmem:[%s5567_s1 + $0x990] sm:$0xff]  ;;  %v3082_v31 = vpack.c.bf16 %v344_v23, %v343_v21  ;;  %v322_v20 = vld [vmem:[%s5567_s1 + $0x858] sm:$0xff] }
  0x71   :  { %v3084_v36 = vpack.c.bf16 %v362_v27, %v361_v26  ;;  %v321_v19 = vld [vmem:[%s5567_s1 + $0x850] sm:$0xff]  ;;  %v354_v23 = vld [vmem:[%s5567_s1 + $0x958] sm:$0xff]  ;;  %v371_v26 = vld [vmem:[%s5567_s1 + $0x9e0] sm:$0xff] }
  0x72   :  { %2999 = vmatpush3.bf16.msra.mxu0 %v2998_v32  ;;  %v3052_v32 = vpack.c.bf16 %v330_v25, %v329_v24  ;;  %v353_v21 = vld [vmem:[%s5567_s1 + $0x950] sm:$0xff]  ;;  %v339_v24 = vld [vmem:[%s5567_s1 + $0x8e0] sm:$0xff]  ;;  %v340_v25 = vld [vmem:[%s5567_s1 + $0x8e8] sm:$0xff] }
  0x73   :  { %3031 = vmatpush3.bf16.msra.mxu1 %v3030_v33  ;;  %3001 = vmatprep.subr.bf16.mxu0 %v3000_v34  ;;  %v313_v33 = vld [vmem:[%s5567_s1 + $0x810] sm:$0xff]  ;;  %v314_v34 = vld [vmem:[%s5567_s1 + $0x818] sm:$0xff]  ;;  %v372_v27 = vld [vmem:[%s5567_s1 + $0x9e8] sm:$0xff] }
  0x74   :  { %3033 = vmatprep.subr.bf16.mxu1 %v3032_v38  ;;  %v331_v38 = vld [vmem:[%s5567_s1 + $0x8a0] sm:$0xff]  ;;  %v3054_v43 = vpack.c.bf16 %v314_v34, %v313_v33  ;;  %v3104_v34 = vpack.c.bf16 %v372_v27, %v371_v26  ;;  %v429_v26 = vld [vmem:[%s5567_s1 + $0xbb0] sm:$0xff]  ;;  %v430_v27 = vld [vmem:[%s5567_s1 + $0xbb8] sm:$0xff] }
  0x75   :  { %v355_v33 = vld [vmem:[%s5567_s1 + $0x960] sm:$0xff] }
  0x76   :  { %3003 = vmatpush3.bf16.msra.mxu0 %v3002_v44  ;;  %v34_v44 = vld [vmem:[%s5566_s0 + $0x98] sm:$0xff] }
  0x77   :  { %3035 = vmatpush3.bf16.msra.mxu1 %v3034_v45  ;;  %3005 = vmatprep.subr.bf16.mxu0 %v3004_v46  ;;  %v3086_v45 = vpack.c.bf16 %v346_v37, %v345_v35  ;;  %v3056_v46 = vpack.c.bf16 %v332_v39, %v331_v38  ;;  %v356_v35 = vld [vmem:[%s5567_s1 + $0x968] sm:$0xff]  ;;  %v342_v37 = vld [vmem:[%s5567_s1 + $0x8f8] sm:$0xff]  ;;  %v373_v38 = vld [vmem:[%s5567_s1 + $0x9f0] sm:$0xff] }
  0x78   :  { %3037 = vmatprep.subr.bf16.mxu1 %v3036_v50  ;;  %v3088_v50 = vpack.c.bf16 %v364_v41, %v363_v40  ;;  %v374_v39 = vld [vmem:[%s5567_s1 + $0x9f8] sm:$0xff]  ;;  %v3106_v41 = vpack.c.bf16 %v356_v35, %v355_v33  ;;  %v413_v33 = vld [vmem:[%s5567_s1 + $0xb30] sm:$0xff] }
  0x79   :  { %v414_v35 = vld [vmem:[%s5567_s1 + $0xb38] sm:$0xff] }
  0x7a   :  { %3007 = vmatpush3.bf16.msra.mxu0 %v3006_v56  ;;  %v3058_v56 = vpack.c.bf16 %v316_v48, %v315_v47  ;;  %v358_v47 = vld [vmem:[%s5567_s1 + $0x978] sm:$0xff]  ;;  %v391_v48 = vld [vmem:[%s5567_s1 + $0xa80] sm:$0xff] }
  0x7b   :  { %3039 = vmatpush3.bf16.msra.mxu1 %v3038_v57  ;;  %3009 = vmatprep.subr.bf16.mxu0 %v3008_v58  ;;  %v3090_v57 = vpack.c.bf16 %v348_v51, %v347_v49  ;;  %v3060_v58 = vpack.c.bf16 %v334_v53, %v333_v52  ;;  %v392_v49 = vld [vmem:[%s5567_s1 + $0xa88] sm:$0xff] }
  0x7c   :  { %3041 = vmatprep.subr.bf16.mxu1 %v3040_v62  ;;  %v3092_v62 = vpack.c.bf16 %v366_v55, %v365_v54  ;;  %v424_v51 = vld [vmem:[%s5567_s1 + $0xb88] sm:$0xff]  ;;  %v3112_v54 = vpack.c.bf16 %v392_v49, %v391_v48  ;;  %v375_v55 = vld [vmem:[%s5567_s1 + $0xa00] sm:$0xff]  ;;  %v401_v48 = vld [vmem:[%s5567_s1 + $0xad0] sm:$0xff] }
  0x7d   :  { %v402_v49 = vld [vmem:[%s5567_s1 + $0xad8] sm:$0xff] }
  0x7e   :  { %3011 = vmatpush3.bf16.msra.mxu0 %v3010_v4  ;;  %v3062_v4 = vpack.c.bf16 %v318_v60, %v317_v59  ;;  %v408_v59 = vld [vmem:[%s5567_s1 + $0xb08] sm:$0xff]  ;;  %v393_v60 = vld [vmem:[%s5567_s1 + $0xa90] sm:$0xff] }
  0x7f   :  { %3043 = vmatpush3.bf16.msra.mxu1 %v3042_v5  ;;  %3013 = vmatprep.subr.bf16.mxu0 %v3012_v6  ;;  %v3094_v5 = vpack.c.bf16 %v350_v63, %v349_v61  ;;  %v3064_v6 = vpack.c.bf16 %v336_v1, %v335_v0  ;;  %v394_v61 = vld [vmem:[%s5567_s1 + $0xa98] sm:$0xff]  ;;  %v31_v0 = vld [vmem:[%s5566_s0 + $0x80] sm:$0xff]  ;;  %v33_v1 = vld [vmem:[%s5566_s0 + $0x90] sm:$0xff] }
  0x80   :  { %3045 = vmatprep.subr.bf16.mxu1 %v3044_v10  ;;  %v3096_v10 = vpack.c.bf16 %v368_v3, %v367_v2  ;;  %v426_v63 = vld [vmem:[%s5567_s1 + $0xb98] sm:$0xff] }
  0x82   :  { %3015 = vmatpush3.bf16.msra.mxu0 %v3014_v16  ;;  %v3066_v16 = vpack.c.bf16 %v320_v8, %v319_v7  ;;  %v409_v7 = vld [vmem:[%s5567_s1 + $0xb10] sm:$0xff] }
  0x83   :  { %3047 = vmatpush3.bf16.msra.mxu1 %v3046_v17  ;;  %3049 = vmatprep.subr.bf16.mxu0 %v3048_v18  ;;  %v3098_v17 = vpack.c.bf16 %v352_v11, %v351_v9  ;;  %v3068_v18 = vpack.c.bf16 %v338_v13, %v337_v12  ;;  %v410_v9 = vld [vmem:[%s5567_s1 + $0xb18] sm:$0xff]  ;;  %v396_v11 = vld [vmem:[%s5567_s1 + $0xaa8] sm:$0xff]  ;;  %v427_v12 = vld [vmem:[%s5567_s1 + $0xba0] sm:$0xff] }
  0x84   :  { %3081 = vmatprep.subr.bf16.mxu1 %v3080_v22  ;;  %v3100_v22 = vpack.c.bf16 %v370_v15, %v369_v14  ;;  %v428_v13 = vld [vmem:[%s5567_s1 + $0xba8] sm:$0xff] }
  0x85   :  { %1193 = vmatmul.mubr.f32.vlgmr.msra.gmra.mrb[6].mxu0 %v27_v28  ;;  %v3070_v28 = vpack.c.bf16 %v322_v20, %v321_v19  ;;  %v36_v14 = vld [vmem:[%s5566_s0 + $0xa8] sm:$0xff]  ;;  %v379_v19 = vld [vmem:[%s5567_s1 + $0xa20] sm:$0xff] }
  0x86   :  { %1263 = vmatmul.mubr.f32.vlgmr.msra.gmra.mrb[6].mxu1 %v29_v29  ;;  %3051 = vmatpush3.bf16.msra.mxu0 %v3050_v30  ;;  %v3102_v29 = vpack.c.bf16 %v354_v23, %v353_v21  ;;  %v3072_v30 = vpack.c.bf16 %v340_v25, %v339_v24  ;;  %v380_v20 = vld [vmem:[%s5567_s1 + $0xa28] sm:$0xff]  ;;  %v411_v21 = vld [vmem:[%s5567_s1 + $0xb20] sm:$0xff]  ;;  %v397_v24 = vld [vmem:[%s5567_s1 + $0xab0] sm:$0xff] }
  0x87   :  { %3083 = vmatpush3.bf16.msra.mxu1 %v3082_v31  ;;  %3053 = vmatprep.subr.bf16.mxu0 %v3052_v32  ;;  %v323_v31 = vld [vmem:[%s5567_s1 + $0x860] sm:$0xff]  ;;  %v324_v32 = vld [vmem:[%s5567_s1 + $0x868] sm:$0xff]  ;;  %v398_v25 = vld [vmem:[%s5567_s1 + $0xab8] sm:$0xff] }
  0x88   :  { %3085 = vmatprep.subr.bf16.mxu1 %v3084_v36  ;;  %1332 = vmatprep.mubr.f32.mxu0 %v32_v42  ;;  %v341_v36 = vld [vmem:[%s5567_s1 + $0x8f0] sm:$0xff]  ;;  %v3074_v40 = vpack.c.bf16 %v324_v32, %v323_v31  ;;  %v412_v23 = vld [vmem:[%s5567_s1 + $0xb28] sm:$0xff]  ;;  %v382_v32 = vld [vmem:[%s5567_s1 + $0xa38] sm:$0xff] }
  0x89   :  { %1402 = vmatprep.mubr.f32.mxu1 %v34_v44  ;;  %v3076_v42 = vpack.c.bf16 %v342_v37, %v341_v36  ;;  %v326_v44 = vld [vmem:[%s5567_s1 + $0x878] sm:$0xff]  ;;  %v381_v31 = vld [vmem:[%s5567_s1 + $0xa30] sm:$0xff]  ;;  %v399_v36 = vld [vmem:[%s5567_s1 + $0xac0] sm:$0xff] }
  0x8a   :  { %3055 = vmatpush3.bf16.msra.mxu0 %v3054_v43  ;;  %v325_v43 = vld [vmem:[%s5567_s1 + $0x870] sm:$0xff]  ;;  %v400_v37 = vld [vmem:[%s5567_s1 + $0xac8] sm:$0xff] }
  0x8b   :  { %3087 = vmatpush3.bf16.msra.mxu1 %v3086_v45  ;;  %3057 = vmatprep.subr.bf16.mxu0 %v3056_v46  ;;  %v357_v45 = vld [vmem:[%s5567_s1 + $0x970] sm:$0xff]  ;;  %v3108_v46 = vpack.c.bf16 %v374_v39, %v373_v38  ;;  %v3078_v52 = vpack.c.bf16 %v326_v44, %v325_v43  ;;  %v431_v38 = vld [vmem:[%s5567_s1 + $0xbc0] sm:$0xff]  ;;  %v432_v39 = vld [vmem:[%s5567_s1 + $0xbc8] sm:$0xff] }
  0x8c   :  { %3089 = vmatprep.subr.bf16.mxu1 %v3088_v50  ;;  %v423_v50 = vld [vmem:[%s5567_s1 + $0xb80] sm:$0xff]  ;;  %v3110_v53 = vpack.c.bf16 %v358_v47, %v357_v45  ;;  %v384_v44 = vld [vmem:[%s5567_s1 + $0xa48] sm:$0xff] }
  0x8d   :  { %v383_v43 = vld [vmem:[%s5567_s1 + $0xa40] sm:$0xff]  ;;  %v416_v47 = vld [vmem:[%s5567_s1 + $0xb48] sm:$0xff] }
  0x8e   :  { %3059 = vmatpush3.bf16.msra.mxu0 %v3058_v56  ;;  %v376_v56 = vld [vmem:[%s5567_s1 + $0xa08] sm:$0xff]  ;;  %v415_v45 = vld [vmem:[%s5567_s1 + $0xb40] sm:$0xff] }
  0x8f   :  { %3091 = vmatpush3.bf16.msra.mxu1 %v3090_v57  ;;  %3061 = vmatprep.subr.bf16.mxu0 %v3060_v58  ;;  %v407_v57 = vld [vmem:[%s5567_s1 + $0xb00] sm:$0xff]  ;;  %v3144_v58 = vpack.c.bf16 %v424_v51, %v423_v50  ;;  %v3114_v2 = vpack.c.bf16 %v376_v56, %v375_v55  ;;  %v433_v50 = vld [vmem:[%s5567_s1 + $0xbd0] sm:$0xff]  ;;  %v434_v51 = vld [vmem:[%s5567_s1 + $0xbd8] sm:$0xff] }
  0x90   :  { %3093 = vmatprep.subr.bf16.mxu1 %v3092_v62  ;;  %v425_v62 = vld [vmem:[%s5567_s1 + $0xb90] sm:$0xff]  ;;  %v3146_v3 = vpack.c.bf16 %v408_v59, %v407_v57  ;;  %v386_v56 = vld [vmem:[%s5567_s1 + $0xa58] sm:$0xff] }
  0x91   :  { %v3148_v8 = vpack.c.bf16 %v426_v63, %v425_v62  ;;  %v385_v55 = vld [vmem:[%s5567_s1 + $0xa50] sm:$0xff]  ;;  %v418_v59 = vld [vmem:[%s5567_s1 + $0xb58] sm:$0xff]  ;;  %v435_v62 = vld [vmem:[%s5567_s1 + $0xbe0] sm:$0xff] }
  0x92   :  { %3063 = vmatpush3.bf16.msra.mxu0 %v3062_v4  ;;  %v3116_v4 = vpack.c.bf16 %v394_v61, %v393_v60  ;;  %v417_v57 = vld [vmem:[%s5567_s1 + $0xb50] sm:$0xff]  ;;  %v403_v60 = vld [vmem:[%s5567_s1 + $0xae0] sm:$0xff]  ;;  %v404_v61 = vld [vmem:[%s5567_s1 + $0xae8] sm:$0xff] }
  0x93   :  { %3095 = vmatpush3.bf16.msra.mxu1 %v3094_v5  ;;  %3065 = vmatprep.subr.bf16.mxu0 %v3064_v6  ;;  %v377_v5 = vld [vmem:[%s5567_s1 + $0xa10] sm:$0xff]  ;;  %v378_v6 = vld [vmem:[%s5567_s1 + $0xa18] sm:$0xff]  ;;  %v436_v63 = vld [vmem:[%s5567_s1 + $0xbe8] sm:$0xff] }
  0x94   :  { %3097 = vmatprep.subr.bf16.mxu1 %v3096_v10  ;;  %v395_v10 = vld [vmem:[%s5567_s1 + $0xaa0] sm:$0xff]  ;;  %v3118_v15 = vpack.c.bf16 %v378_v6, %v377_v5  ;;  %v3168_v6 = vpack.c.bf16 %v436_v63, %v435_v62  ;;  %v493_v62 = vld [vmem:[%s5567_s1 + $0xdb0] sm:$0xff]  ;;  %v494_v63 = vld [vmem:[%s5567_s1 + $0xdb8] sm:$0xff] }
  0x95   :  { %v419_v5 = vld [vmem:[%s5567_s1 + $0xb60] sm:$0xff] }
  0x96   :  { %3067 = vmatpush3.bf16.msra.mxu0 %v3066_v16  ;;  %v38_v16 = vld [vmem:[%s5566_s0 + $0xb8] sm:$0xff] }
  0x97   :  { %3099 = vmatpush3.bf16.msra.mxu1 %v3098_v17  ;;  %3069 = vmatprep.subr.bf16.mxu0 %v3068_v18  ;;  %v3150_v17 = vpack.c.bf16 %v410_v9, %v409_v7  ;;  %v3120_v18 = vpack.c.bf16 %v396_v11, %v395_v10  ;;  %v420_v7 = vld [vmem:[%s5567_s1 + $0xb68] sm:$0xff]  ;;  %v406_v9 = vld [vmem:[%s5567_s1 + $0xaf8] sm:$0xff]  ;;  %v437_v10 = vld [vmem:[%s5567_s1 + $0xbf0] sm:$0xff] }
  0x98   :  { %3101 = vmatprep.subr.bf16.mxu1 %v3100_v22  ;;  %v3152_v22 = vpack.c.bf16 %v428_v13, %v427_v12  ;;  %v438_v11 = vld [vmem:[%s5567_s1 + $0xbf8] sm:$0xff]  ;;  %v3170_v13 = vpack.c.bf16 %v420_v7, %v419_v5  ;;  %v477_v5 = vld [vmem:[%s5567_s1 + $0xd30] sm:$0xff] }
  0x99   :  { %v478_v7 = vld [vmem:[%s5567_s1 + $0xd38] sm:$0xff] }
  0x9a   :  { %3071 = vmatpush3.bf16.msra.mxu0 %v3070_v28  ;;  %v3122_v28 = vpack.c.bf16 %v380_v20, %v379_v19  ;;  %v422_v19 = vld [vmem:[%s5567_s1 + $0xb78] sm:$0xff]  ;;  %v455_v20 = vld [vmem:[%s5567_s1 + $0xc80] sm:$0xff] }
  0x9b   :  { %3103 = vmatpush3.bf16.msra.mxu1 %v3102_v29  ;;  %3073 = vmatprep.subr.bf16.mxu0 %v3072_v30  ;;  %v3154_v29 = vpack.c.bf16 %v412_v23, %v411_v21  ;;  %v3124_v30 = vpack.c.bf16 %v398_v25, %v397_v24  ;;  %v456_v21 = vld [vmem:[%s5567_s1 + $0xc88] sm:$0xff] }
  0x9c   :  { %3105 = vmatprep.subr.bf16.mxu1 %v3104_v34  ;;  %v3156_v34 = vpack.c.bf16 %v430_v27, %v429_v26  ;;  %v488_v23 = vld [vmem:[%s5567_s1 + $0xd88] sm:$0xff]  ;;  %v3176_v26 = vpack.c.bf16 %v456_v21, %v455_v20  ;;  %v439_v27 = vld [vmem:[%s5567_s1 + $0xc00] sm:$0xff]  ;;  %v465_v20 = vld [vmem:[%s5567_s1 + $0xcd0] sm:$0xff] }
  0x9d   :  { %v466_v21 = vld [vmem:[%s5567_s1 + $0xcd8] sm:$0xff] }
  0x9e   :  { %3075 = vmatpush3.bf16.msra.mxu0 %v3074_v40  ;;  %v3126_v40 = vpack.c.bf16 %v382_v32, %v381_v31  ;;  %v472_v31 = vld [vmem:[%s5567_s1 + $0xd08] sm:$0xff]  ;;  %v457_v32 = vld [vmem:[%s5567_s1 + $0xc90] sm:$0xff] }
  0x9f   :  { %3107 = vmatpush3.bf16.msra.mxu1 %v3106_v41  ;;  %3077 = vmatprep.subr.bf16.mxu0 %v3076_v42  ;;  %v3158_v41 = vpack.c.bf16 %v414_v35, %v413_v33  ;;  %v3128_v42 = vpack.c.bf16 %v400_v37, %v399_v36  ;;  %v458_v33 = vld [vmem:[%s5567_s1 + $0xc98] sm:$0xff]  ;;  %v35_v36 = vld [vmem:[%s5566_s0 + $0xa0] sm:$0xff]  ;;  %v37_v37 = vld [vmem:[%s5566_s0 + $0xb0] sm:$0xff] }
  0xa0   :  { %3109 = vmatprep.subr.bf16.mxu1 %v3108_v46  ;;  %v3160_v46 = vpack.c.bf16 %v432_v39, %v431_v38  ;;  %v490_v35 = vld [vmem:[%s5567_s1 + $0xd98] sm:$0xff] }
  0xa2   :  { %3079 = vmatpush3.bf16.msra.mxu0 %v3078_v52  ;;  %v3130_v52 = vpack.c.bf16 %v384_v44, %v383_v43  ;;  %v473_v43 = vld [vmem:[%s5567_s1 + $0xd10] sm:$0xff] }
  0xa3   :  { %3111 = vmatpush3.bf16.msra.mxu1 %v3110_v53  ;;  %3113 = vmatprep.subr.bf16.mxu0 %v3112_v54  ;;  %v3162_v53 = vpack.c.bf16 %v416_v47, %v415_v45  ;;  %v3132_v54 = vpack.c.bf16 %v402_v49, %v401_v48  ;;  %v474_v45 = vld [vmem:[%s5567_s1 + $0xd18] sm:$0xff]  ;;  %v460_v47 = vld [vmem:[%s5567_s1 + $0xca8] sm:$0xff]  ;;  %v491_v48 = vld [vmem:[%s5567_s1 + $0xda0] sm:$0xff] }
  0xa4   :  { %3145 = vmatprep.subr.bf16.mxu1 %v3144_v58  ;;  %v3164_v58 = vpack.c.bf16 %v434_v51, %v433_v50  ;;  %v492_v49 = vld [vmem:[%s5567_s1 + $0xda8] sm:$0xff] }
  0xa5   :  { %1333 = vmatmul.mubr.f32.vlgmr.msra.gmra.mrb[8].mxu0 %v31_v0  ;;  %v3134_v0 = vpack.c.bf16 %v386_v56, %v385_v55  ;;  %v40_v50 = vld [vmem:[%s5566_s0 + $0xc8] sm:$0xff]  ;;  %v443_v55 = vld [vmem:[%s5567_s1 + $0xc20] sm:$0xff] }
  0xa6   :  { %1403 = vmatmul.mubr.f32.vlgmr.msra.gmra.mrb[8].mxu1 %v33_v1  ;;  %3115 = vmatpush3.bf16.msra.mxu0 %v3114_v2  ;;  %v3166_v1 = vpack.c.bf16 %v418_v59, %v417_v57  ;;  %v3136_v2 = vpack.c.bf16 %v404_v61, %v403_v60  ;;  %v444_v56 = vld [vmem:[%s5567_s1 + $0xc28] sm:$0xff]  ;;  %v475_v57 = vld [vmem:[%s5567_s1 + $0xd20] sm:$0xff]  ;;  %v461_v60 = vld [vmem:[%s5567_s1 + $0xcb0] sm:$0xff] }
  0xa7   :  { %3147 = vmatpush3.bf16.msra.mxu1 %v3146_v3  ;;  %3117 = vmatprep.subr.bf16.mxu0 %v3116_v4  ;;  %v387_v3 = vld [vmem:[%s5567_s1 + $0xa60] sm:$0xff]  ;;  %v388_v4 = vld [vmem:[%s5567_s1 + $0xa68] sm:$0xff]  ;;  %v462_v61 = vld [vmem:[%s5567_s1 + $0xcb8] sm:$0xff] }
  0xa8   :  { %3149 = vmatprep.subr.bf16.mxu1 %v3148_v8  ;;  %1472 = vmatprep.mubr.f32.mxu0 %v36_v14  ;;  %v405_v8 = vld [vmem:[%s5567_s1 + $0xaf0] sm:$0xff]  ;;  %v3138_v12 = vpack.c.bf16 %v388_v4, %v387_v3  ;;  %v476_v59 = vld [vmem:[%s5567_s1 + $0xd28] sm:$0xff]  ;;  %v446_v4 = vld [vmem:[%s5567_s1 + $0xc38] sm:$0xff] }
  0xa9   :  { %1542 = vmatprep.mubr.f32.mxu1 %v38_v16  ;;  %v3140_v14 = vpack.c.bf16 %v406_v9, %v405_v8  ;;  %v390_v16 = vld [vmem:[%s5567_s1 + $0xa78] sm:$0xff]  ;;  %v445_v3 = vld [vmem:[%s5567_s1 + $0xc30] sm:$0xff]  ;;  %v463_v8 = vld [vmem:[%s5567_s1 + $0xcc0] sm:$0xff] }
  0xaa   :  { %3119 = vmatpush3.bf16.msra.mxu0 %v3118_v15  ;;  %v389_v15 = vld [vmem:[%s5567_s1 + $0xa70] sm:$0xff]  ;;  %v464_v9 = vld [vmem:[%s5567_s1 + $0xcc8] sm:$0xff] }
  0xab   :  { %3151 = vmatpush3.bf16.msra.mxu1 %v3150_v17  ;;  %3121 = vmatprep.subr.bf16.mxu0 %v3120_v18  ;;  %v421_v17 = vld [vmem:[%s5567_s1 + $0xb70] sm:$0xff]  ;;  %v3172_v18 = vpack.c.bf16 %v438_v11, %v437_v10  ;;  %v3142_v24 = vpack.c.bf16 %v390_v16, %v389_v15  ;;  %v495_v10 = vld [vmem:[%s5567_s1 + $0xdc0] sm:$0xff]  ;;  %v496_v11 = vld [vmem:[%s5567_s1 + $0xdc8] sm:$0xff] }
  0xac   :  { %3153 = vmatprep.subr.bf16.mxu1 %v3152_v22  ;;  %v487_v22 = vld [vmem:[%s5567_s1 + $0xd80] sm:$0xff]  ;;  %v3174_v25 = vpack.c.bf16 %v422_v19, %v421_v17  ;;  %v448_v16 = vld [vmem:[%s5567_s1 + $0xc48] sm:$0xff] }
  0xad   :  { %v447_v15 = vld [vmem:[%s5567_s1 + $0xc40] sm:$0xff]  ;;  %v480_v19 = vld [vmem:[%s5567_s1 + $0xd48] sm:$0xff] }
  0xae   :  { %3123 = vmatpush3.bf16.msra.mxu0 %v3122_v28  ;;  %v440_v28 = vld [vmem:[%s5567_s1 + $0xc08] sm:$0xff]  ;;  %v479_v17 = vld [vmem:[%s5567_s1 + $0xd40] sm:$0xff] }
  0xaf   :  { %3155 = vmatpush3.bf16.msra.mxu1 %v3154_v29  ;;  %3125 = vmatprep.subr.bf16.mxu0 %v3124_v30  ;;  %v471_v29 = vld [vmem:[%s5567_s1 + $0xd00] sm:$0xff]  ;;  %v3208_v30 = vpack.c.bf16 %v488_v23, %v487_v22  ;;  %v3178_v38 = vpack.c.bf16 %v440_v28, %v439_v27  ;;  %v497_v22 = vld [vmem:[%s5567_s1 + $0xdd0] sm:$0xff]  ;;  %v498_v23 = vld [vmem:[%s5567_s1 + $0xdd8] sm:$0xff] }
  0xb0   :  { %3157 = vmatprep.subr.bf16.mxu1 %v3156_v34  ;;  %v489_v34 = vld [vmem:[%s5567_s1 + $0xd90] sm:$0xff]  ;;  %v3210_v39 = vpack.c.bf16 %v472_v31, %v471_v29  ;;  %v450_v28 = vld [vmem:[%s5567_s1 + $0xc58] sm:$0xff] }
  0xb1   :  { %v3212_v44 = vpack.c.bf16 %v490_v35, %v489_v34  ;;  %v449_v27 = vld [vmem:[%s5567_s1 + $0xc50] sm:$0xff]  ;;  %v482_v31 = vld [vmem:[%s5567_s1 + $0xd58] sm:$0xff]  ;;  %v499_v34 = vld [vmem:[%s5567_s1 + $0xde0] sm:$0xff] }
  0xb2   :  { %3127 = vmatpush3.bf16.msra.mxu0 %v3126_v40  ;;  %v3180_v40 = vpack.c.bf16 %v458_v33, %v457_v32  ;;  %v481_v29 = vld [vmem:[%s5567_s1 + $0xd50] sm:$0xff]  ;;  %v467_v32 = vld [vmem:[%s5567_s1 + $0xce0] sm:$0xff]  ;;  %v468_v33 = vld [vmem:[%s5567_s1 + $0xce8] sm:$0xff] }
  0xb3   :  { %3159 = vmatpush3.bf16.msra.mxu1 %v3158_v41  ;;  %3129 = vmatprep.subr.bf16.mxu0 %v3128_v42  ;;  %v441_v41 = vld [vmem:[%s5567_s1 + $0xc10] sm:$0xff]  ;;  %v442_v42 = vld [vmem:[%s5567_s1 + $0xc18] sm:$0xff]  ;;  %v500_v35 = vld [vmem:[%s5567_s1 + $0xde8] sm:$0xff] }
  0xb4   :  { %3161 = vmatprep.subr.bf16.mxu1 %v3160_v46  ;;  %v459_v46 = vld [vmem:[%s5567_s1 + $0xca0] sm:$0xff]  ;;  %v3182_v51 = vpack.c.bf16 %v442_v42, %v441_v41  ;;  %v3232_v42 = vpack.c.bf16 %v500_v35, %v499_v34 }
  0xb5   :  { %v483_v41 = vld [vmem:[%s5567_s1 + $0xd60] sm:$0xff] }
  0xb6   :  { %3131 = vmatpush3.bf16.msra.mxu0 %v3130_v52  ;;  %v42_v52 = vld [vmem:[%s5566_s0 + $0xd8] sm:$0xff] }
  0xb7   :  { %3163 = vmatpush3.bf16.msra.mxu1 %v3162_v53  ;;  %3133 = vmatprep.subr.bf16.mxu0 %v3132_v54  ;;  %v3214_v53 = vpack.c.bf16 %v474_v45, %v473_v43  ;;  %v3184_v54 = vpack.c.bf16 %v460_v47, %v459_v46  ;;  %v484_v43 = vld [vmem:[%s5567_s1 + $0xd68] sm:$0xff]  ;;  %v470_v45 = vld [vmem:[%s5567_s1 + $0xcf8] sm:$0xff]  ;;  %v501_v46 = vld [vmem:[%s5567_s1 + $0xdf0] sm:$0xff] }
  0xb8   :  { %3165 = vmatprep.subr.bf16.mxu1 %v3164_v58  ;;  %v3216_v58 = vpack.c.bf16 %v492_v49, %v491_v48  ;;  %v502_v47 = vld [vmem:[%s5567_s1 + $0xdf8] sm:$0xff]  ;;  %v3234_v49 = vpack.c.bf16 %v484_v43, %v483_v41 }
  0xba   :  { %3135 = vmatpush3.bf16.msra.mxu0 %v3134_v0  ;;  %v3186_v0 = vpack.c.bf16 %v444_v56, %v443_v55  ;;  %v486_v55 = vld [vmem:[%s5567_s1 + $0xd78] sm:$0xff]  ;;  %v519_v56 = vld [vmem:[%s5567_s1 + $0xe80] sm:$0xff] }
  0xbb   :  { %3167 = vmatpush3.bf16.msra.mxu1 %v3166_v1  ;;  %3137 = vmatprep.subr.bf16.mxu0 %v3136_v2  ;;  %v3218_v1 = vpack.c.bf16 %v476_v59, %v475_v57  ;;  %v3188_v2 = vpack.c.bf16 %v462_v61, %v461_v60  ;;  %v520_v57 = vld [vmem:[%s5567_s1 + $0xe88] sm:$0xff] }
  0xbc   :  { %3169 = vmatprep.subr.bf16.mxu1 %v3168_v6  ;;  %v3220_v6 = vpack.c.bf16 %v494_v63, %v493_v62  ;;  %v552_v59 = vld [vmem:[%s5567_s1 + $0xf88] sm:$0xff]  ;;  %v3240_v62 = vpack.c.bf16 %v520_v57, %v519_v56  ;;  %v503_v63 = vld [vmem:[%s5567_s1 + $0xe00] sm:$0xff] }
  0xbe   :  { %3139 = vmatpush3.bf16.msra.mxu0 %v3138_v12  ;;  %v3190_v12 = vpack.c.bf16 %v446_v4, %v445_v3  ;;  %v536_v3 = vld [vmem:[%s5567_s1 + $0xf08] sm:$0xff]  ;;  %v521_v4 = vld [vmem:[%s5567_s1 + $0xe90] sm:$0xff] }
  0xbf   :  { %3171 = vmatpush3.bf16.msra.mxu1 %v3170_v13  ;;  %3141 = vmatprep.subr.bf16.mxu0 %v3140_v14  ;;  %v3222_v13 = vpack.c.bf16 %v478_v7, %v477_v5  ;;  %v3192_v14 = vpack.c.bf16 %v464_v9, %v463_v8  ;;  %v522_v5 = vld [vmem:[%s5567_s1 + $0xe98] sm:$0xff]  ;;  %v39_v8 = vld [vmem:[%s5566_s0 + $0xc0] sm:$0xff]  ;;  %v41_v9 = vld [vmem:[%s5566_s0 + $0xd0] sm:$0xff] }
  0xc0   :  { %3173 = vmatprep.subr.bf16.mxu1 %v3172_v18  ;;  %v3224_v18 = vpack.c.bf16 %v496_v11, %v495_v10  ;;  %v554_v7 = vld [vmem:[%s5567_s1 + $0xf98] sm:$0xff]  ;;  %v505_v11 = vld [vmem:[%s5567_s1 + $0xe10] sm:$0xff] }
  0xc2   :  { %3143 = vmatpush3.bf16.msra.mxu0 %v3142_v24  ;;  %v3194_v24 = vpack.c.bf16 %v448_v16, %v447_v15  ;;  %v537_v15 = vld [vmem:[%s5567_s1 + $0xf10] sm:$0xff]  ;;  %v538_v16 = vld [vmem:[%s5567_s1 + $0xf18] sm:$0xff] }
  0xc3   :  { %3175 = vmatpush3.bf16.msra.mxu1 %v3174_v25  ;;  %3177 = vmatprep.subr.bf16.mxu0 %v3176_v26  ;;  %v3226_v25 = vpack.c.bf16 %v480_v19, %v479_v17  ;;  %v3196_v26 = vpack.c.bf16 %v466_v21, %v465_v20  ;;  %v524_v19 = vld [vmem:[%s5567_s1 + $0xea8] sm:$0xff] }
  0xc4   :  { %3209 = vmatprep.subr.bf16.mxu1 %v3208_v30  ;;  %v3228_v30 = vpack.c.bf16 %v498_v23, %v497_v22 }
  0xc5   :  { %1473 = vmatmul.mubr.f32.vlgmr.msra.gmra.mrb[10].mxu0 %v35_v36  ;;  %v3198_v36 = vpack.c.bf16 %v450_v28, %v449_v27 }
  0xc6   :  { %1543 = vmatmul.mubr.f32.vlgmr.msra.gmra.mrb[10].mxu1 %v37_v37  ;;  %3179 = vmatpush3.bf16.msra.mxu0 %v3178_v38  ;;  %v3230_v37 = vpack.c.bf16 %v482_v31, %v481_v29  ;;  %v3200_v38 = vpack.c.bf16 %v468_v33, %v467_v32 }
  0xc7   :  { %3211 = vmatpush3.bf16.msra.mxu1 %v3210_v39  ;;  %3181 = vmatprep.subr.bf16.mxu0 %v3180_v40  ;;  %v451_v39 = vld [vmem:[%s5567_s1 + $0xc60] sm:$0xff]  ;;  %v452_v40 = vld [vmem:[%s5567_s1 + $0xc68] sm:$0xff] }
  0xc8   :  { %3213 = vmatprep.subr.bf16.mxu1 %v3212_v44  ;;  %1612 = vmatprep.mubr.f32.mxu0 %v40_v50  ;;  %v469_v44 = vld [vmem:[%s5567_s1 + $0xcf0] sm:$0xff]  ;;  %v3202_v48 = vpack.c.bf16 %v452_v40, %v451_v39 }
  0xc9   :  { %1682 = vmatprep.mubr.f32.mxu1 %v42_v52  ;;  %v3204_v50 = vpack.c.bf16 %v470_v45, %v469_v44  ;;  %v454_v52 = vld [vmem:[%s5567_s1 + $0xc78] sm:$0xff] }
  0xca   :  { %3183 = vmatpush3.bf16.msra.mxu0 %v3182_v51  ;;  %v453_v51 = vld [vmem:[%s5567_s1 + $0xc70] sm:$0xff] }
  0xcb   :  { %3215 = vmatpush3.bf16.msra.mxu1 %v3214_v53  ;;  %3185 = vmatprep.subr.bf16.mxu0 %v3184_v54  ;;  %v485_v53 = vld [vmem:[%s5567_s1 + $0xd70] sm:$0xff]  ;;  %v3236_v54 = vpack.c.bf16 %v502_v47, %v501_v46  ;;  %v3206_v60 = vpack.c.bf16 %v454_v52, %v453_v51 }
  0xcc   :  { %3217 = vmatprep.subr.bf16.mxu1 %v3216_v58  ;;  %v551_v58 = vld [vmem:[%s5567_s1 + $0xf80] sm:$0xff]  ;;  %v3238_v61 = vpack.c.bf16 %v486_v55, %v485_v53 }
  0xce   :  { %3187 = vmatpush3.bf16.msra.mxu0 %v3186_v0  ;;  %v504_v0 = vld [vmem:[%s5567_s1 + $0xe08] sm:$0xff] }
  0xcf   :  { %3219 = vmatpush3.bf16.msra.mxu1 %v3218_v1  ;;  %3189 = vmatprep.subr.bf16.mxu0 %v3188_v2  ;;  %v535_v1 = vld [vmem:[%s5567_s1 + $0xf00] sm:$0xff]  ;;  %v3272_v2 = vpack.c.bf16 %v552_v59, %v551_v58  ;;  %v3242_v10 = vpack.c.bf16 %v504_v0, %v503_v63 }
  0xd0   :  { %3221 = vmatprep.subr.bf16.mxu1 %v3220_v6  ;;  %v553_v6 = vld [vmem:[%s5567_s1 + $0xf90] sm:$0xff] }
  0xd1   :  { %v3276_v17 = vpack.c.bf16 %v554_v7, %v553_v6 }
  0xd2   :  { %3191 = vmatpush3.bf16.msra.mxu0 %v3190_v12  ;;  %v3274_v12 = vpack.c.bf16 %v536_v3, %v535_v1 }
  0xd3   :  { %3223 = vmatpush3.bf16.msra.mxu1 %v3222_v13  ;;  %3193 = vmatprep.subr.bf16.mxu0 %v3192_v14  ;;  %v3244_v13 = vpack.c.bf16 %v522_v5, %v521_v4  ;;  %v506_v14 = vld [vmem:[%s5567_s1 + $0xe18] sm:$0xff] }
  0xd4   :  { %3225 = vmatprep.subr.bf16.mxu1 %v3224_v18  ;;  %v523_v18 = vld [vmem:[%s5567_s1 + $0xea0] sm:$0xff] }
  0xd6   :  { %3195 = vmatpush3.bf16.msra.mxu0 %v3194_v24 }
  0xd7   :  { %3227 = vmatpush3.bf16.msra.mxu1 %v3226_v25  ;;  %3197 = vmatprep.subr.bf16.mxu0 %v3196_v26 }
  0xd8   :  { %3229 = vmatprep.subr.bf16.mxu1 %v3228_v30 }
  0xda   :  { %3199 = vmatpush3.bf16.msra.mxu0 %v3198_v36 }
  0xdb   :  { %3231 = vmatpush3.bf16.msra.mxu1 %v3230_v37  ;;  %3201 = vmatprep.subr.bf16.mxu0 %v3200_v38 }
  0xdc   :  { %3233 = vmatprep.subr.bf16.mxu1 %v3232_v42 }
  0xde   :  { %3203 = vmatpush3.bf16.msra.mxu0 %v3202_v48 }
  0xdf   :  { %3235 = vmatpush3.bf16.msra.mxu1 %v3234_v49  ;;  %3205 = vmatprep.subr.bf16.mxu0 %v3204_v50 }
  0xe0   :  { %3237 = vmatprep.subr.bf16.mxu1 %v3236_v54 }
  0xe2   :  { %3207 = vmatpush3.bf16.msra.mxu0 %v3206_v60 }
  0xe3   :  { %3239 = vmatpush3.bf16.msra.mxu1 %v3238_v61  ;;  %3241 = vmatprep.subr.bf16.mxu0 %v3240_v62 }
  0xe4   :  { %3273 = vmatprep.subr.bf16.mxu1 %v3272_v2 }
  0xe5   :  { %8 = vsyncpa [#allocation3], 0  ;;  %1613 = vmatmul.mubr.f32.vlgmr.msra.gmra.mrb[12].mxu0 %v39_v8  ;;  %v555_v20 = vld [vmem:[%s5567_s1 + $0xfa0] sm:$0xff]  ;;  %v556_v21 = vld [vmem:[%s5567_s1 + $0xfa8] sm:$0xff]  ;;  %v3246_v23 = vpack.c.bf16 %v506_v14, %v505_v11  ;;  %v3278_v25 = vpack.c.bf16 %v538_v16, %v537_v15  ;;  %v3248_v26 = vpack.c.bf16 %v524_v19, %v523_v18  ;;  %vm700_vm0 = vcmask 883712  }
  0xe6   :  { %v44_v22 = vld [vmem:[%s5566_s0 + $0xe8] sm:$0xff]  ;;  %1683 = vmatmul.mubr.f32.vlgmr.msra.gmra.mrb[12].mxu1 %v41_v9  ;;  %3243 = vmatpush3.bf16.msra.mxu0 %v3242_v10  ;;  %v46_v24 = vld [vmem:[%s5566_s0 + $0xf8] sm:$0xff]  ;;  %v507_v27 = vld [vmem:[%s5567_s1 + $0xe20] sm:$0xff]  ;;  %v3280_v30 = vpack.c.bf16 %v556_v21, %v555_v20  ;;  %vm704_vm1 = vcmask 1043456   ;;  %vm3474_vm2 = vmmov 1   ;;  %vm2108_vm4 = vcmask 64512  }
  0xe7   :  { %3275 = vmatpush3.bf16.msra.mxu1 %v3274_v12  ;;  %3245 = vmatprep.subr.bf16.mxu0 %v3244_v13  ;;  %v508_v28 = vld [vmem:[%s5567_s1 + $0xe28] sm:$0xff]  ;;  %v539_v29 = vld [vmem:[%s5567_s1 + $0xf20] sm:$0xff]  ;;  %v525_v32 = vld [vmem:[%s5567_s1 + $0xeb0] sm:$0xff] }
  0xe8   :  { %3277 = vmatprep.subr.bf16.mxu1 %v3276_v17  ;;  %v540_v31 = vld [vmem:[%s5567_s1 + $0xf28] sm:$0xff]  ;;  %v526_v33 = vld [vmem:[%s5567_s1 + $0xeb8] sm:$0xff]  ;;  %1752 = vmatprep.mubr.f32.mxu0 %v44_v22  ;;  %v557_v34 = vld [vmem:[%s5567_s1 + $0xfb0] sm:$0xff]  ;;  %v3250_v36 = vpack.c.bf16 %v508_v28, %v507_v27 }
  0xe9   :  { %v558_v35 = vld [vmem:[%s5567_s1 + $0xfb8] sm:$0xff]  ;;  %1822 = vmatprep.mubr.f32.mxu1 %v46_v24  ;;  %v3282_v37 = vpack.c.bf16 %v540_v31, %v539_v29  ;;  %v3252_v38 = vpack.c.bf16 %v526_v33, %v525_v32  ;;  %v509_v39 = vld [vmem:[%s5567_s1 + $0xe30] sm:$0xff]  ;;  %v527_v44 = vld [vmem:[%s5567_s1 + $0xec0] sm:$0xff] }
  0xea   :  { %3247 = vmatpush3.bf16.msra.mxu0 %v3246_v23  ;;  %v510_v40 = vld [vmem:[%s5567_s1 + $0xe38] sm:$0xff]  ;;  %v541_v41 = vld [vmem:[%s5567_s1 + $0xf30] sm:$0xff]  ;;  %v3284_v42 = vpack.c.bf16 %v558_v35, %v557_v34  ;;  %v528_v45 = vld [vmem:[%s5567_s1 + $0xec8] sm:$0xff] }
  0xeb   :  { %3279 = vmatpush3.bf16.msra.mxu1 %v3278_v25  ;;  %3249 = vmatprep.subr.bf16.mxu0 %v3248_v26  ;;  %v542_v43 = vld [vmem:[%s5567_s1 + $0xf38] sm:$0xff]  ;;  %v559_v46 = vld [vmem:[%s5567_s1 + $0xfc0] sm:$0xff]  ;;  %v560_v47 = vld [vmem:[%s5567_s1 + $0xfc8] sm:$0xff]  ;;  %v3254_v48 = vpack.c.bf16 %v510_v40, %v509_v39  ;;  %v3256_v50 = vpack.c.bf16 %v528_v45, %v527_v44 }
  0xec   :  { %3281 = vmatprep.subr.bf16.mxu1 %v3280_v30  ;;  %v3286_v49 = vpack.c.bf16 %v542_v43, %v541_v41  ;;  %v511_v51 = vld [vmem:[%s5567_s1 + $0xe40] sm:$0xff]  ;;  %v512_v52 = vld [vmem:[%s5567_s1 + $0xe48] sm:$0xff]  ;;  %v3288_v54 = vpack.c.bf16 %v560_v47, %v559_v46  ;;  %v529_v56 = vld [vmem:[%s5567_s1 + $0xed0] sm:$0xff] }
  0xed   :  { %v543_v53 = vld [vmem:[%s5567_s1 + $0xf40] sm:$0xff]  ;;  %v544_v55 = vld [vmem:[%s5567_s1 + $0xf48] sm:$0xff]  ;;  %v530_v57 = vld [vmem:[%s5567_s1 + $0xed8] sm:$0xff]  ;;  %v3258_v60 = vpack.c.bf16 %v512_v52, %v511_v51 }
  0xee   :  { %3251 = vmatpush3.bf16.msra.mxu0 %v3250_v36  ;;  %v561_v58 = vld [vmem:[%s5567_s1 + $0xfd0] sm:$0xff]  ;;  %v562_v59 = vld [vmem:[%s5567_s1 + $0xfd8] sm:$0xff]  ;;  %v3290_v61 = vpack.c.bf16 %v544_v55, %v543_v53  ;;  %v3260_v62 = vpack.c.bf16 %v530_v57, %v529_v56  ;;  %v531_v4 = vld [vmem:[%s5567_s1 + $0xee0] sm:$0xff] }
  0xef   :  { %3283 = vmatpush3.bf16.msra.mxu1 %v3282_v37  ;;  %3253 = vmatprep.subr.bf16.mxu0 %v3252_v38  ;;  %v513_v63 = vld [vmem:[%s5567_s1 + $0xe50] sm:$0xff]  ;;  %v514_v0 = vld [vmem:[%s5567_s1 + $0xe58] sm:$0xff]  ;;  %v3292_v2 = vpack.c.bf16 %v562_v59, %v561_v58  ;;  %v532_v5 = vld [vmem:[%s5567_s1 + $0xee8] sm:$0xff] }
  0xf0   :  { %3285 = vmatprep.subr.bf16.mxu1 %v3284_v42  ;;  %v545_v1 = vld [vmem:[%s5567_s1 + $0xf50] sm:$0xff]  ;;  %v546_v3 = vld [vmem:[%s5567_s1 + $0xf58] sm:$0xff]  ;;  %v563_v6 = vld [vmem:[%s5567_s1 + $0xfe0] sm:$0xff]  ;;  %v3262_v8 = vpack.c.bf16 %v514_v0, %v513_v63  ;;  %v3264_v10 = vpack.c.bf16 %v532_v5, %v531_v4 }
  0xf1   :  { %v564_v7 = vld [vmem:[%s5567_s1 + $0xfe8] sm:$0xff]  ;;  %v3294_v9 = vpack.c.bf16 %v546_v3, %v545_v1  ;;  %v515_v11 = vld [vmem:[%s5567_s1 + $0xe60] sm:$0xff]  ;;  %v533_v17 = vld [vmem:[%s5567_s1 + $0xef0] sm:$0xff] }
  0xf2   :  { %3255 = vmatpush3.bf16.msra.mxu0 %v3254_v48  ;;  %v516_v12 = vld [vmem:[%s5567_s1 + $0xe68] sm:$0xff]  ;;  %v547_v13 = vld [vmem:[%s5567_s1 + $0xf60] sm:$0xff]  ;;  %v3296_v15 = vpack.c.bf16 %v564_v7, %v563_v6  ;;  %v534_v18 = vld [vmem:[%s5567_s1 + $0xef8] sm:$0xff] }
  0xf3   :  { %3287 = vmatpush3.bf16.msra.mxu1 %v3286_v49  ;;  %3257 = vmatprep.subr.bf16.mxu0 %v3256_v50  ;;  %v548_v16 = vld [vmem:[%s5567_s1 + $0xf68] sm:$0xff]  ;;  %v2124_v20 = vld [vmem:[%s5568_s2] ss:$0 sm:$0xff]  ;;  %v565_v22 = vld [vmem:[%s5567_s1 + $0xff0] sm:$0xff]  ;;  %v3266_v26 = vpack.c.bf16 %v516_v12, %v515_v11  ;;  %v3268_v29 = vpack.c.bf16 %v534_v18, %v533_v17 }
  0xf4   :  { %3289 = vmatprep.subr.bf16.mxu1 %v3288_v54  ;;  %v566_v23 = vld [vmem:[%s5567_s1 + $0xff8] sm:$0xff]  ;;  %v3298_v28 = vpack.c.bf16 %v548_v16, %v547_v13  ;;  %v517_v30 = vld [vmem:[%s5567_s1 + $0xe70] sm:$0xff]  ;;  %v583_v36 = vld [vmem:[%s5567_s1 + $0x1080] sm:$0xff] }
  0xf5   :  { %v518_v31 = vld [vmem:[%s5567_s1 + $0xe78] sm:$0xff]  ;;  %v549_v32 = vld [vmem:[%s5567_s1 + $0xf70] sm:$0xff]  ;;  %v3300_v34 = vpack.c.bf16 %v566_v23, %v565_v22  ;;  %v584_v37 = vld [vmem:[%s5567_s1 + $0x1088] sm:$0xff] }
  0xf6   :  { %3259 = vmatpush3.bf16.msra.mxu0 %v3258_v60  ;;  %v550_v35 = vld [vmem:[%s5567_s1 + $0xf78] sm:$0xff]  ;;  %v615_v38 = vld [vmem:[%s5567_s1 + $0x1180] sm:$0xff]  ;;  %v616_v39 = vld [vmem:[%s5567_s1 + $0x1188] sm:$0xff]  ;;  %v3270_v41 = vpack.c.bf16 %v518_v31, %v517_v30  ;;  %v3304_v43 = vpack.c.bf16 %v584_v37, %v583_v36 }
  0xf7   :  { %3291 = vmatpush3.bf16.msra.mxu1 %v3290_v61  ;;  %3261 = vmatprep.subr.bf16.mxu0 %v3260_v62  ;;  %v3302_v42 = vpack.c.bf16 %v550_v35, %v549_v32  ;;  %v567_v44 = vld [vmem:[%s5567_s1 + $0x1000] sm:$0xff]  ;;  %v568_v45 = vld [vmem:[%s5567_s1 + $0x1008] sm:$0xff]  ;;  %v3336_v47 = vpack.c.bf16 %v616_v39, %v615_v38  ;;  %v585_v49 = vld [vmem:[%s5567_s1 + $0x1090] sm:$0xff] }
  0xf8   :  { %v2159_v14 = vpop.f32.mrb[0].mxu0  ;;  %3293 = vmatprep.subr.bf16.mxu1 %v3292_v2  ;;  %v599_v46 = vld [vmem:[%s5567_s1 + $0x1100] sm:$0xff]  ;;  %v600_v48 = vld [vmem:[%s5567_s1 + $0x1108] sm:$0xff]  ;;  %v586_v50 = vld [vmem:[%s5567_s1 + $0x1098] sm:$0xff]  ;;  %v3306_v55 = vpack.c.bf16 %v568_v45, %v567_v44 }
  0xf9   :  { %v2194_v19 = vpop.f32.mrb[0].mxu1  ;;  %v2160_v21 = vpop.f32.mrb[1].mxu0  ;;  %v617_v51 = vld [vmem:[%s5567_s1 + $0x1190] sm:$0xff]  ;;  %v618_v52 = vld [vmem:[%s5567_s1 + $0x1198] sm:$0xff]  ;;  %v43_v53 = vld [vmem:[%s5566_s0 + $0xe0] sm:$0xff]  ;;  %v3338_v56 = vpack.c.bf16 %v600_v48, %v599_v46  ;;  %v3308_v57 = vpack.c.bf16 %v586_v50, %v585_v49 }
  0xfa   :  { %v2161_v24 = vadd.f32 %v2160_v21, %v2159_v14  ;;  %v2195_v25 = vpop.f32.mrb[1].mxu1  ;;  %3263 = vmatpush3.bf16.msra.mxu0 %v3262_v8  ;;  %v45_v54 = vld [vmem:[%s5566_s0 + $0xf0] sm:$0xff]  ;;  %v570_v59 = vld [vmem:[%s5567_s1 + $0x1018] sm:$0xff]  ;;  %v3340_v61 = vpack.c.bf16 %v618_v52, %v617_v51  ;;  %v587_v63 = vld [vmem:[%s5567_s1 + $0x10a0] sm:$0xff] }
  0xfb   :  { %v2196_v27 = vadd.f32 %v2195_v25, %v2194_v19  ;;  %3295 = vmatpush3.bf16.msra.mxu1 %v3294_v9  ;;  %3265 = vmatprep.subr.bf16.mxu0 %v3264_v10  ;;  %v569_v58 = vld [vmem:[%s5567_s1 + $0x1010] sm:$0xff]  ;;  %v602_v62 = vld [vmem:[%s5567_s1 + $0x1118] sm:$0xff]  ;;  %v588_v0 = vld [vmem:[%s5567_s1 + $0x10a8] sm:$0xff] }
  0xfc   :  { %v775_v33 = vadd.f32 %v2161_v24, %v2124_v20  ;;  %3297 = vmatprep.subr.bf16.mxu1 %v3296_v15  ;;  %v601_v60 = vld [vmem:[%s5567_s1 + $0x1110] sm:$0xff]  ;;  %v619_v1 = vld [vmem:[%s5567_s1 + $0x11a0] sm:$0xff]  ;;  %v620_v2 = vld [vmem:[%s5567_s1 + $0x11a8] sm:$0xff]  ;;  %v3310_v4 = vpack.c.bf16 %v570_v59, %v569_v58  ;;  %v3312_v7 = vpack.c.bf16 %v588_v0, %v587_v63 }
  0xfd   :  { %v48_v3 = vld [vmem:[%s5566_s0 + $0x108] sm:$0xff]  ;;  %v50_v5 = vld [vmem:[%s5566_s0 + $0x118] sm:$0xff]  ;;  %v3342_v6 = vpack.c.bf16 %v602_v62, %v601_v60  ;;  %v571_v8 = vld [vmem:[%s5567_s1 + $0x1020] sm:$0xff]  ;;  %v3344_v11 = vpack.c.bf16 %v620_v2, %v619_v1 }
  0xfe   :  { %v5137_v40 = vadd.f32 %v2196_v27, %v775_v33  ;;  %3267 = vmatpush3.bf16.msra.mxu0 %v3266_v26  ;;  %v572_v9 = vld [vmem:[%s5567_s1 + $0x1028] sm:$0xff]  ;;  %v603_v10 = vld [vmem:[%s5567_s1 + $0x1120] sm:$0xff]  ;;  %v589_v13 = vld [vmem:[%s5567_s1 + $0x10b0] sm:$0xff] }
  0xff   :  { %3299 = vmatpush3.bf16.msra.mxu1 %v3298_v28  ;;  %3269 = vmatprep.subr.bf16.mxu0 %v3268_v29  ;;  %v604_v12 = vld [vmem:[%s5567_s1 + $0x1128] sm:$0xff]  ;;  %v590_v14 = vld [vmem:[%s5567_s1 + $0x10b8] sm:$0xff]  ;;  %v621_v15 = vld [vmem:[%s5567_s1 + $0x11b0] sm:$0xff]  ;;  %v3314_v17 = vpack.c.bf16 %v572_v9, %v571_v8 }
 0x100   :  { %3301 = vmatprep.subr.bf16.mxu1 %v3300_v34  ;;  %v622_v16 = vld [vmem:[%s5567_s1 + $0x11b8] sm:$0xff]  ;;  %v3346_v18 = vpack.c.bf16 %v604_v12, %v603_v10  ;;  %v3316_v19 = vpack.c.bf16 %v590_v14, %v589_v13  ;;  %v573_v20 = vld [vmem:[%s5567_s1 + $0x1030] sm:$0xff]  ;;  %v591_v25 = vld [vmem:[%s5567_s1 + $0x10c0] sm:$0xff] }
 0x101   :  { %v574_v21 = vld [vmem:[%s5567_s1 + $0x1038] sm:$0xff]  ;;  %v605_v22 = vld [vmem:[%s5567_s1 + $0x1130] sm:$0xff]  ;;  %v3348_v23 = vpack.c.bf16 %v622_v16, %v621_v15  ;;  %v592_v26 = vld [vmem:[%s5567_s1 + $0x10c8] sm:$0xff] }
 0x102   :  { %3271 = vmatpush3.bf16.msra.mxu0 %v3270_v41  ;;  %v606_v24 = vld [vmem:[%s5567_s1 + $0x1138] sm:$0xff]  ;;  %v623_v27 = vld [vmem:[%s5567_s1 + $0x11c0] sm:$0xff]  ;;  %v624_v28 = vld [vmem:[%s5567_s1 + $0x11c8] sm:$0xff]  ;;  %v3318_v29 = vpack.c.bf16 %v574_v21, %v573_v20  ;;  %v3320_v31 = vpack.c.bf16 %v592_v26, %v591_v25 }
 0x103   :  { %3303 = vmatpush3.bf16.msra.mxu1 %v3302_v42  ;;  %3305 = vmatprep.subr.bf16.mxu0 %v3304_v43  ;;  %v3350_v30 = vpack.c.bf16 %v606_v24, %v605_v22  ;;  %v575_v32 = vld [vmem:[%s5567_s1 + $0x1040] sm:$0xff]  ;;  %v576_v33 = vld [vmem:[%s5567_s1 + $0x1048] sm:$0xff]  ;;  %v3352_v35 = vpack.c.bf16 %v624_v28, %v623_v27  ;;  %v593_v37 = vld [vmem:[%s5567_s1 + $0x10d0] sm:$0xff] }
 0x104   :  { %3337 = vmatprep.subr.bf16.mxu1 %v3336_v47  ;;  %v607_v34 = vld [vmem:[%s5567_s1 + $0x1140] sm:$0xff]  ;;  %v608_v36 = vld [vmem:[%s5567_s1 + $0x1148] sm:$0xff]  ;;  %v594_v38 = vld [vmem:[%s5567_s1 + $0x10d8] sm:$0xff]  ;;  %v3322_v42 = vpack.c.bf16 %v576_v33, %v575_v32 }
 0x105   :  { %1753 = vmatmul.mubr.f32.vlgmr.msra.gmra.mrb[14].mxu0 %v43_v53  ;;  %v625_v39 = vld [vmem:[%s5567_s1 + $0x11d0] sm:$0xff]  ;;  %v626_v41 = vld [vmem:[%s5567_s1 + $0x11d8] sm:$0xff]  ;;  %v3354_v43 = vpack.c.bf16 %v608_v36, %v607_v34  ;;  %v3324_v44 = vpack.c.bf16 %v594_v38, %v593_v37  ;;  %v595_v50 = vld [vmem:[%s5567_s1 + $0x10e0] sm:$0xff]  ;;  %v3473_v36 = vmov 0.0|0.0  }
 0x106   :  { %1823 = vmatmul.mubr.f32.vlgmr.msra.gmra.mrb[14].mxu1 %v45_v54  ;;  %3307 = vmatpush3.bf16.msra.mxu0 %v3306_v55  ;;  %v577_v45 = vld [vmem:[%s5567_s1 + $0x1050] sm:$0xff]  ;;  %v578_v46 = vld [vmem:[%s5567_s1 + $0x1058] sm:$0xff]  ;;  %v3356_v48 = vpack.c.bf16 %v626_v41, %v625_v39  ;;  %v596_v51 = vld [vmem:[%s5567_s1 + $0x10e8] sm:$0xff] }
 0x107   :  { %3339 = vmatpush3.bf16.msra.mxu1 %v3338_v56  ;;  %3309 = vmatprep.subr.bf16.mxu0 %v3308_v57  ;;  %v609_v47 = vld [vmem:[%s5567_s1 + $0x1150] sm:$0xff]  ;;  %v610_v49 = vld [vmem:[%s5567_s1 + $0x1158] sm:$0xff]  ;;  %v627_v52 = vld [vmem:[%s5567_s1 + $0x11e0] sm:$0xff]  ;;  %v3326_v54 = vpack.c.bf16 %v578_v46, %v577_v45  ;;  %v3328_v56 = vpack.c.bf16 %v596_v51, %v595_v50 }
 0x108   :  { %3341 = vmatprep.subr.bf16.mxu1 %v3340_v61  ;;  %1892 = vmatprep.mubr.f32.mxu0 %v48_v3  ;;  %v628_v53 = vld [vmem:[%s5567_s1 + $0x11e8] sm:$0xff]  ;;  %v3358_v55 = vpack.c.bf16 %v610_v49, %v609_v47  ;;  %v579_v57 = vld [vmem:[%s5567_s1 + $0x1060] sm:$0xff]  ;;  %v597_v63 = vld [vmem:[%s5567_s1 + $0x10f0] sm:$0xff] }
 0x109   :  { %1962 = vmatprep.mubr.f32.mxu1 %v50_v5  ;;  %v580_v58 = vld [vmem:[%s5567_s1 + $0x1068] sm:$0xff]  ;;  %v611_v59 = vld [vmem:[%s5567_s1 + $0x1160] sm:$0xff]  ;;  %v3360_v61 = vpack.c.bf16 %v628_v53, %v627_v52  ;;  %v598_v0 = vld [vmem:[%s5567_s1 + $0x10f8] sm:$0xff] }
 0x10a   :  { %3311 = vmatpush3.bf16.msra.mxu0 %v3310_v4  ;;  %v612_v62 = vld [vmem:[%s5567_s1 + $0x1168] sm:$0xff]  ;;  %v629_v3 = vld [vmem:[%s5567_s1 + $0x11f0] sm:$0xff]  ;;  %v630_v4 = vld [vmem:[%s5567_s1 + $0x11f8] sm:$0xff]  ;;  %v3332_v10 = vpack.c.bf16 %v598_v0, %v597_v63 }
 0x10b   :  { %3343 = vmatpush3.bf16.msra.mxu1 %v3342_v6  ;;  %3313 = vmatprep.subr.bf16.mxu0 %v3312_v7  ;;  %v3330_v7 = vpack.c.bf16 %v580_v58, %v579_v57  ;;  %v3362_v9 = vpack.c.bf16 %v612_v62, %v611_v59  ;;  %v582_v12 = vld [vmem:[%s5567_s1 + $0x1078] sm:$0xff]  ;;  %v613_v13 = vld [vmem:[%s5567_s1 + $0x1170] sm:$0xff]  ;;  %v3364_v15 = vpack.c.bf16 %v630_v4, %v629_v3  ;;  %v631_v22 = vld [vmem:[%s5567_s1 + $0x1200] sm:$0xff] }
 0x10c   :  { %3345 = vmatprep.subr.bf16.mxu1 %v3344_v11  ;;  %v581_v11 = vld [vmem:[%s5567_s1 + $0x1070] sm:$0xff]  ;;  %v614_v16 = vld [vmem:[%s5567_s1 + $0x1178] sm:$0xff]  ;;  %v663_v24 = vld [vmem:[%s5567_s1 + $0x1300] sm:$0xff] }
 0x10d   :  { %v3334_v20 = vpack.c.bf16 %v582_v12, %v581_v11  ;;  %v664_v25 = vld [vmem:[%s5567_s1 + $0x1308] sm:$0xff]  ;;  %v649_v26 = vld [vmem:[%s5567_s1 + $0x1290] sm:$0xff]  ;;  %v650_v27 = vld [vmem:[%s5567_s1 + $0x1298] sm:$0xff] }
 0x10e   :  { %3315 = vmatpush3.bf16.msra.mxu0 %v3314_v17  ;;  %v647_v17 = vld [vmem:[%s5567_s1 + $0x1280] sm:$0xff]  ;;  %v3372_v32 = vpack.c.bf16 %v650_v27, %v649_v26  ;;  %v633_v33 = vld [vmem:[%s5567_s1 + $0x1210] sm:$0xff]  ;;  %v634_v34 = vld [vmem:[%s5567_s1 + $0x1218] sm:$0xff] }
 0x10f   :  { %3347 = vmatpush3.bf16.msra.mxu1 %v3346_v18  ;;  %3317 = vmatprep.subr.bf16.mxu0 %v3316_v19  ;;  %v648_v18 = vld [vmem:[%s5567_s1 + $0x1288] sm:$0xff]  ;;  %v47_v28 = vld [vmem:[%s5566_s0 + $0x100] sm:$0xff]  ;;  %v666_v37 = vld [vmem:[%s5567_s1 + $0x1318] sm:$0xff] }
 0x110   :  { %3349 = vmatprep.subr.bf16.mxu1 %v3348_v23  ;;  %v3368_v21 = vpack.c.bf16 %v648_v18, %v647_v17  ;;  %v632_v23 = vld [vmem:[%s5567_s1 + $0x1208] sm:$0xff]  ;;  %v651_v38 = vld [vmem:[%s5567_s1 + $0x12a0] sm:$0xff]  ;;  %v653_v50 = vld [vmem:[%s5567_s1 + $0x12b0] sm:$0xff] }
 0x111   :  { %v652_v39 = vld [vmem:[%s5567_s1 + $0x12a8] sm:$0xff]  ;;  %v635_v46 = vld [vmem:[%s5567_s1 + $0x1220] sm:$0xff]  ;;  %v654_v51 = vld [vmem:[%s5567_s1 + $0x12b8] sm:$0xff] }
 0x112   :  { %3319 = vmatpush3.bf16.msra.mxu0 %v3318_v29  ;;  %v49_v29 = vld [vmem:[%s5566_s0 + $0x110] sm:$0xff]  ;;  %v52_v41 = vld [vmem:[%s5566_s0 + $0x128] sm:$0xff]  ;;  %v3376_v45 = vpack.c.bf16 %v652_v39, %v651_v38  ;;  %v670_v58 = vld [vmem:[%s5567_s1 + $0x1338] sm:$0xff] }
 0x113   :  { %3351 = vmatpush3.bf16.msra.mxu1 %v3350_v30  ;;  %3321 = vmatprep.subr.bf16.mxu0 %v3320_v31  ;;  %v3370_v30 = vpack.c.bf16 %v632_v23, %v631_v22  ;;  %v3401_v31 = vpack.c.bf16 %v664_v25, %v663_v24  ;;  %v636_v47 = vld [vmem:[%s5567_s1 + $0x1228] sm:$0xff]  ;;  %v669_v57 = vld [vmem:[%s5567_s1 + $0x1330] sm:$0xff]  ;;  %v655_v59 = vld [vmem:[%s5567_s1 + $0x12c0] sm:$0xff] }
 0x114   :  { %3353 = vmatprep.subr.bf16.mxu1 %v3352_v35  ;;  %v665_v35 = vld [vmem:[%s5567_s1 + $0x1310] sm:$0xff]  ;;  %v668_v49 = vld [vmem:[%s5567_s1 + $0x1328] sm:$0xff]  ;;  %v3378_v52 = vpack.c.bf16 %v636_v47, %v635_v46  ;;  %v3410_v62 = vpack.c.bf16 %v670_v58, %v669_v57  ;;  %v639_v0 = vld [vmem:[%s5567_s1 + $0x1240] sm:$0xff] }
 0x115   :  { %v672_v3 = vld [vmem:[%s5567_s1 + $0x1348] sm:$0xff]  ;;  %v657_v4 = vld [vmem:[%s5567_s1 + $0x12d0] sm:$0xff]  ;;  %v674_v12 = vld [vmem:[%s5567_s1 + $0x1358] sm:$0xff] }
 0x116   :  { %3323 = vmatpush3.bf16.msra.mxu0 %v3322_v42  ;;  %v3374_v42 = vpack.c.bf16 %v634_v34, %v633_v33  ;;  %v673_v11 = vld [vmem:[%s5567_s1 + $0x1350] sm:$0xff]  ;;  %v643_v18 = vld [vmem:[%s5567_s1 + $0x1260] sm:$0xff]  ;;  %v676_v22 = vld [vmem:[%s5567_s1 + $0x1368] sm:$0xff] }
 0x117   :  { %3355 = vmatpush3.bf16.msra.mxu1 %v3354_v43  ;;  %3325 = vmatprep.subr.bf16.mxu0 %v3324_v44  ;;  %v54_v43 = vld [vmem:[%s5566_s0 + $0x138] sm:$0xff]  ;;  %v3404_v44 = vpack.c.bf16 %v666_v37, %v665_v35  ;;  %v661_v23 = vld [vmem:[%s5567_s1 + $0x12f0] sm:$0xff]  ;;  %vm3444_vm3 = vmpackc.low %vm704_vm1, %vm3474_vm2 }
 0x118   :  { %v2229_v60 = vpop.f32.mrb[2].mxu0  ;;  %3357 = vmatprep.subr.bf16.mxu1 %v3356_v48  ;;  %v667_v48 = vld [vmem:[%s5567_s1 + $0x1320] sm:$0xff]  ;;  %v662_v24 = vld [vmem:[%s5567_s1 + $0x12f8] sm:$0xff]  ;;  %v645_v33 = vld [vmem:[%s5567_s1 + $0x1270] sm:$0xff] }
 0x119   :  { %v2264_v1 = vpop.f32.mrb[2].mxu1  ;;  %v2230_v2 = vpop.f32.mrb[3].mxu0  ;;  %v3407_v53 = vpack.c.bf16 %v668_v49, %v667_v48  ;;  %v646_v34 = vld [vmem:[%s5567_s1 + $0x1278] sm:$0xff]  ;;  %v677_v37 = vld [vmem:[%s5567_s1 + $0x1370] sm:$0xff]  ;;  %v683_v49 = vld [vmem:[%s5567_s1 + $0x13a0] sm:$0xff] }
 0x11a   :  { %v2231_v5 = vadd.f32 %v2230_v2, %v2229_v60  ;;  %v2265_v6 = vpop.f32.mrb[3].mxu1  ;;  %3327 = vmatpush3.bf16.msra.mxu0 %v3326_v54  ;;  %v3380_v54 = vpack.c.bf16 %v654_v51, %v653_v50  ;;  %v656_v60 = vld [vmem:[%s5567_s1 + $0x12c8] sm:$0xff]  ;;  %v671_v2 = vld [vmem:[%s5567_s1 + $0x1340] sm:$0xff]  ;;  %v678_v38 = vld [vmem:[%s5567_s1 + $0x1378] sm:$0xff] }
 0x11b   :  { %v2266_v8 = vadd.f32 %v2265_v6, %v2264_v1  ;;  %3359 = vmatpush3.bf16.msra.mxu1 %v3358_v55  ;;  %3329 = vmatprep.subr.bf16.mxu0 %v3328_v56  ;;  %v637_v55 = vld [vmem:[%s5567_s1 + $0x1230] sm:$0xff]  ;;  %v638_v56 = vld [vmem:[%s5567_s1 + $0x1238] sm:$0xff]  ;;  %v3384_v63 = vpack.c.bf16 %v656_v60, %v655_v59  ;;  %v640_v1 = vld [vmem:[%s5567_s1 + $0x1248] sm:$0xff] }
 0x11c   :  { %v915_v14 = vadd.f32 %v2231_v5, %v5137_v40  ;;  %3361 = vmatprep.subr.bf16.mxu1 %v3360_v61  ;;  %v3366_v40 = vpack.c.bf16 %v614_v16, %v613_v13  ;;  %v3382_v61 = vpack.c.bf16 %v638_v56, %v637_v55  ;;  %v658_v5 = vld [vmem:[%s5567_s1 + $0x12d8] sm:$0xff]  ;;  %v3386_v6 = vpack.c.bf16 %v640_v1, %v639_v0  ;;  %v659_v13 = vld [vmem:[%s5567_s1 + $0x12e0] sm:$0xff]  ;;  %v681_v46 = vld [vmem:[%s5567_s1 + $0x1390] sm:$0xff] }
 0x11d   :  { %v3416_v16 = vpack.c.bf16 %v674_v12, %v673_v11  ;;  %v682_v47 = vld [vmem:[%s5567_s1 + $0x1398] sm:$0xff]  ;;  %v684_v50 = vld [vmem:[%s5567_s1 + $0x13a8] sm:$0xff]  ;;  %v687_v55 = vld [vmem:[%s5567_s1 + $0x13c0] sm:$0xff] }
 0x11e   :  { %v5338_v19 = vadd.f32 %v2266_v8, %v915_v14  ;;  %3331 = vmatpush3.bf16.msra.mxu0 %v3330_v7  ;;  %v3413_v7 = vpack.c.bf16 %v672_v3, %v671_v2  ;;  %v3388_v8 = vpack.c.bf16 %v658_v5, %v657_v4  ;;  %v660_v14 = vld [vmem:[%s5567_s1 + $0x12e8] sm:$0xff]  ;;  %v3428_v48 = vpack.c.bf16 %v682_v47, %v681_v46  ;;  %v689_v58 = vld [vmem:[%s5567_s1 + $0x13d0] sm:$0xff]  ;;  %v690_v59 = vld [vmem:[%s5567_s1 + $0x13d8] sm:$0xff] }
 0x11f   :  { %3363 = vmatpush3.bf16.msra.mxu1 %v3362_v9  ;;  %3333 = vmatprep.subr.bf16.mxu0 %v3332_v10  ;;  %v641_v9 = vld [vmem:[%s5567_s1 + $0x1250] sm:$0xff]  ;;  %v642_v10 = vld [vmem:[%s5567_s1 + $0x1258] sm:$0xff]  ;;  %v3392_v17 = vpack.c.bf16 %v660_v14, %v659_v13  ;;  %v3431_v51 = vpack.c.bf16 %v684_v50, %v683_v49  ;;  %v688_v56 = vld [vmem:[%s5567_s1 + $0x13c8] sm:$0xff]  ;;  %v3440_v60 = vpack.c.bf16 %v690_v59, %v689_v58 }
 0x120   :  { %3365 = vmatprep.subr.bf16.mxu1 %v3364_v15  ;;  %v3390_v15 = vpack.c.bf16 %v642_v10, %v641_v9  ;;  %v3437_v57 = vpack.c.bf16 %v688_v56, %v687_v55 }
 0x122   :  { %3335 = vmatpush3.bf16.msra.mxu0 %v3334_v20  ;;  %v644_v20 = vld [vmem:[%s5567_s1 + $0x1268] sm:$0xff] }
 0x123   :  { %3367 = vmatpush3.bf16.msra.mxu1 %v3366_v40  ;;  %3369 = vmatprep.subr.bf16.mxu0 %v3368_v21  ;;  %v675_v40 = vld [vmem:[%s5567_s1 + $0x1360] sm:$0xff] }
 0x124   :  { %3400 = vmatprep.subr.bf16.mxu1 %v3473_v36 }
 0x125   :  { %1893 = vmatmul.mubr.f32.vlgmr.msra.gmra.mrb[16].mxu0 %v47_v28 }
 0x126   :  { %1963 = vmatmul.mubr.f32.vlgmr.msra.gmra.mrb[16].mxu1 %v49_v29  ;;  %3371 = vmatpush3.bf16.msra.mxu0 %v3370_v30  ;;  %v3394_v29 = vpack.c.bf16 %v644_v20, %v643_v18 }
 0x127   :  { %3402 = vmatpush1.bf16.msra.mxu1 %v3401_v31  ;;  %3373 = vmatprep.subr.bf16.mxu0 %v3372_v32  ;;  %v3419_v31 = vpack.c.bf16 %v676_v22, %v675_v40  ;;  %v3396_v32 = vpack.c.bf16 %v662_v24, %v661_v23 }
 0x128   :  { %3403 = vmatprep.subr.bf16.mxu1 %v3473_v36  ;;  %2032 = vmatprep.mubr.f32.mxu0 %v52_v41  ;;  %v3398_v41 = vpack.c.bf16 %v646_v34, %v645_v33 }
 0x129   :  { %2126 = vmatprep.mubr.msk.f32.mxu1 %vm700_vm0, %v54_v43  ;;  %v680_v43 = vld [vmem:[%s5567_s1 + $0x1388] sm:$0xff] }
 0x12a   :  { %3375 = vmatpush3.bf16.msra.mxu0 %v3374_v42  ;;  %v3422_v42 = vpack.c.bf16 %v678_v38, %v677_v37 }
 0x12b   :  { %3405 = vmatpush1.bf16.msra.mxu1 %v3404_v44  ;;  %3377 = vmatprep.subr.bf16.mxu0 %v3376_v45  ;;  %v51_v44 = vld [vmem:[%s5566_s0 + $0x120] sm:$0xff] }
 0x12c   :  { %3406 = vmatprep.subr.bf16.mxu1 %v3473_v36 }
 0x12e   :  { %3379 = vmatpush3.bf16.msra.mxu0 %v3378_v52  ;;  %v685_v52 = vld [vmem:[%s5567_s1 + $0x13b0] sm:$0xff] }
 0x12f   :  { %3408 = vmatpush1.bf16.msra.mxu1 %v3407_v53  ;;  %3381 = vmatprep.subr.bf16.mxu0 %v3380_v54  ;;  %v686_v53 = vld [vmem:[%s5567_s1 + $0x13b8] sm:$0xff] }
 0x130   :  { %3409 = vmatprep.subr.bf16.mxu1 %v3473_v36  ;;  %v3434_v54 = vpack.c.bf16 %v686_v53, %v685_v52 }
 0x132   :  { %3383 = vmatpush3.bf16.msra.mxu0 %v3382_v61 }
 0x133   :  { %3411 = vmatpush1.bf16.msra.mxu1 %v3410_v62  ;;  %3385 = vmatprep.subr.bf16.mxu0 %v3384_v63  ;;  %v691_v62 = vld [vmem:[%s5567_s1 + $0x13e0] sm:$0xff]  ;;  %v692_v63 = vld [vmem:[%s5567_s1 + $0x13e8] sm:$0xf] }
 0x134   :  { %3412 = vmatprep.subr.bf16.mxu1 %v3473_v36  ;;  %v3443_v5 = vpack.c.bf16 %v692_v63, %v691_v62 }
 0x136   :  { %3387 = vmatpush3.bf16.msra.mxu0 %v3386_v6 }
 0x137   :  { %3414 = vmatpush1.bf16.msra.mxu1 %v3413_v7  ;;  %3389 = vmatprep.subr.bf16.mxu0 %v3388_v8  ;;  %v53_v8 = vld [vmem:[%s5566_s0 + $0x130] sm:$0xff]  ;;  %s3475_s0 = smov [#allocation2]  }
 0x138   :  { %v2299_v21 = vpop.f32.mrb[4].mxu0  ;;  %3415 = vmatprep.subr.bf16.mxu1 %v3473_v36 }
 0x139   :  { %v2334_v25 = vpop.f32.mrb[4].mxu1  ;;  %v2300_v26 = vpop.f32.mrb[5].mxu0 }
 0x13a   :  { %v2301_v27 = vadd.f32 %v2300_v26, %v2299_v21  ;;  %v2335_v28 = vpop.f32.mrb[5].mxu1  ;;  %3391 = vmatpush3.bf16.msra.mxu0 %v3390_v15 }
 0x13b   :  { %v2336_v30 = vadd.f32 %v2335_v28, %v2334_v25  ;;  %3417 = vmatpush1.bf16.msra.mxu1 %v3416_v16  ;;  %3393 = vmatprep.subr.bf16.mxu0 %v3392_v17 }
 0x13c   :  { %v1055_v35 = vadd.f32 %v2301_v27, %v5338_v19  ;;  %3418 = vmatprep.subr.bf16.mxu1 %v3473_v36  ;;  %v679_v19 = vld [vmem:[%s5567_s1 + $0x1380] sm:$0xff]  ;;  %s2116_s1 = sshll.u32 %s3475_s0, 4  ;;  %s2117_s1 = int_to_ptr.vmem [resolvable:$true] %s2116_s1 }
 0x13d   :  { %v3425_v45 = vpack.c.bf16 %v680_v43, %v679_v19  ;;  %s3449_s10 = scalar_lea.vmem %s2117_s1, 128  ;;  %p3454_p1 = scmp.lt.s32.totalorder %s2117_s1, %s2117_s1 }
 0x13e   :  { %v1125_v39 = vadd.f32 %v2336_v30, %v1055_v35  ;;  %3395 = vmatpush3.bf16.msra.mxu0 %v3394_v29  ;;  %p3450_p0 = scmp.ne.s32.totalorder %s2117_s1, %s3449_s10  ;;  %p3455_p2 = scmp.lt.s32.totalorder %s3449_s10, %s3449_s10 }
 0x13f   :  { %3420 = vmatpush1.bf16.msra.mxu1 %v3419_v31  ;;  %3397 = vmatprep.subr.bf16.mxu0 %v3396_v32 }
 0x140   :  { %3421 = vmatprep.subr.bf16.mxu1 %v3473_v36  ;;  %p3456_p3 = por %p3455_p2, %p3454_p1 }
 0x142   :  { %3399 = vmatpush3.bf16.msra.mxu0 %v3398_v41  ;;  %p3457_p4 = pnand %p3456_p3, %p3450_p0 }
 0x143   :  { %3423 = vmatpush1.bf16.msra.mxu1 %v3422_v42 }
 0x144   :  { %3424 = vmatprep.subr.bf16.mxu1 %v3473_v36 }
 0x145   :  { %2033 = vmatmul.mubr.f32.vlgmr.msra.gmra.mrb[18].mxu0 %v51_v44 }
 0x147   :  { %3426 = vmatpush1.bf16.msra.mxu1 %v3425_v45 }
 0x148   :  { %3427 = vmatprep.subr.bf16.mxu1 %v3473_v36 }
 0x14b   :  { %3429 = vmatpush1.bf16.msra.mxu1 %v3428_v48 }
 0x14c   :  { %3430 = vmatprep.subr.bf16.mxu1 %v3473_v36 }
 0x14f   :  { %3432 = vmatpush1.bf16.msra.mxu1 %v3431_v51 }
 0x150   :  { %3433 = vmatprep.subr.bf16.mxu1 %v3473_v36 }
 0x153   :  { %3435 = vmatpush1.bf16.msra.mxu1 %v3434_v54 }
 0x154   :  { %3436 = vmatprep.subr.bf16.mxu1 %v3473_v36 }
 0x157   :  { %3438 = vmatpush1.bf16.msra.mxu1 %v3437_v57 }
 0x158   :  { %v2369_v61 = vpop.f32.mrb[6].mxu0  ;;  %3439 = vmatprep.subr.bf16.mxu1 %v3473_v36 }
 0x159   :  { %v2404_v0 = vpop.f32.mrb[6].mxu1  ;;  %v2370_v1 = vpop.f32.mrb[7].mxu0 }
 0x15a   :  { %v2371_v2 = vadd.f32 %v2370_v1, %v2369_v61  ;;  %v2405_v3 = vpop.f32.mrb[7].mxu1 }
 0x15b   :  { %v2406_v4 = vadd.f32 %v2405_v3, %v2404_v0  ;;  %3441 = vmatpush1.bf16.msra.mxu1 %v3440_v60 }
 0x15c   :  { %v1195_v6 = vadd.f32 %v2371_v2, %v1125_v39  ;;  %3442 = vmatprep.subr.bf16.mxu1 %v3473_v36 }
 0x15e   :  { %v1265_v7 = vadd.f32 %v2406_v4, %v1195_v6 }
 0x15f   :  { %3445 = vmatpush1.bf16.msk.msra.mxu1 %vm3444_vm3, %v3443_v5 }
 0x162   :  { %2103 = vmatmul.mubr.f32.vlgmr.msra.gmra.mrb[18].mxu1 %v53_v8 }
 0x178   :  { %v2439_v9 = vpop.f32.mrb[8].mxu0 }
 0x179   :  { %v2474_v10 = vpop.f32.mrb[8].mxu1  ;;  %v2440_v11 = vpop.f32.mrb[9].mxu0 }
 0x17a   :  { %v2441_v12 = vadd.f32 %v2440_v11, %v2439_v9  ;;  %v2475_v13 = vpop.f32.mrb[9].mxu1 }
 0x17b   :  { %v2476_v14 = vadd.f32 %v2475_v13, %v2474_v10 }
 0x17c   :  { %v1335_v15 = vadd.f32 %v2441_v12, %v1265_v7 }
 0x17e   :  { %v1405_v16 = vadd.f32 %v2476_v14, %v1335_v15 }
 0x198   :  { %v2509_v17 = vpop.f32.mrb[10].mxu0 }
 0x199   :  { %v2544_v18 = vpop.f32.mrb[10].mxu1  ;;  %v2510_v36 = vpop.f32.mrb[11].mxu0 }
 0x19a   :  { %v2511_v20 = vadd.f32 %v2510_v36, %v2509_v17  ;;  %v2545_v40 = vpop.f32.mrb[11].mxu1 }
 0x19b   :  { %v2546_v21 = vadd.f32 %v2545_v40, %v2544_v18 }
 0x19c   :  { %v1475_v22 = vadd.f32 %v2511_v20, %v1405_v16 }
 0x19e   :  { %v1545_v23 = vadd.f32 %v2546_v21, %v1475_v22 }
 0x1b8   :  { %v2579_v24 = vpop.f32.mrb[12].mxu0 }
 0x1b9   :  { %v2614_v25 = vpop.f32.mrb[12].mxu1  ;;  %v2580_v26 = vpop.f32.mrb[13].mxu0 }
 0x1ba   :  { %v2581_v27 = vadd.f32 %v2580_v26, %v2579_v24  ;;  %v2615_v28 = vpop.f32.mrb[13].mxu1 }
 0x1bb   :  { %v2616_v29 = vadd.f32 %v2615_v28, %v2614_v25 }
 0x1bc   :  { %v1615_v30 = vadd.f32 %v2581_v27, %v1545_v23 }
 0x1be   :  { %v1685_v31 = vadd.f32 %v2616_v29, %v1615_v30 }
 0x1d8   :  { %v2649_v32 = vpop.f32.mrb[14].mxu0 }
 0x1d9   :  { %v2684_v33 = vpop.f32.mrb[14].mxu1  ;;  %v2650_v34 = vpop.f32.mrb[15].mxu0 }
 0x1da   :  { %v2651_v35 = vadd.f32 %v2650_v34, %v2649_v32  ;;  %v2685_v37 = vpop.f32.mrb[15].mxu1 }
 0x1db   :  { %v2686_v38 = vadd.f32 %v2685_v37, %v2684_v33 }
 0x1dc   :  { %v1755_v39 = vadd.f32 %v2651_v35, %v1685_v31 }
 0x1de   :  { %v1825_v41 = vadd.f32 %v2686_v38, %v1755_v39 }
 0x1f8   :  { %v2719_v42 = vpop.f32.mrb[16].mxu0 }
 0x1f9   :  { %v2754_v19 = vpop.f32.mrb[16].mxu1  ;;  %v2720_v43 = vpop.f32.mrb[17].mxu0 }
 0x1fa   :  { %v2721_v44 = vadd.f32 %v2720_v43, %v2719_v42  ;;  %v2755_v45 = vpop.f32.mrb[17].mxu1 }
 0x1fb   :  { %v2756_v46 = vadd.f32 %v2755_v45, %v2754_v19 }
 0x1fc   :  { %v1895_v47 = vadd.f32 %v2721_v44, %v1825_v41 }
 0x1fe   :  { %v1965_v48 = vadd.f32 %v2756_v46, %v1895_v47 }
 0x218   :  { %v2789_v49 = vpop.f32.mrb[18].mxu0 }
 0x219   :  { %v2790_v50 = vpop.f32.mrb[19].mxu0 }
 0x21a   :  { %v2791_v51 = vadd.f32 %v2790_v50, %v2789_v49 }
 0x21c   :  { %v2035_v52 = vadd.f32 %v2791_v51, %v1965_v48 }
 0x235   :  { %v2104_v53 = vpop.f32.mrb[18].mxu1 }
 0x236   :  { %v2105_v54 = vadd.f32 %v2104_v53, %v2035_v52  ;;  %v2106_v55 = vpop.f32.mrb[19].mxu1 }
 0x238   :  { %2109 = vst.msk [vmem:[#allocation2] sm:$0xff] %vm2108_vm4, %v2105_v54 }
 0x239   :  { %3460 = shalt.err (!%p3457_p4)
}
 0x23a   :  { %s3461_s12 = scalar_lea.hbm %s5569_s3, 128 }
 0x23b   :  { %p3462_p5 = scmp.ne.s32.totalorder %s5569_s3, %s3461_s12  ;;  %p3465_p6 = scmp.lt.u32.totalorder %s3461_s12, %s5569_s3 }
 0x23d   :  { %p3467_p7 = pnand %p3465_p6, %p3462_p5 }
 0x23f   :  { %3470 = shalt.err (!%p3467_p7)
}
 0x240   :  { %2119 = dma.vmem_to_hbm [thread:$0]  %s2117_s1, 128, %s5569_s3, [#allocation3]  }
 0x241   :  { %3471 = dma.done.wait [#allocation3], 128  }
 0x242   :  { %3472 = vsyncadd [#allocation3], 4294967168 }
 0x243   :  { %2123 = vsyncpa [#allocation3], 1 }

// kernel: tpu_custom_call.1
= control target key start
LH: loop header
LB: loop body
LE: loop exit
PB: predicated region body
PF: predicated region fallthrough
CT: control target
= control target key end

     0   :  { %s5566_s0 = inlined_call_operand.vmem [shape: f32[8,5100], index: 0, kind: input, shape index: {}]   ;;  %s5567_s1 = inlined_call_operand.vmem [shape: f32[5100,8], index: 1, kind: input, shape index: {}]   ;;  %s5568_s2 = inlined_call_operand.vmem [shape: f32[1,8], index: 2, kind: input, shape index: {}]   ;;  %s5569_s3 = inlined_call_operand.hbm [shape: f32[8,8], index: 3, kind: output, shape index: {}]  }
   0x1   :  { %v71_v0 = vld [vmem:[%s5567_s1 + $0x80] sm:$0xff]  ;;  %v72_v1 = vld [vmem:[%s5567_s1 + $0x88] sm:$0xff]  ;;  %v73_v11 = vld [vmem:[%s5567_s1 + $0x90] sm:$0xff] }
   0x2   :  { %v103_v2 = vld [vmem:[%s5567_s1 + $0x180] sm:$0xff]  ;;  %v2792_v3 = vpack.c.bf16 %v72_v1, %v71_v0  ;;  %v104_v4 = vld [vmem:[%s5567_s1 + $0x188] sm:$0xff]  ;;  %v74_v13 = vld [vmem:[%s5567_s1 + $0x98] sm:$0xff] }
   0x3   :  { %v55_v5 = vld [vmem:[%s5567_s1] sm:$0xff]  ;;  %v56_v6 = vld [vmem:[%s5567_s1 + $0x8] sm:$0xff]  ;;  %v2824_v7 = vpack.c.bf16 %v104_v4, %v103_v2  ;;  %v105_v14 = vld [vmem:[%s5567_s1 + $0x190] sm:$0xff]  ;;  %v2796_v16 = vpack.c.bf16 %v74_v13, %v73_v11 }
   0x4   :  { %v2794_v8 = vpack.c.bf16 %v56_v6, %v55_v5  ;;  %v87_v9 = vld [vmem:[%s5567_s1 + $0x100] sm:$0xff]  ;;  %v88_v10 = vld [vmem:[%s5567_s1 + $0x108] sm:$0xff]  ;;  %2793 = vmatprep.subr.bf16.mxu0 %v2792_v3  ;;  %v106_v15 = vld [vmem:[%s5567_s1 + $0x198] sm:$0xff] }
   0x5   :  { %v2826_v12 = vpack.c.bf16 %v88_v10, %v87_v9  ;;  %2825 = vmatprep.subr.bf16.mxu1 %v2824_v7  ;;  %v2828_v17 = vpack.c.bf16 %v106_v15, %v105_v14  ;;  %v57_v18 = vld [vmem:[%s5567_s1 + $0x10] sm:$0xff]  ;;  %v58_v19 = vld [vmem:[%s5567_s1 + $0x18] sm:$0xff]  ;;  %v75_v23 = vld [vmem:[%s5567_s1 + $0xa0] sm:$0xff] }
   0x6   :  { %2795 = vmatpush3.bf16.msra.mxu0 %v2794_v8  ;;  %v89_v20 = vld [vmem:[%s5567_s1 + $0x110] sm:$0xff]  ;;  %v2798_v21 = vpack.c.bf16 %v58_v19, %v57_v18  ;;  %v90_v22 = vld [vmem:[%s5567_s1 + $0x118] sm:$0xff]  ;;  %v76_v24 = vld [vmem:[%s5567_s1 + $0xa8] sm:$0xff] }
   0x7   :  { %2827 = vmatpush3.bf16.msra.mxu1 %v2826_v12  ;;  %2797 = vmatprep.subr.bf16.mxu0 %v2796_v16  ;;  %v2830_v25 = vpack.c.bf16 %v90_v22, %v89_v20  ;;  %v2800_v26 = vpack.c.bf16 %v76_v24, %v75_v23  ;;  %v107_v27 = vld [vmem:[%s5567_s1 + $0x1a0] sm:$0xff]  ;;  %v108_v28 = vld [vmem:[%s5567_s1 + $0x1a8] sm:$0xff]  ;;  %v77_v35 = vld [vmem:[%s5567_s1 + $0xb0] sm:$0xff] }
   0x8   :  { %2829 = vmatprep.subr.bf16.mxu1 %v2828_v17  ;;  %v59_v29 = vld [vmem:[%s5567_s1 + $0x20] sm:$0xff]  ;;  %v2832_v30 = vpack.c.bf16 %v108_v28, %v107_v27  ;;  %v60_v31 = vld [vmem:[%s5567_s1 + $0x28] sm:$0xff]  ;;  %v78_v36 = vld [vmem:[%s5567_s1 + $0xb8] sm:$0xff] }
   0x9   :  { %v91_v32 = vld [vmem:[%s5567_s1 + $0x120] sm:$0xff]  ;;  %v92_v33 = vld [vmem:[%s5567_s1 + $0x128] sm:$0xff]  ;;  %v2802_v34 = vpack.c.bf16 %v60_v31, %v59_v29  ;;  %v109_v37 = vld [vmem:[%s5567_s1 + $0x1b0] sm:$0xff]  ;;  %v2804_v39 = vpack.c.bf16 %v78_v36, %v77_v35 }
   0xa   :  { %2799 = vmatpush3.bf16.msra.mxu0 %v2798_v21  ;;  %v2834_v38 = vpack.c.bf16 %v92_v33, %v91_v32  ;;  %v110_v40 = vld [vmem:[%s5567_s1 + $0x1b8] sm:$0xff]  ;;  %v61_v41 = vld [vmem:[%s5567_s1 + $0x30] sm:$0xff]  ;;  %v79_v46 = vld [vmem:[%s5567_s1 + $0xc0] sm:$0xff] }
   0xb   :  { %2831 = vmatpush3.bf16.msra.mxu1 %v2830_v25  ;;  %2801 = vmatprep.subr.bf16.mxu0 %v2800_v26  ;;  %v62_v42 = vld [vmem:[%s5567_s1 + $0x38] sm:$0xff]  ;;  %v2836_v43 = vpack.c.bf16 %v110_v40, %v109_v37  ;;  %v93_v44 = vld [vmem:[%s5567_s1 + $0x130] sm:$0xff]  ;;  %v80_v47 = vld [vmem:[%s5567_s1 + $0xc8] sm:$0xff] }
   0xc   :  { %2833 = vmatprep.subr.bf16.mxu1 %v2832_v30  ;;  %v94_v45 = vld [vmem:[%s5567_s1 + $0x138] sm:$0xff]  ;;  %v111_v48 = vld [vmem:[%s5567_s1 + $0x1c0] sm:$0xff]  ;;  %v112_v49 = vld [vmem:[%s5567_s1 + $0x1c8] sm:$0xff]  ;;  %v2806_v50 = vpack.c.bf16 %v62_v42, %v61_v41  ;;  %v2808_v52 = vpack.c.bf16 %v80_v47, %v79_v46 }
   0xd   :  { %v2838_v51 = vpack.c.bf16 %v94_v45, %v93_v44  ;;  %v63_v53 = vld [vmem:[%s5567_s1 + $0x40] sm:$0xff]  ;;  %v64_v54 = vld [vmem:[%s5567_s1 + $0x48] sm:$0xff]  ;;  %v2840_v56 = vpack.c.bf16 %v112_v49, %v111_v48  ;;  %v81_v58 = vld [vmem:[%s5567_s1 + $0xd0] sm:$0xff] }
   0xe   :  { %2803 = vmatpush3.bf16.msra.mxu0 %v2802_v34  ;;  %v95_v55 = vld [vmem:[%s5567_s1 + $0x140] sm:$0xff]  ;;  %v96_v57 = vld [vmem:[%s5567_s1 + $0x148] sm:$0xff]  ;;  %v82_v59 = vld [vmem:[%s5567_s1 + $0xd8] sm:$0xff]  ;;  %v2810_v62 = vpack.c.bf16 %v64_v54, %v63_v53 }
   0xf   :  { %2835 = vmatpush3.bf16.msra.mxu1 %v2834_v38  ;;  %2805 = vmatprep.subr.bf16.mxu0 %v2804_v39  ;;  %v113_v60 = vld [vmem:[%s5567_s1 + $0x1d0] sm:$0xff]  ;;  %v114_v61 = vld [vmem:[%s5567_s1 + $0x1d8] sm:$0xff]  ;;  %v2842_v63 = vpack.c.bf16 %v96_v57, %v95_v55  ;;  %v2812_v0 = vpack.c.bf16 %v82_v59, %v81_v58  ;;  %v83_v6 = vld [vmem:[%s5567_s1 + $0xe0] sm:$0xff] }
  0x10   :  { %2837 = vmatprep.subr.bf16.mxu1 %v2836_v43  ;;  %v65_v1 = vld [vmem:[%s5567_s1 + $0x50] sm:$0xff]  ;;  %v66_v2 = vld [vmem:[%s5567_s1 + $0x58] sm:$0xff]  ;;  %v2844_v4 = vpack.c.bf16 %v114_v61, %v113_v60  ;;  %v84_v7 = vld [vmem:[%s5567_s1 + $0xe8] sm:$0xff] }
  0x11   :  { %v97_v3 = vld [vmem:[%s5567_s1 + $0x150] sm:$0xff]  ;;  %v98_v5 = vld [vmem:[%s5567_s1 + $0x158] sm:$0xff]  ;;  %v115_v8 = vld [vmem:[%s5567_s1 + $0x1e0] sm:$0xff]  ;;  %v2814_v10 = vpack.c.bf16 %v66_v2, %v65_v1  ;;  %v2816_v14 = vpack.c.bf16 %v84_v7, %v83_v6 }
  0x12   :  { %2807 = vmatpush3.bf16.msra.mxu0 %v2806_v50  ;;  %v116_v9 = vld [vmem:[%s5567_s1 + $0x1e8] sm:$0xff]  ;;  %v67_v11 = vld [vmem:[%s5567_s1 + $0x60] sm:$0xff]  ;;  %v2846_v13 = vpack.c.bf16 %v98_v5, %v97_v3  ;;  %v18_v17 = vld [vmem:[%s5566_s0 + $0x18] sm:$0xff] }
  0x13   :  { %2839 = vmatpush3.bf16.msra.mxu1 %v2838_v51  ;;  %2809 = vmatprep.subr.bf16.mxu0 %v2808_v52  ;;  %v68_v12 = vld [vmem:[%s5567_s1 + $0x68] sm:$0xff]  ;;  %v99_v15 = vld [vmem:[%s5567_s1 + $0x160] sm:$0xff]  ;;  %v2848_v18 = vpack.c.bf16 %v116_v9, %v115_v8  ;;  %v85_v20 = vld [vmem:[%s5567_s1 + $0xf0] sm:$0xff] }
  0x14   :  { %2841 = vmatprep.subr.bf16.mxu1 %v2840_v56  ;;  %v16_v16 = vld [vmem:[%s5566_s0 + $0x8] sm:$0xff]  ;;  %v86_v21 = vld [vmem:[%s5567_s1 + $0xf8] sm:$0xff]  ;;  %v117_v22 = vld [vmem:[%s5567_s1 + $0x1f0] sm:$0xff]  ;;  %842 = vmatprep.mubr.f32.mxu1 %v18_v17  ;;  %v2818_v24 = vpack.c.bf16 %v68_v12, %v67_v11 }
  0x15   :  { %v100_v19 = vld [vmem:[%s5567_s1 + $0x168] sm:$0xff]  ;;  %772 = vmatprep.mubr.f32.mxu0 %v16_v16  ;;  %v118_v23 = vld [vmem:[%s5567_s1 + $0x1f8] sm:$0xff]  ;;  %v2820_v26 = vpack.c.bf16 %v86_v21, %v85_v20  ;;  %v69_v27 = vld [vmem:[%s5567_s1 + $0x70] sm:$0xff] }
  0x16   :  { %2811 = vmatpush3.bf16.msra.mxu0 %v2810_v62  ;;  %v2850_v25 = vpack.c.bf16 %v100_v19, %v99_v15  ;;  %v70_v28 = vld [vmem:[%s5567_s1 + $0x78] sm:$0xff]  ;;  %v101_v29 = vld [vmem:[%s5567_s1 + $0x170] sm:$0xff]  ;;  %v2852_v30 = vpack.c.bf16 %v118_v23, %v117_v22  ;;  %v135_v32 = vld [vmem:[%s5567_s1 + $0x280] sm:$0xff] }
  0x17   :  { %2843 = vmatpush3.bf16.msra.mxu1 %v2842_v63  ;;  %2813 = vmatprep.subr.bf16.mxu0 %v2812_v0  ;;  %v102_v31 = vld [vmem:[%s5567_s1 + $0x178] sm:$0xff]  ;;  %v136_v33 = vld [vmem:[%s5567_s1 + $0x288] sm:$0xff]  ;;  %v167_v34 = vld [vmem:[%s5567_s1 + $0x380] sm:$0xff]  ;;  %v2822_v36 = vpack.c.bf16 %v70_v28, %v69_v27 }
  0x18   :  { %2845 = vmatprep.subr.bf16.mxu1 %v2844_v4  ;;  %v168_v35 = vld [vmem:[%s5567_s1 + $0x388] sm:$0xff]  ;;  %v2854_v37 = vpack.c.bf16 %v102_v31, %v101_v29  ;;  %v2856_v38 = vpack.c.bf16 %v136_v33, %v135_v32  ;;  %v119_v39 = vld [vmem:[%s5567_s1 + $0x200] sm:$0xff]  ;;  %v137_v44 = vld [vmem:[%s5567_s1 + $0x290] sm:$0xff] }
  0x19   :  { %v120_v40 = vld [vmem:[%s5567_s1 + $0x208] sm:$0xff]  ;;  %v151_v41 = vld [vmem:[%s5567_s1 + $0x300] sm:$0xff]  ;;  %v2888_v42 = vpack.c.bf16 %v168_v35, %v167_v34  ;;  %v138_v45 = vld [vmem:[%s5567_s1 + $0x298] sm:$0xff] }
  0x1a   :  { %2815 = vmatpush3.bf16.msra.mxu0 %v2814_v10  ;;  %v152_v43 = vld [vmem:[%s5567_s1 + $0x308] sm:$0xff]  ;;  %v169_v46 = vld [vmem:[%s5567_s1 + $0x390] sm:$0xff]  ;;  %v170_v47 = vld [vmem:[%s5567_s1 + $0x398] sm:$0xff]  ;;  %v2858_v50 = vpack.c.bf16 %v120_v40, %v119_v39  ;;  %v2860_v52 = vpack.c.bf16 %v138_v45, %v137_v44 }
  0x1b   :  { %2847 = vmatpush3.bf16.msra.mxu1 %v2846_v13  ;;  %2817 = vmatprep.subr.bf16.mxu0 %v2816_v14  ;;  %v15_v48 = vld [vmem:[%s5566_s0] sm:$0xff]  ;;  %v17_v49 = vld [vmem:[%s5566_s0 + $0x10] sm:$0xff]  ;;  %v2890_v51 = vpack.c.bf16 %v152_v43, %v151_v41  ;;  %v122_v54 = vld [vmem:[%s5567_s1 + $0x218] sm:$0xff]  ;;  %v2892_v56 = vpack.c.bf16 %v170_v47, %v169_v46 }
  0x1c   :  { %2849 = vmatprep.subr.bf16.mxu1 %v2848_v18  ;;  %v121_v53 = vld [vmem:[%s5567_s1 + $0x210] sm:$0xff]  ;;  %v154_v57 = vld [vmem:[%s5567_s1 + $0x318] sm:$0xff]  ;;  %v139_v58 = vld [vmem:[%s5567_s1 + $0x2a0] sm:$0xff] }
  0x1d   :  { %v153_v55 = vld [vmem:[%s5567_s1 + $0x310] sm:$0xff]  ;;  %v140_v59 = vld [vmem:[%s5567_s1 + $0x2a8] sm:$0xff]  ;;  %v171_v60 = vld [vmem:[%s5567_s1 + $0x3a0] sm:$0xff]  ;;  %v2862_v62 = vpack.c.bf16 %v122_v54, %v121_v53 }
  0x1e   :  { %2819 = vmatpush3.bf16.msra.mxu0 %v2818_v24  ;;  %v172_v61 = vld [vmem:[%s5567_s1 + $0x3a8] sm:$0xff]  ;;  %v2894_v63 = vpack.c.bf16 %v154_v57, %v153_v55  ;;  %v2864_v0 = vpack.c.bf16 %v140_v59, %v139_v58  ;;  %v123_v1 = vld [vmem:[%s5567_s1 + $0x220] sm:$0xff]  ;;  %v141_v6 = vld [vmem:[%s5567_s1 + $0x2b0] sm:$0xff] }
  0x1f   :  { %2851 = vmatpush3.bf16.msra.mxu1 %v2850_v25  ;;  %2821 = vmatprep.subr.bf16.mxu0 %v2820_v26  ;;  %v124_v2 = vld [vmem:[%s5567_s1 + $0x228] sm:$0xff]  ;;  %v155_v3 = vld [vmem:[%s5567_s1 + $0x320] sm:$0xff]  ;;  %v2896_v4 = vpack.c.bf16 %v172_v61, %v171_v60  ;;  %v142_v7 = vld [vmem:[%s5567_s1 + $0x2b8] sm:$0xff] }
  0x20   :  { %2853 = vmatprep.subr.bf16.mxu1 %v2852_v30  ;;  %v156_v5 = vld [vmem:[%s5567_s1 + $0x328] sm:$0xff]  ;;  %v173_v8 = vld [vmem:[%s5567_s1 + $0x3b0] sm:$0xff]  ;;  %v174_v9 = vld [vmem:[%s5567_s1 + $0x3b8] sm:$0xff]  ;;  %v2866_v10 = vpack.c.bf16 %v124_v2, %v123_v1  ;;  %v2868_v12 = vpack.c.bf16 %v142_v7, %v141_v6 }
  0x21   :  { %v2898_v11 = vpack.c.bf16 %v156_v5, %v155_v3  ;;  %v125_v13 = vld [vmem:[%s5567_s1 + $0x230] sm:$0xff]  ;;  %v126_v14 = vld [vmem:[%s5567_s1 + $0x238] sm:$0xff]  ;;  %v2900_v16 = vpack.c.bf16 %v174_v9, %v173_v8  ;;  %v143_v18 = vld [vmem:[%s5567_s1 + $0x2c0] sm:$0xff] }
  0x22   :  { %2823 = vmatpush3.bf16.msra.mxu0 %v2822_v36  ;;  %v157_v15 = vld [vmem:[%s5567_s1 + $0x330] sm:$0xff]  ;;  %v158_v17 = vld [vmem:[%s5567_s1 + $0x338] sm:$0xff]  ;;  %v144_v19 = vld [vmem:[%s5567_s1 + $0x2c8] sm:$0xff]  ;;  %v2870_v22 = vpack.c.bf16 %v126_v14, %v125_v13 }
  0x23   :  { %2855 = vmatpush3.bf16.msra.mxu1 %v2854_v37  ;;  %2857 = vmatprep.subr.bf16.mxu0 %v2856_v38  ;;  %v175_v20 = vld [vmem:[%s5567_s1 + $0x3c0] sm:$0xff]  ;;  %v176_v21 = vld [vmem:[%s5567_s1 + $0x3c8] sm:$0xff]  ;;  %v22_v24 = vld [vmem:[%s5566_s0 + $0x38] sm:$0xff]  ;;  %v2902_v25 = vpack.c.bf16 %v158_v17, %v157_v15  ;;  %v2872_v26 = vpack.c.bf16 %v144_v19, %v143_v18 }
  0x24   :  { %2889 = vmatprep.subr.bf16.mxu1 %v2888_v42  ;;  %v20_v23 = vld [vmem:[%s5566_s0 + $0x28] sm:$0xff]  ;;  %v127_v27 = vld [vmem:[%s5567_s1 + $0x240] sm:$0xff]  ;;  %v2904_v30 = vpack.c.bf16 %v176_v21, %v175_v20  ;;  %v145_v32 = vld [vmem:[%s5567_s1 + $0x2d0] sm:$0xff] }
  0x25   :  { %773 = vmatmul.mubr.f32.vlgmr.msra.gmra.mrb[0].mxu0 %v15_v48  ;;  %v128_v28 = vld [vmem:[%s5567_s1 + $0x248] sm:$0xff]  ;;  %v159_v29 = vld [vmem:[%s5567_s1 + $0x340] sm:$0xff]  ;;  %v146_v33 = vld [vmem:[%s5567_s1 + $0x2d8] sm:$0xff] }
  0x26   :  { %843 = vmatmul.mubr.f32.vlgmr.msra.gmra.mrb[0].mxu1 %v17_v49  ;;  %2859 = vmatpush3.bf16.msra.mxu0 %v2858_v50  ;;  %v160_v31 = vld [vmem:[%s5567_s1 + $0x348] sm:$0xff]  ;;  %v177_v34 = vld [vmem:[%s5567_s1 + $0x3d0] sm:$0xff]  ;;  %v178_v35 = vld [vmem:[%s5567_s1 + $0x3d8] sm:$0xff]  ;;  %v2874_v36 = vpack.c.bf16 %v128_v28, %v127_v27  ;;  %v2876_v38 = vpack.c.bf16 %v146_v33, %v145_v32 }
  0x27   :  { %2891 = vmatpush3.bf16.msra.mxu1 %v2890_v51  ;;  %2861 = vmatprep.subr.bf16.mxu0 %v2860_v52  ;;  %v2906_v37 = vpack.c.bf16 %v160_v31, %v159_v29  ;;  %v129_v39 = vld [vmem:[%s5567_s1 + $0x250] sm:$0xff]  ;;  %v130_v40 = vld [vmem:[%s5567_s1 + $0x258] sm:$0xff]  ;;  %v2908_v42 = vpack.c.bf16 %v178_v35, %v177_v34  ;;  %v147_v44 = vld [vmem:[%s5567_s1 + $0x2e0] sm:$0xff] }
  0x28   :  { %2893 = vmatprep.subr.bf16.mxu1 %v2892_v56  ;;  %912 = vmatprep.mubr.f32.mxu0 %v20_v23  ;;  %v161_v41 = vld [vmem:[%s5567_s1 + $0x350] sm:$0xff]  ;;  %v162_v43 = vld [vmem:[%s5567_s1 + $0x358] sm:$0xff]  ;;  %v148_v45 = vld [vmem:[%s5567_s1 + $0x2e8] sm:$0xff]  ;;  %v2878_v48 = vpack.c.bf16 %v130_v40, %v129_v39 }
  0x29   :  { %982 = vmatprep.mubr.f32.mxu1 %v22_v24  ;;  %v179_v46 = vld [vmem:[%s5567_s1 + $0x3e0] sm:$0xff]  ;;  %v180_v47 = vld [vmem:[%s5567_s1 + $0x3e8] sm:$0xff]  ;;  %v2910_v49 = vpack.c.bf16 %v162_v43, %v161_v41  ;;  %v2880_v50 = vpack.c.bf16 %v148_v45, %v147_v44  ;;  %v149_v56 = vld [vmem:[%s5567_s1 + $0x2f0] sm:$0xff] }
  0x2a   :  { %2863 = vmatpush3.bf16.msra.mxu0 %v2862_v62  ;;  %v131_v51 = vld [vmem:[%s5567_s1 + $0x260] sm:$0xff]  ;;  %v132_v52 = vld [vmem:[%s5567_s1 + $0x268] sm:$0xff]  ;;  %v2912_v54 = vpack.c.bf16 %v180_v47, %v179_v46  ;;  %v150_v57 = vld [vmem:[%s5567_s1 + $0x2f8] sm:$0xff] }
  0x2b   :  { %2895 = vmatpush3.bf16.msra.mxu1 %v2894_v63  ;;  %2865 = vmatprep.subr.bf16.mxu0 %v2864_v0  ;;  %v163_v53 = vld [vmem:[%s5567_s1 + $0x360] sm:$0xff]  ;;  %v164_v55 = vld [vmem:[%s5567_s1 + $0x368] sm:$0xff]  ;;  %v181_v58 = vld [vmem:[%s5567_s1 + $0x3f0] sm:$0xff]  ;;  %v2882_v60 = vpack.c.bf16 %v132_v52, %v131_v51  ;;  %v2884_v62 = vpack.c.bf16 %v150_v57, %v149_v56 }
  0x2c   :  { %2897 = vmatprep.subr.bf16.mxu1 %v2896_v4  ;;  %v182_v59 = vld [vmem:[%s5567_s1 + $0x3f8] sm:$0xff]  ;;  %v2914_v61 = vpack.c.bf16 %v164_v55, %v163_v53  ;;  %v133_v63 = vld [vmem:[%s5567_s1 + $0x270] sm:$0xff]  ;;  %v199_v4 = vld [vmem:[%s5567_s1 + $0x480] sm:$0xff] }
  0x2d   :  { %v134_v0 = vld [vmem:[%s5567_s1 + $0x278] sm:$0xff]  ;;  %v165_v1 = vld [vmem:[%s5567_s1 + $0x370] sm:$0xff]  ;;  %v2916_v2 = vpack.c.bf16 %v182_v59, %v181_v58  ;;  %v200_v5 = vld [vmem:[%s5567_s1 + $0x488] sm:$0xff] }
  0x2e   :  { %2867 = vmatpush3.bf16.msra.mxu0 %v2866_v10  ;;  %v166_v3 = vld [vmem:[%s5567_s1 + $0x378] sm:$0xff]  ;;  %v231_v6 = vld [vmem:[%s5567_s1 + $0x580] sm:$0xff]  ;;  %v232_v7 = vld [vmem:[%s5567_s1 + $0x588] sm:$0xff]  ;;  %v2886_v8 = vpack.c.bf16 %v134_v0, %v133_v63  ;;  %v2920_v10 = vpack.c.bf16 %v200_v5, %v199_v4 }
  0x2f   :  { %2899 = vmatpush3.bf16.msra.mxu1 %v2898_v11  ;;  %2869 = vmatprep.subr.bf16.mxu0 %v2868_v12  ;;  %v2918_v9 = vpack.c.bf16 %v166_v3, %v165_v1  ;;  %v183_v11 = vld [vmem:[%s5567_s1 + $0x400] sm:$0xff]  ;;  %v184_v12 = vld [vmem:[%s5567_s1 + $0x408] sm:$0xff]  ;;  %v2952_v14 = vpack.c.bf16 %v232_v7, %v231_v6  ;;  %v202_v17 = vld [vmem:[%s5567_s1 + $0x498] sm:$0xff] }
  0x30   :  { %2901 = vmatprep.subr.bf16.mxu1 %v2900_v16  ;;  %v215_v13 = vld [vmem:[%s5567_s1 + $0x500] sm:$0xff]  ;;  %v216_v15 = vld [vmem:[%s5567_s1 + $0x508] sm:$0xff]  ;;  %v201_v16 = vld [vmem:[%s5567_s1 + $0x490] sm:$0xff] }
  0x31   :  { %v233_v18 = vld [vmem:[%s5567_s1 + $0x590] sm:$0xff]  ;;  %v234_v19 = vld [vmem:[%s5567_s1 + $0x598] sm:$0xff]  ;;  %v19_v20 = vld [vmem:[%s5566_s0 + $0x20] sm:$0xff]  ;;  %v2954_v23 = vpack.c.bf16 %v216_v15, %v215_v13  ;;  %v2924_v24 = vpack.c.bf16 %v202_v17, %v201_v16 }
  0x32   :  { %2871 = vmatpush3.bf16.msra.mxu0 %v2870_v22  ;;  %v21_v21 = vld [vmem:[%s5566_s0 + $0x30] sm:$0xff]  ;;  %v2922_v22 = vpack.c.bf16 %v184_v12, %v183_v11  ;;  %v2956_v28 = vpack.c.bf16 %v234_v19, %v233_v18  ;;  %v218_v29 = vld [vmem:[%s5567_s1 + $0x518] sm:$0xff]  ;;  %v204_v31 = vld [vmem:[%s5567_s1 + $0x4a8] sm:$0xff] }
  0x33   :  { %2903 = vmatpush3.bf16.msra.mxu1 %v2902_v25  ;;  %2873 = vmatprep.subr.bf16.mxu0 %v2872_v26  ;;  %v185_v25 = vld [vmem:[%s5567_s1 + $0x410] sm:$0xff]  ;;  %v186_v26 = vld [vmem:[%s5567_s1 + $0x418] sm:$0xff]  ;;  %v235_v32 = vld [vmem:[%s5567_s1 + $0x5a0] sm:$0xff] }
  0x34   :  { %2905 = vmatprep.subr.bf16.mxu1 %v2904_v30  ;;  %v217_v27 = vld [vmem:[%s5567_s1 + $0x510] sm:$0xff]  ;;  %v203_v30 = vld [vmem:[%s5567_s1 + $0x4a0] sm:$0xff]  ;;  %v236_v33 = vld [vmem:[%s5567_s1 + $0x5a8] sm:$0xff]  ;;  %v2926_v35 = vpack.c.bf16 %v186_v26, %v185_v25 }
  0x35   :  { %v24_v34 = vld [vmem:[%s5566_s0 + $0x48] sm:$0xff]  ;;  %v187_v39 = vld [vmem:[%s5567_s1 + $0x420] sm:$0xff]  ;;  %v205_v44 = vld [vmem:[%s5567_s1 + $0x4b0] sm:$0xff] }
  0x36   :  { %2875 = vmatpush3.bf16.msra.mxu0 %v2874_v36  ;;  %v26_v36 = vld [vmem:[%s5566_s0 + $0x58] sm:$0xff]  ;;  %v188_v40 = vld [vmem:[%s5567_s1 + $0x428] sm:$0xff]  ;;  %v219_v41 = vld [vmem:[%s5567_s1 + $0x520] sm:$0xff] }
  0x37   :  { %2907 = vmatpush3.bf16.msra.mxu1 %v2906_v37  ;;  %2877 = vmatprep.subr.bf16.mxu0 %v2876_v38  ;;  %v2958_v37 = vpack.c.bf16 %v218_v29, %v217_v27  ;;  %v2928_v38 = vpack.c.bf16 %v204_v31, %v203_v30  ;;  %v220_v43 = vld [vmem:[%s5567_s1 + $0x528] sm:$0xff]  ;;  %v206_v45 = vld [vmem:[%s5567_s1 + $0x4b8] sm:$0xff]  ;;  %v237_v46 = vld [vmem:[%s5567_s1 + $0x5b0] sm:$0xff] }
  0x38   :  { %2909 = vmatprep.subr.bf16.mxu1 %v2908_v42  ;;  %v2960_v42 = vpack.c.bf16 %v236_v33, %v235_v32  ;;  %v238_v47 = vld [vmem:[%s5567_s1 + $0x5b8] sm:$0xff]  ;;  %v189_v51 = vld [vmem:[%s5567_s1 + $0x430] sm:$0xff]  ;;  %v207_v56 = vld [vmem:[%s5567_s1 + $0x4c0] sm:$0xff] }
  0x39   :  { %v190_v52 = vld [vmem:[%s5567_s1 + $0x438] sm:$0xff]  ;;  %v221_v53 = vld [vmem:[%s5567_s1 + $0x530] sm:$0xff]  ;;  %v208_v57 = vld [vmem:[%s5567_s1 + $0x4c8] sm:$0xff] }
  0x3a   :  { %2879 = vmatpush3.bf16.msra.mxu0 %v2878_v48  ;;  %v2930_v48 = vpack.c.bf16 %v188_v40, %v187_v39  ;;  %v222_v55 = vld [vmem:[%s5567_s1 + $0x538] sm:$0xff]  ;;  %v239_v58 = vld [vmem:[%s5567_s1 + $0x5c0] sm:$0xff]  ;;  %v240_v59 = vld [vmem:[%s5567_s1 + $0x5c8] sm:$0xff] }
  0x3b   :  { %2911 = vmatpush3.bf16.msra.mxu1 %v2910_v49  ;;  %2881 = vmatprep.subr.bf16.mxu0 %v2880_v50  ;;  %v2962_v49 = vpack.c.bf16 %v220_v43, %v219_v41  ;;  %v2932_v50 = vpack.c.bf16 %v206_v45, %v205_v44  ;;  %v191_v63 = vld [vmem:[%s5567_s1 + $0x440] sm:$0xff]  ;;  %v192_v0 = vld [vmem:[%s5567_s1 + $0x448] sm:$0xff]  ;;  %v209_v4 = vld [vmem:[%s5567_s1 + $0x4d0] sm:$0xff] }
  0x3c   :  { %2913 = vmatprep.subr.bf16.mxu1 %v2912_v54  ;;  %v2964_v54 = vpack.c.bf16 %v238_v47, %v237_v46  ;;  %v223_v1 = vld [vmem:[%s5567_s1 + $0x540] sm:$0xff]  ;;  %v224_v3 = vld [vmem:[%s5567_s1 + $0x548] sm:$0xff]  ;;  %v210_v5 = vld [vmem:[%s5567_s1 + $0x4d8] sm:$0xff] }
  0x3d   :  { %v241_v6 = vld [vmem:[%s5567_s1 + $0x5d0] sm:$0xff]  ;;  %v242_v7 = vld [vmem:[%s5567_s1 + $0x5d8] sm:$0xff]  ;;  %v211_v16 = vld [vmem:[%s5567_s1 + $0x4e0] sm:$0xff] }
  0x3e   :  { %2883 = vmatpush3.bf16.msra.mxu0 %v2882_v60  ;;  %v2934_v60 = vpack.c.bf16 %v190_v52, %v189_v51  ;;  %v193_v11 = vld [vmem:[%s5567_s1 + $0x450] sm:$0xff]  ;;  %v194_v12 = vld [vmem:[%s5567_s1 + $0x458] sm:$0xff]  ;;  %v212_v17 = vld [vmem:[%s5567_s1 + $0x4e8] sm:$0xff] }
  0x3f   :  { %2915 = vmatpush3.bf16.msra.mxu1 %v2914_v61  ;;  %2885 = vmatprep.subr.bf16.mxu0 %v2884_v62  ;;  %v2966_v61 = vpack.c.bf16 %v222_v55, %v221_v53  ;;  %v2936_v62 = vpack.c.bf16 %v208_v57, %v207_v56  ;;  %v225_v13 = vld [vmem:[%s5567_s1 + $0x550] sm:$0xff]  ;;  %v226_v15 = vld [vmem:[%s5567_s1 + $0x558] sm:$0xff]  ;;  %v243_v18 = vld [vmem:[%s5567_s1 + $0x5e0] sm:$0xff] }
  0x40   :  { %2917 = vmatprep.subr.bf16.mxu1 %v2916_v2  ;;  %v2968_v2 = vpack.c.bf16 %v240_v59, %v239_v58  ;;  %v244_v19 = vld [vmem:[%s5567_s1 + $0x5e8] sm:$0xff]  ;;  %v227_v25 = vld [vmem:[%s5567_s1 + $0x560] sm:$0xff]  ;;  %v214_v29 = vld [vmem:[%s5567_s1 + $0x4f8] sm:$0xff] }
  0x41   :  { %v2976_v26 = vpack.c.bf16 %v244_v19, %v243_v18  ;;  %v228_v27 = vld [vmem:[%s5567_s1 + $0x568] sm:$0xff]  ;;  %v245_v30 = vld [vmem:[%s5567_s1 + $0x5f0] sm:$0xff]  ;;  %v246_v31 = vld [vmem:[%s5567_s1 + $0x5f8] sm:$0xff] }
  0x42   :  { %2887 = vmatpush3.bf16.msra.mxu0 %v2886_v8  ;;  %v2938_v8 = vpack.c.bf16 %v192_v0, %v191_v63  ;;  %v2978_v33 = vpack.c.bf16 %v228_v27, %v227_v25  ;;  %v230_v39 = vld [vmem:[%s5567_s1 + $0x578] sm:$0xff]  ;;  %v263_v40 = vld [vmem:[%s5567_s1 + $0x680] sm:$0xff]  ;;  %v264_v41 = vld [vmem:[%s5567_s1 + $0x688] sm:$0xff] }
  0x43   :  { %2919 = vmatpush3.bf16.msra.mxu1 %v2918_v9  ;;  %2921 = vmatprep.subr.bf16.mxu0 %v2920_v10  ;;  %v2970_v9 = vpack.c.bf16 %v224_v3, %v223_v1  ;;  %v2940_v10 = vpack.c.bf16 %v210_v5, %v209_v4  ;;  %v296_v43 = vld [vmem:[%s5567_s1 + $0x788] sm:$0xff]  ;;  %v2984_v46 = vpack.c.bf16 %v264_v41, %v263_v40  ;;  %v247_v47 = vld [vmem:[%s5567_s1 + $0x600] sm:$0xff]  ;;  %v265_v52 = vld [vmem:[%s5567_s1 + $0x690] sm:$0xff] }
  0x44   :  { %2953 = vmatprep.subr.bf16.mxu1 %v2952_v14  ;;  %v2972_v14 = vpack.c.bf16 %v242_v7, %v241_v6  ;;  %v280_v51 = vld [vmem:[%s5567_s1 + $0x708] sm:$0xff]  ;;  %v266_v53 = vld [vmem:[%s5567_s1 + $0x698] sm:$0xff]  ;;  %v23_v56 = vld [vmem:[%s5566_s0 + $0x40] sm:$0xff] }
  0x45   :  { %913 = vmatmul.mubr.f32.vlgmr.msra.gmra.mrb[2].mxu0 %v19_v20  ;;  %v2942_v20 = vpack.c.bf16 %v194_v12, %v193_v11  ;;  %v298_v55 = vld [vmem:[%s5567_s1 + $0x798] sm:$0xff]  ;;  %v25_v57 = vld [vmem:[%s5566_s0 + $0x50] sm:$0xff]  ;;  %v268_v3 = vld [vmem:[%s5567_s1 + $0x6a8] sm:$0xff] }
  0x46   :  { %983 = vmatmul.mubr.f32.vlgmr.msra.gmra.mrb[2].mxu1 %v21_v21  ;;  %2923 = vmatpush3.bf16.msra.mxu0 %v2922_v22  ;;  %v2974_v21 = vpack.c.bf16 %v226_v15, %v225_v13  ;;  %v2944_v22 = vpack.c.bf16 %v212_v17, %v211_v16  ;;  %v281_v63 = vld [vmem:[%s5567_s1 + $0x710] sm:$0xff]  ;;  %v282_v1 = vld [vmem:[%s5567_s1 + $0x718] sm:$0xff]  ;;  %v299_v4 = vld [vmem:[%s5567_s1 + $0x7a0] sm:$0xff] }
  0x47   :  { %2955 = vmatpush3.bf16.msra.mxu1 %v2954_v23  ;;  %2925 = vmatprep.subr.bf16.mxu0 %v2924_v24  ;;  %v195_v23 = vld [vmem:[%s5567_s1 + $0x460] sm:$0xff]  ;;  %v196_v24 = vld [vmem:[%s5567_s1 + $0x468] sm:$0xff]  ;;  %v269_v16 = vld [vmem:[%s5567_s1 + $0x6b0] sm:$0xff] }
  0x48   :  { %2957 = vmatprep.subr.bf16.mxu1 %v2956_v28  ;;  %1052 = vmatprep.mubr.f32.mxu0 %v24_v34  ;;  %v213_v28 = vld [vmem:[%s5567_s1 + $0x4f0] sm:$0xff]  ;;  %v2946_v32 = vpack.c.bf16 %v196_v24, %v195_v23  ;;  %v300_v5 = vld [vmem:[%s5567_s1 + $0x7a8] sm:$0xff]  ;;  %v251_v11 = vld [vmem:[%s5567_s1 + $0x620] sm:$0xff] }
  0x49   :  { %1122 = vmatprep.mubr.f32.mxu1 %v26_v36  ;;  %v2948_v34 = vpack.c.bf16 %v214_v29, %v213_v28  ;;  %v198_v36 = vld [vmem:[%s5567_s1 + $0x478] sm:$0xff]  ;;  %v28_v6 = vld [vmem:[%s5566_s0 + $0x68] sm:$0xff]  ;;  %v283_v13 = vld [vmem:[%s5567_s1 + $0x720] sm:$0xff] }
  0x4a   :  { %2927 = vmatpush3.bf16.msra.mxu0 %v2926_v35  ;;  %v197_v35 = vld [vmem:[%s5567_s1 + $0x470] sm:$0xff]  ;;  %v252_v12 = vld [vmem:[%s5567_s1 + $0x628] sm:$0xff]  ;;  %v270_v17 = vld [vmem:[%s5567_s1 + $0x6b8] sm:$0xff] }
  0x4b   :  { %2959 = vmatpush3.bf16.msra.mxu1 %v2958_v37  ;;  %2929 = vmatprep.subr.bf16.mxu0 %v2928_v38  ;;  %v229_v37 = vld [vmem:[%s5567_s1 + $0x570] sm:$0xff]  ;;  %v2980_v38 = vpack.c.bf16 %v246_v31, %v245_v30  ;;  %v2950_v44 = vpack.c.bf16 %v198_v36, %v197_v35  ;;  %v284_v15 = vld [vmem:[%s5567_s1 + $0x728] sm:$0xff]  ;;  %v302_v19 = vld [vmem:[%s5567_s1 + $0x7b8] sm:$0xff] }
  0x4c   :  { %2961 = vmatprep.subr.bf16.mxu1 %v2960_v42  ;;  %v295_v42 = vld [vmem:[%s5567_s1 + $0x780] sm:$0xff]  ;;  %v2982_v45 = vpack.c.bf16 %v230_v39, %v229_v37  ;;  %v301_v18 = vld [vmem:[%s5567_s1 + $0x7b0] sm:$0xff]  ;;  %v254_v24 = vld [vmem:[%s5567_s1 + $0x638] sm:$0xff] }
  0x4d   :  { %v253_v23 = vld [vmem:[%s5567_s1 + $0x630] sm:$0xff]  ;;  %v286_v27 = vld [vmem:[%s5567_s1 + $0x738] sm:$0xff]  ;;  %v271_v28 = vld [vmem:[%s5567_s1 + $0x6c0] sm:$0xff] }
  0x4e   :  { %2931 = vmatpush3.bf16.msra.mxu0 %v2930_v48  ;;  %v248_v48 = vld [vmem:[%s5567_s1 + $0x608] sm:$0xff]  ;;  %v285_v25 = vld [vmem:[%s5567_s1 + $0x730] sm:$0xff]  ;;  %v303_v30 = vld [vmem:[%s5567_s1 + $0x7c0] sm:$0xff] }
  0x4f   :  { %2963 = vmatpush3.bf16.msra.mxu1 %v2962_v49  ;;  %2933 = vmatprep.subr.bf16.mxu0 %v2932_v50  ;;  %v279_v49 = vld [vmem:[%s5567_s1 + $0x700] sm:$0xff]  ;;  %v3016_v50 = vpack.c.bf16 %v296_v43, %v295_v42  ;;  %v2986_v58 = vpack.c.bf16 %v248_v48, %v247_v47  ;;  %v272_v29 = vld [vmem:[%s5567_s1 + $0x6c8] sm:$0xff]  ;;  %v273_v40 = vld [vmem:[%s5567_s1 + $0x6d0] sm:$0xff] }
  0x50   :  { %2965 = vmatprep.subr.bf16.mxu1 %v2964_v54  ;;  %v297_v54 = vld [vmem:[%s5567_s1 + $0x790] sm:$0xff]  ;;  %v3018_v59 = vpack.c.bf16 %v280_v51, %v279_v49  ;;  %v304_v31 = vld [vmem:[%s5567_s1 + $0x7c8] sm:$0xff]  ;;  %v255_v35 = vld [vmem:[%s5567_s1 + $0x640] sm:$0xff] }
  0x51   :  { %v3020_v0 = vpack.c.bf16 %v298_v55, %v297_v54  ;;  %v256_v36 = vld [vmem:[%s5567_s1 + $0x648] sm:$0xff]  ;;  %v287_v37 = vld [vmem:[%s5567_s1 + $0x740] sm:$0xff]  ;;  %v274_v41 = vld [vmem:[%s5567_s1 + $0x6d8] sm:$0xff] }
  0x52   :  { %2935 = vmatpush3.bf16.msra.mxu0 %v2934_v60  ;;  %v2988_v60 = vpack.c.bf16 %v266_v53, %v265_v52  ;;  %v288_v39 = vld [vmem:[%s5567_s1 + $0x748] sm:$0xff]  ;;  %v305_v42 = vld [vmem:[%s5567_s1 + $0x7d0] sm:$0xff]  ;;  %v306_v43 = vld [vmem:[%s5567_s1 + $0x7d8] sm:$0xff] }
  0x53   :  { %2967 = vmatpush3.bf16.msra.mxu1 %v2966_v61  ;;  %2937 = vmatprep.subr.bf16.mxu0 %v2936_v62  ;;  %v249_v61 = vld [vmem:[%s5567_s1 + $0x610] sm:$0xff]  ;;  %v250_v62 = vld [vmem:[%s5567_s1 + $0x618] sm:$0xff]  ;;  %v275_v52 = vld [vmem:[%s5567_s1 + $0x6e0] sm:$0xff] }
  0x54   :  { %2969 = vmatprep.subr.bf16.mxu1 %v2968_v2  ;;  %v267_v2 = vld [vmem:[%s5567_s1 + $0x6a0] sm:$0xff]  ;;  %v2990_v7 = vpack.c.bf16 %v250_v62, %v249_v61  ;;  %v257_v47 = vld [vmem:[%s5567_s1 + $0x650] sm:$0xff]  ;;  %v258_v48 = vld [vmem:[%s5567_s1 + $0x658] sm:$0xff] }
  0x55   :  { %v289_v49 = vld [vmem:[%s5567_s1 + $0x750] sm:$0xff]  ;;  %v290_v51 = vld [vmem:[%s5567_s1 + $0x758] sm:$0xff]  ;;  %v276_v53 = vld [vmem:[%s5567_s1 + $0x6e8] sm:$0xff] }
  0x56   :  { %2939 = vmatpush3.bf16.msra.mxu0 %v2938_v8  ;;  %v30_v8 = vld [vmem:[%s5566_s0 + $0x78] sm:$0xff]  ;;  %v307_v54 = vld [vmem:[%s5567_s1 + $0x7e0] sm:$0xff]  ;;  %v308_v55 = vld [vmem:[%s5567_s1 + $0x7e8] sm:$0xff] }
  0x57   :  { %2971 = vmatpush3.bf16.msra.mxu1 %v2970_v9  ;;  %2941 = vmatprep.subr.bf16.mxu0 %v2940_v10  ;;  %v3022_v9 = vpack.c.bf16 %v282_v1, %v281_v63  ;;  %v2992_v10 = vpack.c.bf16 %v268_v3, %v267_v2  ;;  %v291_v61 = vld [vmem:[%s5567_s1 + $0x760] sm:$0xff]  ;;  %v3040_v62 = vpack.c.bf16 %v308_v55, %v307_v54  ;;  %v292_v63 = vld [vmem:[%s5567_s1 + $0x768] sm:$0xff]  ;;  %v278_v1 = vld [vmem:[%s5567_s1 + $0x6f8] sm:$0xff] }
  0x58   :  { %2973 = vmatprep.subr.bf16.mxu1 %v2972_v14  ;;  %v3024_v14 = vpack.c.bf16 %v300_v5, %v299_v4  ;;  %v309_v2 = vld [vmem:[%s5567_s1 + $0x7f0] sm:$0xff]  ;;  %v310_v3 = vld [vmem:[%s5567_s1 + $0x7f8] sm:$0xff]  ;;  %v3042_v5 = vpack.c.bf16 %v292_v63, %v291_v61 }
  0x59   :  { %v365_v54 = vld [vmem:[%s5567_s1 + $0x9b0] sm:$0xff]  ;;  %v366_v55 = vld [vmem:[%s5567_s1 + $0x9b8] sm:$0xff] }
  0x5a   :  { %2943 = vmatpush3.bf16.msra.mxu0 %v2942_v20  ;;  %v2994_v20 = vpack.c.bf16 %v252_v12, %v251_v11  ;;  %v294_v11 = vld [vmem:[%s5567_s1 + $0x778] sm:$0xff]  ;;  %v327_v12 = vld [vmem:[%s5567_s1 + $0x880] sm:$0xff]  ;;  %v349_v61 = vld [vmem:[%s5567_s1 + $0x930] sm:$0xff] }
  0x5b   :  { %2975 = vmatpush3.bf16.msra.mxu1 %v2974_v21  ;;  %2945 = vmatprep.subr.bf16.mxu0 %v2944_v22  ;;  %v3026_v21 = vpack.c.bf16 %v284_v15, %v283_v13  ;;  %v2996_v22 = vpack.c.bf16 %v270_v17, %v269_v16  ;;  %v328_v13 = vld [vmem:[%s5567_s1 + $0x888] sm:$0xff]  ;;  %v350_v63 = vld [vmem:[%s5567_s1 + $0x938] sm:$0xff] }
  0x5c   :  { %2977 = vmatprep.subr.bf16.mxu1 %v2976_v26  ;;  %v3028_v26 = vpack.c.bf16 %v302_v19, %v301_v18  ;;  %v360_v15 = vld [vmem:[%s5567_s1 + $0x988] sm:$0xff]  ;;  %v3048_v18 = vpack.c.bf16 %v328_v13, %v327_v12  ;;  %v311_v19 = vld [vmem:[%s5567_s1 + $0x800] sm:$0xff]  ;;  %v337_v12 = vld [vmem:[%s5567_s1 + $0x8d0] sm:$0xff] }
  0x5d   :  { %v338_v13 = vld [vmem:[%s5567_s1 + $0x8d8] sm:$0xff] }
  0x5e   :  { %2947 = vmatpush3.bf16.msra.mxu0 %v2946_v32  ;;  %v2998_v32 = vpack.c.bf16 %v254_v24, %v253_v23  ;;  %v344_v23 = vld [vmem:[%s5567_s1 + $0x908] sm:$0xff]  ;;  %v329_v24 = vld [vmem:[%s5567_s1 + $0x890] sm:$0xff] }
  0x5f   :  { %2979 = vmatpush3.bf16.msra.mxu1 %v2978_v33  ;;  %2949 = vmatprep.subr.bf16.mxu0 %v2948_v34  ;;  %v3030_v33 = vpack.c.bf16 %v286_v27, %v285_v25  ;;  %v3000_v34 = vpack.c.bf16 %v272_v29, %v271_v28  ;;  %v330_v25 = vld [vmem:[%s5567_s1 + $0x898] sm:$0xff]  ;;  %v27_v28 = vld [vmem:[%s5566_s0 + $0x60] sm:$0xff]  ;;  %v29_v29 = vld [vmem:[%s5566_s0 + $0x70] sm:$0xff] }
  0x60   :  { %2981 = vmatprep.subr.bf16.mxu1 %v2980_v38  ;;  %v3032_v38 = vpack.c.bf16 %v304_v31, %v303_v30  ;;  %v362_v27 = vld [vmem:[%s5567_s1 + $0x998] sm:$0xff] }
  0x62   :  { %2951 = vmatpush3.bf16.msra.mxu0 %v2950_v44  ;;  %v3002_v44 = vpack.c.bf16 %v256_v36, %v255_v35  ;;  %v345_v35 = vld [vmem:[%s5567_s1 + $0x910] sm:$0xff] }
  0x63   :  { %2983 = vmatpush3.bf16.msra.mxu1 %v2982_v45  ;;  %2985 = vmatprep.subr.bf16.mxu0 %v2984_v46  ;;  %v3034_v45 = vpack.c.bf16 %v288_v39, %v287_v37  ;;  %v3004_v46 = vpack.c.bf16 %v274_v41, %v273_v40  ;;  %v346_v37 = vld [vmem:[%s5567_s1 + $0x918] sm:$0xff]  ;;  %v332_v39 = vld [vmem:[%s5567_s1 + $0x8a8] sm:$0xff]  ;;  %v363_v40 = vld [vmem:[%s5567_s1 + $0x9a0] sm:$0xff] }
  0x64   :  { %3017 = vmatprep.subr.bf16.mxu1 %v3016_v50  ;;  %v3036_v50 = vpack.c.bf16 %v306_v43, %v305_v42  ;;  %v364_v41 = vld [vmem:[%s5567_s1 + $0x9a8] sm:$0xff] }
  0x65   :  { %1053 = vmatmul.mubr.f32.vlgmr.msra.gmra.mrb[4].mxu0 %v23_v56  ;;  %v3006_v56 = vpack.c.bf16 %v258_v48, %v257_v47  ;;  %v32_v42 = vld [vmem:[%s5566_s0 + $0x88] sm:$0xff]  ;;  %v315_v47 = vld [vmem:[%s5567_s1 + $0x820] sm:$0xff] }
  0x66   :  { %1123 = vmatmul.mubr.f32.vlgmr.msra.gmra.mrb[4].mxu1 %v25_v57  ;;  %2987 = vmatpush3.bf16.msra.mxu0 %v2986_v58  ;;  %v3038_v57 = vpack.c.bf16 %v290_v51, %v289_v49  ;;  %v3008_v58 = vpack.c.bf16 %v276_v53, %v275_v52  ;;  %v316_v48 = vld [vmem:[%s5567_s1 + $0x828] sm:$0xff]  ;;  %v347_v49 = vld [vmem:[%s5567_s1 + $0x920] sm:$0xff]  ;;  %v333_v52 = vld [vmem:[%s5567_s1 + $0x8b0] sm:$0xff] }
  0x67   :  { %3019 = vmatpush3.bf16.msra.mxu1 %v3018_v59  ;;  %2989 = vmatprep.subr.bf16.mxu0 %v2988_v60  ;;  %v259_v59 = vld [vmem:[%s5567_s1 + $0x660] sm:$0xff]  ;;  %v260_v60 = vld [vmem:[%s5567_s1 + $0x668] sm:$0xff]  ;;  %v334_v53 = vld [vmem:[%s5567_s1 + $0x8b8] sm:$0xff] }
  0x68   :  { %3021 = vmatprep.subr.bf16.mxu1 %v3020_v0  ;;  %1192 = vmatprep.mubr.f32.mxu0 %v28_v6  ;;  %v277_v0 = vld [vmem:[%s5567_s1 + $0x6f0] sm:$0xff]  ;;  %v3010_v4 = vpack.c.bf16 %v260_v60, %v259_v59  ;;  %v348_v51 = vld [vmem:[%s5567_s1 + $0x928] sm:$0xff]  ;;  %v318_v60 = vld [vmem:[%s5567_s1 + $0x838] sm:$0xff] }
  0x69   :  { %1262 = vmatprep.mubr.f32.mxu1 %v30_v8  ;;  %v3012_v6 = vpack.c.bf16 %v278_v1, %v277_v0  ;;  %v262_v8 = vld [vmem:[%s5567_s1 + $0x678] sm:$0xff]  ;;  %v317_v59 = vld [vmem:[%s5567_s1 + $0x830] sm:$0xff]  ;;  %v335_v0 = vld [vmem:[%s5567_s1 + $0x8c0] sm:$0xff] }
  0x6a   :  { %2991 = vmatpush3.bf16.msra.mxu0 %v2990_v7  ;;  %v261_v7 = vld [vmem:[%s5567_s1 + $0x670] sm:$0xff]  ;;  %v336_v1 = vld [vmem:[%s5567_s1 + $0x8c8] sm:$0xff] }
  0x6b   :  { %3023 = vmatpush3.bf16.msra.mxu1 %v3022_v9  ;;  %2993 = vmatprep.subr.bf16.mxu0 %v2992_v10  ;;  %v293_v9 = vld [vmem:[%s5567_s1 + $0x770] sm:$0xff]  ;;  %v3044_v10 = vpack.c.bf16 %v310_v3, %v309_v2  ;;  %v3014_v16 = vpack.c.bf16 %v262_v8, %v261_v7  ;;  %v367_v2 = vld [vmem:[%s5567_s1 + $0x9c0] sm:$0xff]  ;;  %v368_v3 = vld [vmem:[%s5567_s1 + $0x9c8] sm:$0xff] }
  0x6c   :  { %3025 = vmatprep.subr.bf16.mxu1 %v3024_v14  ;;  %v359_v14 = vld [vmem:[%s5567_s1 + $0x980] sm:$0xff]  ;;  %v3046_v17 = vpack.c.bf16 %v294_v11, %v293_v9  ;;  %v320_v8 = vld [vmem:[%s5567_s1 + $0x848] sm:$0xff] }
  0x6d   :  { %v319_v7 = vld [vmem:[%s5567_s1 + $0x840] sm:$0xff]  ;;  %v352_v11 = vld [vmem:[%s5567_s1 + $0x948] sm:$0xff] }
  0x6e   :  { %2995 = vmatpush3.bf16.msra.mxu0 %v2994_v20  ;;  %v312_v20 = vld [vmem:[%s5567_s1 + $0x808] sm:$0xff]  ;;  %v351_v9 = vld [vmem:[%s5567_s1 + $0x940] sm:$0xff] }
  0x6f   :  { %3027 = vmatpush3.bf16.msra.mxu1 %v3026_v21  ;;  %2997 = vmatprep.subr.bf16.mxu0 %v2996_v22  ;;  %v343_v21 = vld [vmem:[%s5567_s1 + $0x900] sm:$0xff]  ;;  %v3080_v22 = vpack.c.bf16 %v360_v15, %v359_v14  ;;  %v3050_v30 = vpack.c.bf16 %v312_v20, %v311_v19  ;;  %v369_v14 = vld [vmem:[%s5567_s1 + $0x9d0] sm:$0xff]  ;;  %v370_v15 = vld [vmem:[%s5567_s1 + $0x9d8] sm:$0xff] }
  0x70   :  { %3029 = vmatprep.subr.bf16.mxu1 %v3028_v26  ;;  %v361_v26 = vld [vmem:[%s5567_s1 + $0x990] sm:$0xff]  ;;  %v3082_v31 = vpack.c.bf16 %v344_v23, %v343_v21  ;;  %v322_v20 = vld [vmem:[%s5567_s1 + $0x858] sm:$0xff] }
  0x71   :  { %v3084_v36 = vpack.c.bf16 %v362_v27, %v361_v26  ;;  %v321_v19 = vld [vmem:[%s5567_s1 + $0x850] sm:$0xff]  ;;  %v354_v23 = vld [vmem:[%s5567_s1 + $0x958] sm:$0xff]  ;;  %v371_v26 = vld [vmem:[%s5567_s1 + $0x9e0] sm:$0xff] }
  0x72   :  { %2999 = vmatpush3.bf16.msra.mxu0 %v2998_v32  ;;  %v3052_v32 = vpack.c.bf16 %v330_v25, %v329_v24  ;;  %v353_v21 = vld [vmem:[%s5567_s1 + $0x950] sm:$0xff]  ;;  %v339_v24 = vld [vmem:[%s5567_s1 + $0x8e0] sm:$0xff]  ;;  %v340_v25 = vld [vmem:[%s5567_s1 + $0x8e8] sm:$0xff] }
  0x73   :  { %3031 = vmatpush3.bf16.msra.mxu1 %v3030_v33  ;;  %3001 = vmatprep.subr.bf16.mxu0 %v3000_v34  ;;  %v313_v33 = vld [vmem:[%s5567_s1 + $0x810] sm:$0xff]  ;;  %v314_v34 = vld [vmem:[%s5567_s1 + $0x818] sm:$0xff]  ;;  %v372_v27 = vld [vmem:[%s5567_s1 + $0x9e8] sm:$0xff] }
  0x74   :  { %3033 = vmatprep.subr.bf16.mxu1 %v3032_v38  ;;  %v331_v38 = vld [vmem:[%s5567_s1 + $0x8a0] sm:$0xff]  ;;  %v3054_v43 = vpack.c.bf16 %v314_v34, %v313_v33  ;;  %v3104_v34 = vpack.c.bf16 %v372_v27, %v371_v26  ;;  %v429_v26 = vld [vmem:[%s5567_s1 + $0xbb0] sm:$0xff]  ;;  %v430_v27 = vld [vmem:[%s5567_s1 + $0xbb8] sm:$0xff] }
  0x75   :  { %v355_v33 = vld [vmem:[%s5567_s1 + $0x960] sm:$0xff] }
  0x76   :  { %3003 = vmatpush3.bf16.msra.mxu0 %v3002_v44  ;;  %v34_v44 = vld [vmem:[%s5566_s0 + $0x98] sm:$0xff] }
  0x77   :  { %3035 = vmatpush3.bf16.msra.mxu1 %v3034_v45  ;;  %3005 = vmatprep.subr.bf16.mxu0 %v3004_v46  ;;  %v3086_v45 = vpack.c.bf16 %v346_v37, %v345_v35  ;;  %v3056_v46 = vpack.c.bf16 %v332_v39, %v331_v38  ;;  %v356_v35 = vld [vmem:[%s5567_s1 + $0x968] sm:$0xff]  ;;  %v342_v37 = vld [vmem:[%s5567_s1 + $0x8f8] sm:$0xff]  ;;  %v373_v38 = vld [vmem:[%s5567_s1 + $0x9f0] sm:$0xff] }
  0x78   :  { %3037 = vmatprep.subr.bf16.mxu1 %v3036_v50  ;;  %v3088_v50 = vpack.c.bf16 %v364_v41, %v363_v40  ;;  %v374_v39 = vld [vmem:[%s5567_s1 + $0x9f8] sm:$0xff]  ;;  %v3106_v41 = vpack.c.bf16 %v356_v35, %v355_v33  ;;  %v413_v33 = vld [vmem:[%s5567_s1 + $0xb30] sm:$0xff] }
  0x79   :  { %v414_v35 = vld [vmem:[%s5567_s1 + $0xb38] sm:$0xff] }
  0x7a   :  { %3007 = vmatpush3.bf16.msra.mxu0 %v3006_v56  ;;  %v3058_v56 = vpack.c.bf16 %v316_v48, %v315_v47  ;;  %v358_v47 = vld [vmem:[%s5567_s1 + $0x978] sm:$0xff]  ;;  %v391_v48 = vld [vmem:[%s5567_s1 + $0xa80] sm:$0xff] }
  0x7b   :  { %3039 = vmatpush3.bf16.msra.mxu1 %v3038_v57  ;;  %3009 = vmatprep.subr.bf16.mxu0 %v3008_v58  ;;  %v3090_v57 = vpack.c.bf16 %v348_v51, %v347_v49  ;;  %v3060_v58 = vpack.c.bf16 %v334_v53, %v333_v52  ;;  %v392_v49 = vld [vmem:[%s5567_s1 + $0xa88] sm:$0xff] }
  0x7c   :  { %3041 = vmatprep.subr.bf16.mxu1 %v3040_v62  ;;  %v3092_v62 = vpack.c.bf16 %v366_v55, %v365_v54  ;;  %v424_v51 = vld [vmem:[%s5567_s1 + $0xb88] sm:$0xff]  ;;  %v3112_v54 = vpack.c.bf16 %v392_v49, %v391_v48  ;;  %v375_v55 = vld [vmem:[%s5567_s1 + $0xa00] sm:$0xff]  ;;  %v401_v48 = vld [vmem:[%s5567_s1 + $0xad0] sm:$0xff] }
  0x7d   :  { %v402_v49 = vld [vmem:[%s5567_s1 + $0xad8] sm:$0xff] }
  0x7e   :  { %3011 = vmatpush3.bf16.msra.mxu0 %v3010_v4  ;;  %v3062_v4 = vpack.c.bf16 %v318_v60, %v317_v59  ;;  %v408_v59 = vld [vmem:[%s5567_s1 + $0xb08] sm:$0xff]  ;;  %v393_v60 = vld [vmem:[%s5567_s1 + $0xa90] sm:$0xff] }
  0x7f   :  { %3043 = vmatpush3.bf16.msra.mxu1 %v3042_v5  ;;  %3013 = vmatprep.subr.bf16.mxu0 %v3012_v6  ;;  %v3094_v5 = vpack.c.bf16 %v350_v63, %v349_v61  ;;  %v3064_v6 = vpack.c.bf16 %v336_v1, %v335_v0  ;;  %v394_v61 = vld [vmem:[%s5567_s1 + $0xa98] sm:$0xff]  ;;  %v31_v0 = vld [vmem:[%s5566_s0 + $0x80] sm:$0xff]  ;;  %v33_v1 = vld [vmem:[%s5566_s0 + $0x90] sm:$0xff] }
  0x80   :  { %3045 = vmatprep.subr.bf16.mxu1 %v3044_v10  ;;  %v3096_v10 = vpack.c.bf16 %v368_v3, %v367_v2  ;;  %v426_v63 = vld [vmem:[%s5567_s1 + $0xb98] sm:$0xff] }
  0x82   :  { %3015 = vmatpush3.bf16.msra.mxu0 %v3014_v16  ;;  %v3066_v16 = vpack.c.bf16 %v320_v8, %v319_v7  ;;  %v409_v7 = vld [vmem:[%s5567_s1 + $0xb10] sm:$0xff] }
  0x83   :  { %3047 = vmatpush3.bf16.msra.mxu1 %v3046_v17  ;;  %3049 = vmatprep.subr.bf16.mxu0 %v3048_v18  ;;  %v3098_v17 = vpack.c.bf16 %v352_v11, %v351_v9  ;;  %v3068_v18 = vpack.c.bf16 %v338_v13, %v337_v12  ;;  %v410_v9 = vld [vmem:[%s5567_s1 + $0xb18] sm:$0xff]  ;;  %v396_v11 = vld [vmem:[%s5567_s1 + $0xaa8] sm:$0xff]  ;;  %v427_v12 = vld [vmem:[%s5567_s1 + $0xba0] sm:$0xff] }
  0x84   :  { %3081 = vmatprep.subr.bf16.mxu1 %v3080_v22  ;;  %v3100_v22 = vpack.c.bf16 %v370_v15, %v369_v14  ;;  %v428_v13 = vld [vmem:[%s5567_s1 + $0xba8] sm:$0xff] }
  0x85   :  { %1193 = vmatmul.mubr.f32.vlgmr.msra.gmra.mrb[6].mxu0 %v27_v28  ;;  %v3070_v28 = vpack.c.bf16 %v322_v20, %v321_v19  ;;  %v36_v14 = vld [vmem:[%s5566_s0 + $0xa8] sm:$0xff]  ;;  %v379_v19 = vld [vmem:[%s5567_s1 + $0xa20] sm:$0xff] }
  0x86   :  { %1263 = vmatmul.mubr.f32.vlgmr.msra.gmra.mrb[6].mxu1 %v29_v29  ;;  %3051 = vmatpush3.bf16.msra.mxu0 %v3050_v30  ;;  %v3102_v29 = vpack.c.bf16 %v354_v23, %v353_v21  ;;  %v3072_v30 = vpack.c.bf16 %v340_v25, %v339_v24  ;;  %v380_v20 = vld [vmem:[%s5567_s1 + $0xa28] sm:$0xff]  ;;  %v411_v21 = vld [vmem:[%s5567_s1 + $0xb20] sm:$0xff]  ;;  %v397_v24 = vld [vmem:[%s5567_s1 + $0xab0] sm:$0xff] }
  0x87   :  { %3083 = vmatpush3.bf16.msra.mxu1 %v3082_v31  ;;  %3053 = vmatprep.subr.bf16.mxu0 %v3052_v32  ;;  %v323_v31 = vld [vmem:[%s5567_s1 + $0x860] sm:$0xff]  ;;  %v324_v32 = vld [vmem:[%s5567_s1 + $0x868] sm:$0xff]  ;;  %v398_v25 = vld [vmem:[%s5567_s1 + $0xab8] sm:$0xff] }
  0x88   :  { %3085 = vmatprep.subr.bf16.mxu1 %v3084_v36  ;;  %1332 = vmatprep.mubr.f32.mxu0 %v32_v42  ;;  %v341_v36 = vld [vmem:[%s5567_s1 + $0x8f0] sm:$0xff]  ;;  %v3074_v40 = vpack.c.bf16 %v324_v32, %v323_v31  ;;  %v412_v23 = vld [vmem:[%s5567_s1 + $0xb28] sm:$0xff]  ;;  %v382_v32 = vld [vmem:[%s5567_s1 + $0xa38] sm:$0xff] }
  0x89   :  { %1402 = vmatprep.mubr.f32.mxu1 %v34_v44  ;;  %v3076_v42 = vpack.c.bf16 %v342_v37, %v341_v36  ;;  %v326_v44 = vld [vmem:[%s5567_s1 + $0x878] sm:$0xff]  ;;  %v381_v31 = vld [vmem:[%s5567_s1 + $0xa30] sm:$0xff]  ;;  %v399_v36 = vld [vmem:[%s5567_s1 + $0xac0] sm:$0xff] }
  0x8a   :  { %3055 = vmatpush3.bf16.msra.mxu0 %v3054_v43  ;;  %v325_v43 = vld [vmem:[%s5567_s1 + $0x870] sm:$0xff]  ;;  %v400_v37 = vld [vmem:[%s5567_s1 + $0xac8] sm:$0xff] }
  0x8b   :  { %3087 = vmatpush3.bf16.msra.mxu1 %v3086_v45  ;;  %3057 = vmatprep.subr.bf16.mxu0 %v3056_v46  ;;  %v357_v45 = vld [vmem:[%s5567_s1 + $0x970] sm:$0xff]  ;;  %v3108_v46 = vpack.c.bf16 %v374_v39, %v373_v38  ;;  %v3078_v52 = vpack.c.bf16 %v326_v44, %v325_v43  ;;  %v431_v38 = vld [vmem:[%s5567_s1 + $0xbc0] sm:$0xff]  ;;  %v432_v39 = vld [vmem:[%s5567_s1 + $0xbc8] sm:$0xff] }
  0x8c   :  { %3089 = vmatprep.subr.bf16.mxu1 %v3088_v50  ;;  %v423_v50 = vld [vmem:[%s5567_s1 + $0xb80] sm:$0xff]  ;;  %v3110_v53 = vpack.c.bf16 %v358_v47, %v357_v45  ;;  %v384_v44 = vld [vmem:[%s5567_s1 + $0xa48] sm:$0xff] }
  0x8d   :  { %v383_v43 = vld [vmem:[%s5567_s1 + $0xa40] sm:$0xff]  ;;  %v416_v47 = vld [vmem:[%s5567_s1 + $0xb48] sm:$0xff] }
  0x8e   :  { %3059 = vmatpush3.bf16.msra.mxu0 %v3058_v56  ;;  %v376_v56 = vld [vmem:[%s5567_s1 + $0xa08] sm:$0xff]  ;;  %v415_v45 = vld [vmem:[%s5567_s1 + $0xb40] sm:$0xff] }
  0x8f   :  { %3091 = vmatpush3.bf16.msra.mxu1 %v3090_v57  ;;  %3061 = vmatprep.subr.bf16.mxu0 %v3060_v58  ;;  %v407_v57 = vld [vmem:[%s5567_s1 + $0xb00] sm:$0xff]  ;;  %v3144_v58 = vpack.c.bf16 %v424_v51, %v423_v50  ;;  %v3114_v2 = vpack.c.bf16 %v376_v56, %v375_v55  ;;  %v433_v50 = vld [vmem:[%s5567_s1 + $0xbd0] sm:$0xff]  ;;  %v434_v51 = vld [vmem:[%s5567_s1 + $0xbd8] sm:$0xff] }
  0x90   :  { %3093 = vmatprep.subr.bf16.mxu1 %v3092_v62  ;;  %v425_v62 = vld [vmem:[%s5567_s1 + $0xb90] sm:$0xff]  ;;  %v3146_v3 = vpack.c.bf16 %v408_v59, %v407_v57  ;;  %v386_v56 = vld [vmem:[%s5567_s1 + $0xa58] sm:$0xff] }
  0x91   :  { %v3148_v8 = vpack.c.bf16 %v426_v63, %v425_v62  ;;  %v385_v55 = vld [vmem:[%s5567_s1 + $0xa50] sm:$0xff]  ;;  %v418_v59 = vld [vmem:[%s5567_s1 + $0xb58] sm:$0xff]  ;;  %v435_v62 = vld [vmem:[%s5567_s1 + $0xbe0] sm:$0xff] }
  0x92   :  { %3063 = vmatpush3.bf16.msra.mxu0 %v3062_v4  ;;  %v3116_v4 = vpack.c.bf16 %v394_v61, %v393_v60  ;;  %v417_v57 = vld [vmem:[%s5567_s1 + $0xb50] sm:$0xff]  ;;  %v403_v60 = vld [vmem:[%s5567_s1 + $0xae0] sm:$0xff]  ;;  %v404_v61 = vld [vmem:[%s5567_s1 + $0xae8] sm:$0xff] }
  0x93   :  { %3095 = vmatpush3.bf16.msra.mxu1 %v3094_v5  ;;  %3065 = vmatprep.subr.bf16.mxu0 %v3064_v6  ;;  %v377_v5 = vld [vmem:[%s5567_s1 + $0xa10] sm:$0xff]  ;;  %v378_v6 = vld [vmem:[%s5567_s1 + $0xa18] sm:$0xff]  ;;  %v436_v63 = vld [vmem:[%s5567_s1 + $0xbe8] sm:$0xff] }
  0x94   :  { %3097 = vmatprep.subr.bf16.mxu1 %v3096_v10  ;;  %v395_v10 = vld [vmem:[%s5567_s1 + $0xaa0] sm:$0xff]  ;;  %v3118_v15 = vpack.c.bf16 %v378_v6, %v377_v5  ;;  %v3168_v6 = vpack.c.bf16 %v436_v63, %v435_v62  ;;  %v493_v62 = vld [vmem:[%s5567_s1 + $0xdb0] sm:$0xff]  ;;  %v494_v63 = vld [vmem:[%s5567_s1 + $0xdb8] sm:$0xff] }
  0x95   :  { %v419_v5 = vld [vmem:[%s5567_s1 + $0xb60] sm:$0xff] }
  0x96   :  { %3067 = vmatpush3.bf16.msra.mxu0 %v3066_v16  ;;  %v38_v16 = vld [vmem:[%s5566_s0 + $0xb8] sm:$0xff] }
  0x97   :  { %3099 = vmatpush3.bf16.msra.mxu1 %v3098_v17  ;;  %3069 = vmatprep.subr.bf16.mxu0 %v3068_v18  ;;  %v3150_v17 = vpack.c.bf16 %v410_v9, %v409_v7  ;;  %v3120_v18 = vpack.c.bf16 %v396_v11, %v395_v10  ;;  %v420_v7 = vld [vmem:[%s5567_s1 + $0xb68] sm:$0xff]  ;;  %v406_v9 = vld [vmem:[%s5567_s1 + $0xaf8] sm:$0xff]  ;;  %v437_v10 = vld [vmem:[%s5567_s1 + $0xbf0] sm:$0xff] }
  0x98   :  { %3101 = vmatprep.subr.bf16.mxu1 %v3100_v22  ;;  %v3152_v22 = vpack.c.bf16 %v428_v13, %v427_v12  ;;  %v438_v11 = vld [vmem:[%s5567_s1 + $0xbf8] sm:$0xff]  ;;  %v3170_v13 = vpack.c.bf16 %v420_v7, %v419_v5  ;;  %v477_v5 = vld [vmem:[%s5567_s1 + $0xd30] sm:$0xff] }
  0x99   :  { %v478_v7 = vld [vmem:[%s5567_s1 + $0xd38] sm:$0xff] }
  0x9a   :  { %3071 = vmatpush3.bf16.msra.mxu0 %v3070_v28  ;;  %v3122_v28 = vpack.c.bf16 %v380_v20, %v379_v19  ;;  %v422_v19 = vld [vmem:[%s5567_s1 + $0xb78] sm:$0xff]  ;;  %v455_v20 = vld [vmem:[%s5567_s1 + $0xc80] sm:$0xff] }
  0x9b   :  { %3103 = vmatpush3.bf16.msra.mxu1 %v3102_v29  ;;  %3073 = vmatprep.subr.bf16.mxu0 %v3072_v30  ;;  %v3154_v29 = vpack.c.bf16 %v412_v23, %v411_v21  ;;  %v3124_v30 = vpack.c.bf16 %v398_v25, %v397_v24  ;;  %v456_v21 = vld [vmem:[%s5567_s1 + $0xc88] sm:$0xff] }
  0x9c   :  { %3105 = vmatprep.subr.bf16.mxu1 %v3104_v34  ;;  %v3156_v34 = vpack.c.bf16 %v430_v27, %v429_v26  ;;  %v488_v23 = vld [vmem:[%s5567_s1 + $0xd88] sm:$0xff]  ;;  %v3176_v26 = vpack.c.bf16 %v456_v21, %v455_v20  ;;  %v439_v27 = vld [vmem:[%s5567_s1 + $0xc00] sm:$0xff]  ;;  %v465_v20 = vld [vmem:[%s5567_s1 + $0xcd0] sm:$0xff] }
  0x9d   :  { %v466_v21 = vld [vmem:[%s5567_s1 + $0xcd8] sm:$0xff] }
  0x9e   :  { %3075 = vmatpush3.bf16.msra.mxu0 %v3074_v40  ;;  %v3126_v40 = vpack.c.bf16 %v382_v32, %v381_v31  ;;  %v472_v31 = vld [vmem:[%s5567_s1 + $0xd08] sm:$0xff]  ;;  %v457_v32 = vld [vmem:[%s5567_s1 + $0xc90] sm:$0xff] }
  0x9f   :  { %3107 = vmatpush3.bf16.msra.mxu1 %v3106_v41  ;;  %3077 = vmatprep.subr.bf16.mxu0 %v3076_v42  ;;  %v3158_v41 = vpack.c.bf16 %v414_v35, %v413_v33  ;;  %v3128_v42 = vpack.c.bf16 %v400_v37, %v399_v36  ;;  %v458_v33 = vld [vmem:[%s5567_s1 + $0xc98] sm:$0xff]  ;;  %v35_v36 = vld [vmem:[%s5566_s0 + $0xa0] sm:$0xff]  ;;  %v37_v37 = vld [vmem:[%s5566_s0 + $0xb0] sm:$0xff] }
  0xa0   :  { %3109 = vmatprep.subr.bf16.mxu1 %v3108_v46  ;;  %v3160_v46 = vpack.c.bf16 %v432_v39, %v431_v38  ;;  %v490_v35 = vld [vmem:[%s5567_s1 + $0xd98] sm:$0xff] }
  0xa2   :  { %3079 = vmatpush3.bf16.msra.mxu0 %v3078_v52  ;;  %v3130_v52 = vpack.c.bf16 %v384_v44, %v383_v43  ;;  %v473_v43 = vld [vmem:[%s5567_s1 + $0xd10] sm:$0xff] }
  0xa3   :  { %3111 = vmatpush3.bf16.msra.mxu1 %v3110_v53  ;;  %3113 = vmatprep.subr.bf16.mxu0 %v3112_v54  ;;  %v3162_v53 = vpack.c.bf16 %v416_v47, %v415_v45  ;;  %v3132_v54 = vpack.c.bf16 %v402_v49, %v401_v48  ;;  %v474_v45 = vld [vmem:[%s5567_s1 + $0xd18] sm:$0xff]  ;;  %v460_v47 = vld [vmem:[%s5567_s1 + $0xca8] sm:$0xff]  ;;  %v491_v48 = vld [vmem:[%s5567_s1 + $0xda0] sm:$0xff] }
  0xa4   :  { %3145 = vmatprep.subr.bf16.mxu1 %v3144_v58  ;;  %v3164_v58 = vpack.c.bf16 %v434_v51, %v433_v50  ;;  %v492_v49 = vld [vmem:[%s5567_s1 + $0xda8] sm:$0xff] }
  0xa5   :  { %1333 = vmatmul.mubr.f32.vlgmr.msra.gmra.mrb[8].mxu0 %v31_v0  ;;  %v3134_v0 = vpack.c.bf16 %v386_v56, %v385_v55  ;;  %v40_v50 = vld [vmem:[%s5566_s0 + $0xc8] sm:$0xff]  ;;  %v443_v55 = vld [vmem:[%s5567_s1 + $0xc20] sm:$0xff] }
  0xa6   :  { %1403 = vmatmul.mubr.f32.vlgmr.msra.gmra.mrb[8].mxu1 %v33_v1  ;;  %3115 = vmatpush3.bf16.msra.mxu0 %v3114_v2  ;;  %v3166_v1 = vpack.c.bf16 %v418_v59, %v417_v57  ;;  %v3136_v2 = vpack.c.bf16 %v404_v61, %v403_v60  ;;  %v444_v56 = vld [vmem:[%s5567_s1 + $0xc28] sm:$0xff]  ;;  %v475_v57 = vld [vmem:[%s5567_s1 + $0xd20] sm:$0xff]  ;;  %v461_v60 = vld [vmem:[%s5567_s1 + $0xcb0] sm:$0xff] }
  0xa7   :  { %3147 = vmatpush3.bf16.msra.mxu1 %v3146_v3  ;;  %3117 = vmatprep.subr.bf16.mxu0 %v3116_v4  ;;  %v387_v3 = vld [vmem:[%s5567_s1 + $0xa60] sm:$0xff]  ;;  %v388_v4 = vld [vmem:[%s5567_s1 + $0xa68] sm:$0xff]  ;;  %v462_v61 = vld [vmem:[%s5567_s1 + $0xcb8] sm:$0xff] }
  0xa8   :  { %3149 = vmatprep.subr.bf16.mxu1 %v3148_v8  ;;  %1472 = vmatprep.mubr.f32.mxu0 %v36_v14  ;;  %v405_v8 = vld [vmem:[%s5567_s1 + $0xaf0] sm:$0xff]  ;;  %v3138_v12 = vpack.c.bf16 %v388_v4, %v387_v3  ;;  %v476_v59 = vld [vmem:[%s5567_s1 + $0xd28] sm:$0xff]  ;;  %v446_v4 = vld [vmem:[%s5567_s1 + $0xc38] sm:$0xff] }
  0xa9   :  { %1542 = vmatprep.mubr.f32.mxu1 %v38_v16  ;;  %v3140_v14 = vpack.c.bf16 %v406_v9, %v405_v8  ;;  %v390_v16 = vld [vmem:[%s5567_s1 + $0xa78] sm:$0xff]  ;;  %v445_v3 = vld [vmem:[%s5567_s1 + $0xc30] sm:$0xff]  ;;  %v463_v8 = vld [vmem:[%s5567_s1 + $0xcc0] sm:$0xff] }
  0xaa   :  { %3119 = vmatpush3.bf16.msra.mxu0 %v3118_v15  ;;  %v389_v15 = vld [vmem:[%s5567_s1 + $0xa70] sm:$0xff]  ;;  %v464_v9 = vld [vmem:[%s5567_s1 + $0xcc8] sm:$0xff] }
  0xab   :  { %3151 = vmatpush3.bf16.msra.mxu1 %v3150_v17  ;;  %3121 = vmatprep.subr.bf16.mxu0 %v3120_v18  ;;  %v421_v17 = vld [vmem:[%s5567_s1 + $0xb70] sm:$0xff]  ;;  %v3172_v18 = vpack.c.bf16 %v438_v11, %v437_v10  ;;  %v3142_v24 = vpack.c.bf16 %v390_v16, %v389_v15  ;;  %v495_v10 = vld [vmem:[%s5567_s1 + $0xdc0] sm:$0xff]  ;;  %v496_v11 = vld [vmem:[%s5567_s1 + $0xdc8] sm:$0xff] }
  0xac   :  { %3153 = vmatprep.subr.bf16.mxu1 %v3152_v22  ;;  %v487_v22 = vld [vmem:[%s5567_s1 + $0xd80] sm:$0xff]  ;;  %v3174_v25 = vpack.c.bf16 %v422_v19, %v421_v17  ;;  %v448_v16 = vld [vmem:[%s5567_s1 + $0xc48] sm:$0xff] }
  0xad   :  { %v447_v15 = vld [vmem:[%s5567_s1 + $0xc40] sm:$0xff]  ;;  %v480_v19 = vld [vmem:[%s5567_s1 + $0xd48] sm:$0xff] }
  0xae   :  { %3123 = vmatpush3.bf16.msra.mxu0 %v3122_v28  ;;  %v440_v28 = vld [vmem:[%s5567_s1 + $0xc08] sm:$0xff]  ;;  %v479_v17 = vld [vmem:[%s5567_s1 + $0xd40] sm:$0xff] }
  0xaf   :  { %3155 = vmatpush3.bf16.msra.mxu1 %v3154_v29  ;;  %3125 = vmatprep.subr.bf16.mxu0 %v3124_v30  ;;  %v471_v29 = vld [vmem:[%s5567_s1 + $0xd00] sm:$0xff]  ;;  %v3208_v30 = vpack.c.bf16 %v488_v23, %v487_v22  ;;  %v3178_v38 = vpack.c.bf16 %v440_v28, %v439_v27  ;;  %v497_v22 = vld [vmem:[%s5567_s1 + $0xdd0] sm:$0xff]  ;;  %v498_v23 = vld [vmem:[%s5567_s1 + $0xdd8] sm:$0xff] }
  0xb0   :  { %3157 = vmatprep.subr.bf16.mxu1 %v3156_v34  ;;  %v489_v34 = vld [vmem:[%s5567_s1 + $0xd90] sm:$0xff]  ;;  %v3210_v39 = vpack.c.bf16 %v472_v31, %v471_v29  ;;  %v450_v28 = vld [vmem:[%s5567_s1 + $0xc58] sm:$0xff] }
  0xb1   :  { %v3212_v44 = vpack.c.bf16 %v490_v35, %v489_v34  ;;  %v449_v27 = vld [vmem:[%s5567_s1 + $0xc50] sm:$0xff]  ;;  %v482_v31 = vld [vmem:[%s5567_s1 + $0xd58] sm:$0xff]  ;;  %v499_v34 = vld [vmem:[%s5567_s1 + $0xde0] sm:$0xff] }
  0xb2   :  { %3127 = vmatpush3.bf16.msra.mxu0 %v3126_v40  ;;  %v3180_v40 = vpack.c.bf16 %v458_v33, %v457_v32  ;;  %v481_v29 = vld [vmem:[%s5567_s1 + $0xd50] sm:$0xff]  ;;  %v467_v32 = vld [vmem:[%s5567_s1 + $0xce0] sm:$0xff]  ;;  %v468_v33 = vld [vmem:[%s5567_s1 + $0xce8] sm:$0xff] }
  0xb3   :  { %3159 = vmatpush3.bf16.msra.mxu1 %v3158_v41  ;;  %3129 = vmatprep.subr.bf16.mxu0 %v3128_v42  ;;  %v441_v41 = vld [vmem:[%s5567_s1 + $0xc10] sm:$0xff]  ;;  %v442_v42 = vld [vmem:[%s5567_s1 + $0xc18] sm:$0xff]  ;;  %v500_v35 = vld [vmem:[%s5567_s1 + $0xde8] sm:$0xff] }
  0xb4   :  { %3161 = vmatprep.subr.bf16.mxu1 %v3160_v46  ;;  %v459_v46 = vld [vmem:[%s5567_s1 + $0xca0] sm:$0xff]  ;;  %v3182_v51 = vpack.c.bf16 %v442_v42, %v441_v41  ;;  %v3232_v42 = vpack.c.bf16 %v500_v35, %v499_v34 }
  0xb5   :  { %v483_v41 = vld [vmem:[%s5567_s1 + $0xd60] sm:$0xff] }
  0xb6   :  { %3131 = vmatpush3.bf16.msra.mxu0 %v3130_v52  ;;  %v42_v52 = vld [vmem:[%s5566_s0 + $0xd8] sm:$0xff] }
  0xb7   :  { %3163 = vmatpush3.bf16.msra.mxu1 %v3162_v53  ;;  %3133 = vmatprep.subr.bf16.mxu0 %v3132_v54  ;;  %v3214_v53 = vpack.c.bf16 %v474_v45, %v473_v43  ;;  %v3184_v54 = vpack.c.bf16 %v460_v47, %v459_v46  ;;  %v484_v43 = vld [vmem:[%s5567_s1 + $0xd68] sm:$0xff]  ;;  %v470_v45 = vld [vmem:[%s5567_s1 + $0xcf8] sm:$0xff]  ;;  %v501_v46 = vld [vmem:[%s5567_s1 + $0xdf0] sm:$0xff] }
  0xb8   :  { %3165 = vmatprep.subr.bf16.mxu1 %v3164_v58  ;;  %v3216_v58 = vpack.c.bf16 %v492_v49, %v491_v48  ;;  %v502_v47 = vld [vmem:[%s5567_s1 + $0xdf8] sm:$0xff]  ;;  %v3234_v49 = vpack.c.bf16 %v484_v43, %v483_v41 }
  0xba   :  { %3135 = vmatpush3.bf16.msra.mxu0 %v3134_v0  ;;  %v3186_v0 = vpack.c.bf16 %v444_v56, %v443_v55  ;;  %v486_v55 = vld [vmem:[%s5567_s1 + $0xd78] sm:$0xff]  ;;  %v519_v56 = vld [vmem:[%s5567_s1 + $0xe80] sm:$0xff] }
  0xbb   :  { %3167 = vmatpush3.bf16.msra.mxu1 %v3166_v1  ;;  %3137 = vmatprep.subr.bf16.mxu0 %v3136_v2  ;;  %v3218_v1 = vpack.c.bf16 %v476_v59, %v475_v57  ;;  %v3188_v2 = vpack.c.bf16 %v462_v61, %v461_v60  ;;  %v520_v57 = vld [vmem:[%s5567_s1 + $0xe88] sm:$0xff] }
  0xbc   :  { %3169 = vmatprep.subr.bf16.mxu1 %v3168_v6  ;;  %v3220_v6 = vpack.c.bf16 %v494_v63, %v493_v62  ;;  %v552_v59 = vld [vmem:[%s5567_s1 + $0xf88] sm:$0xff]  ;;  %v3240_v62 = vpack.c.bf16 %v520_v57, %v519_v56  ;;  %v503_v63 = vld [vmem:[%s5567_s1 + $0xe00] sm:$0xff] }
  0xbe   :  { %3139 = vmatpush3.bf16.msra.mxu0 %v3138_v12  ;;  %v3190_v12 = vpack.c.bf16 %v446_v4, %v445_v3  ;;  %v536_v3 = vld [vmem:[%s5567_s1 + $0xf08] sm:$0xff]  ;;  %v521_v4 = vld [vmem:[%s5567_s1 + $0xe90] sm:$0xff] }
  0xbf   :  { %3171 = vmatpush3.bf16.msra.mxu1 %v3170_v13  ;;  %3141 = vmatprep.subr.bf16.mxu0 %v3140_v14  ;;  %v3222_v13 = vpack.c.bf16 %v478_v7, %v477_v5  ;;  %v3192_v14 = vpack.c.bf16 %v464_v9, %v463_v8  ;;  %v522_v5 = vld [vmem:[%s5567_s1 + $0xe98] sm:$0xff]  ;;  %v39_v8 = vld [vmem:[%s5566_s0 + $0xc0] sm:$0xff]  ;;  %v41_v9 = vld [vmem:[%s5566_s0 + $0xd0] sm:$0xff] }
  0xc0   :  { %3173 = vmatprep.subr.bf16.mxu1 %v3172_v18  ;;  %v3224_v18 = vpack.c.bf16 %v496_v11, %v495_v10  ;;  %v554_v7 = vld [vmem:[%s5567_s1 + $0xf98] sm:$0xff]  ;;  %v505_v11 = vld [vmem:[%s5567_s1 + $0xe10] sm:$0xff] }
  0xc2   :  { %3143 = vmatpush3.bf16.msra.mxu0 %v3142_v24  ;;  %v3194_v24 = vpack.c.bf16 %v448_v16, %v447_v15  ;;  %v537_v15 = vld [vmem:[%s5567_s1 + $0xf10] sm:$0xff]  ;;  %v538_v16 = vld [vmem:[%s5567_s1 + $0xf18] sm:$0xff] }
  0xc3   :  { %3175 = vmatpush3.bf16.msra.mxu1 %v3174_v25  ;;  %3177 = vmatprep.subr.bf16.mxu0 %v3176_v26  ;;  %v3226_v25 = vpack.c.bf16 %v480_v19, %v479_v17  ;;  %v3196_v26 = vpack.c.bf16 %v466_v21, %v465_v20  ;;  %v524_v19 = vld [vmem:[%s5567_s1 + $0xea8] sm:$0xff] }
  0xc4   :  { %3209 = vmatprep.subr.bf16.mxu1 %v3208_v30  ;;  %v3228_v30 = vpack.c.bf16 %v498_v23, %v497_v22 }
  0xc5   :  { %1473 = vmatmul.mubr.f32.vlgmr.msra.gmra.mrb[10].mxu0 %v35_v36  ;;  %v3198_v36 = vpack.c.bf16 %v450_v28, %v449_v27 }
  0xc6   :  { %1543 = vmatmul.mubr.f32.vlgmr.msra.gmra.mrb[10].mxu1 %v37_v37  ;;  %3179 = vmatpush3.bf16.msra.mxu0 %v3178_v38  ;;  %v3230_v37 = vpack.c.bf16 %v482_v31, %v481_v29  ;;  %v3200_v38 = vpack.c.bf16 %v468_v33, %v467_v32 }
  0xc7   :  { %3211 = vmatpush3.bf16.msra.mxu1 %v3210_v39  ;;  %3181 = vmatprep.subr.bf16.mxu0 %v3180_v40  ;;  %v451_v39 = vld [vmem:[%s5567_s1 + $0xc60] sm:$0xff]  ;;  %v452_v40 = vld [vmem:[%s5567_s1 + $0xc68] sm:$0xff] }
  0xc8   :  { %3213 = vmatprep.subr.bf16.mxu1 %v3212_v44  ;;  %1612 = vmatprep.mubr.f32.mxu0 %v40_v50  ;;  %v469_v44 = vld [vmem:[%s5567_s1 + $0xcf0] sm:$0xff]  ;;  %v3202_v48 = vpack.c.bf16 %v452_v40, %v451_v39 }
  0xc9   :  { %1682 = vmatprep.mubr.f32.mxu1 %v42_v52  ;;  %v3204_v50 = vpack.c.bf16 %v470_v45, %v469_v44  ;;  %v454_v52 = vld [vmem:[%s5567_s1 + $0xc78] sm:$0xff] }
  0xca   :  { %3183 = vmatpush3.bf16.msra.mxu0 %v3182_v51  ;;  %v453_v51 = vld [vmem:[%s5567_s1 + $0xc70] sm:$0xff] }
  0xcb   :  { %3215 = vmatpush3.bf16.msra.mxu1 %v3214_v53  ;;  %3185 = vmatprep.subr.bf16.mxu0 %v3184_v54  ;;  %v485_v53 = vld [vmem:[%s5567_s1 + $0xd70] sm:$0xff]  ;;  %v3236_v54 = vpack.c.bf16 %v502_v47, %v501_v46  ;;  %v3206_v60 = vpack.c.bf16 %v454_v52, %v453_v51 }
  0xcc   :  { %3217 = vmatprep.subr.bf16.mxu1 %v3216_v58  ;;  %v551_v58 = vld [vmem:[%s5567_s1 + $0xf80] sm:$0xff]  ;;  %v3238_v61 = vpack.c.bf16 %v486_v55, %v485_v53 }
  0xce   :  { %3187 = vmatpush3.bf16.msra.mxu0 %v3186_v0  ;;  %v504_v0 = vld [vmem:[%s5567_s1 + $0xe08] sm:$0xff] }
  0xcf   :  { %3219 = vmatpush3.bf16.msra.mxu1 %v3218_v1  ;;  %3189 = vmatprep.subr.bf16.mxu0 %v3188_v2  ;;  %v535_v1 = vld [vmem:[%s5567_s1 + $0xf00] sm:$0xff]  ;;  %v3272_v2 = vpack.c.bf16 %v552_v59, %v551_v58  ;;  %v3242_v10 = vpack.c.bf16 %v504_v0, %v503_v63 }
  0xd0   :  { %3221 = vmatprep.subr.bf16.mxu1 %v3220_v6  ;;  %v553_v6 = vld [vmem:[%s5567_s1 + $0xf90] sm:$0xff] }
  0xd1   :  { %v3276_v17 = vpack.c.bf16 %v554_v7, %v553_v6 }
  0xd2   :  { %3191 = vmatpush3.bf16.msra.mxu0 %v3190_v12  ;;  %v3274_v12 = vpack.c.bf16 %v536_v3, %v535_v1 }
  0xd3   :  { %3223 = vmatpush3.bf16.msra.mxu1 %v3222_v13  ;;  %3193 = vmatprep.subr.bf16.mxu0 %v3192_v14  ;;  %v3244_v13 = vpack.c.bf16 %v522_v5, %v521_v4  ;;  %v506_v14 = vld [vmem:[%s5567_s1 + $0xe18] sm:$0xff] }
  0xd4   :  { %3225 = vmatprep.subr.bf16.mxu1 %v3224_v18  ;;  %v523_v18 = vld [vmem:[%s5567_s1 + $0xea0] sm:$0xff] }
  0xd6   :  { %3195 = vmatpush3.bf16.msra.mxu0 %v3194_v24 }
  0xd7   :  { %3227 = vmatpush3.bf16.msra.mxu1 %v3226_v25  ;;  %3197 = vmatprep.subr.bf16.mxu0 %v3196_v26 }
  0xd8   :  { %3229 = vmatprep.subr.bf16.mxu1 %v3228_v30 }
  0xda   :  { %3199 = vmatpush3.bf16.msra.mxu0 %v3198_v36 }
  0xdb   :  { %3231 = vmatpush3.bf16.msra.mxu1 %v3230_v37  ;;  %3201 = vmatprep.subr.bf16.mxu0 %v3200_v38 }
  0xdc   :  { %3233 = vmatprep.subr.bf16.mxu1 %v3232_v42 }
  0xde   :  { %3203 = vmatpush3.bf16.msra.mxu0 %v3202_v48 }
  0xdf   :  { %3235 = vmatpush3.bf16.msra.mxu1 %v3234_v49  ;;  %3205 = vmatprep.subr.bf16.mxu0 %v3204_v50 }
  0xe0   :  { %3237 = vmatprep.subr.bf16.mxu1 %v3236_v54 }
  0xe2   :  { %3207 = vmatpush3.bf16.msra.mxu0 %v3206_v60 }
  0xe3   :  { %3239 = vmatpush3.bf16.msra.mxu1 %v3238_v61  ;;  %3241 = vmatprep.subr.bf16.mxu0 %v3240_v62 }
  0xe4   :  { %3273 = vmatprep.subr.bf16.mxu1 %v3272_v2 }
  0xe5   :  { %8 = vsyncpa [#allocation3], 0  ;;  %1613 = vmatmul.mubr.f32.vlgmr.msra.gmra.mrb[12].mxu0 %v39_v8  ;;  %v555_v20 = vld [vmem:[%s5567_s1 + $0xfa0] sm:$0xff]  ;;  %v556_v21 = vld [vmem:[%s5567_s1 + $0xfa8] sm:$0xff]  ;;  %v3246_v23 = vpack.c.bf16 %v506_v14, %v505_v11  ;;  %v3278_v25 = vpack.c.bf16 %v538_v16, %v537_v15  ;;  %v3248_v26 = vpack.c.bf16 %v524_v19, %v523_v18  ;;  %vm700_vm0 = vcmask 883712  }
  0xe6   :  { %v44_v22 = vld [vmem:[%s5566_s0 + $0xe8] sm:$0xff]  ;;  %1683 = vmatmul.mubr.f32.vlgmr.msra.gmra.mrb[12].mxu1 %v41_v9  ;;  %3243 = vmatpush3.bf16.msra.mxu0 %v3242_v10  ;;  %v46_v24 = vld [vmem:[%s5566_s0 + $0xf8] sm:$0xff]  ;;  %v507_v27 = vld [vmem:[%s5567_s1 + $0xe20] sm:$0xff]  ;;  %v3280_v30 = vpack.c.bf16 %v556_v21, %v555_v20  ;;  %vm704_vm1 = vcmask 1043456   ;;  %vm3474_vm2 = vmmov 1   ;;  %vm2108_vm4 = vcmask 64512  }
  0xe7   :  { %3275 = vmatpush3.bf16.msra.mxu1 %v3274_v12  ;;  %3245 = vmatprep.subr.bf16.mxu0 %v3244_v13  ;;  %v508_v28 = vld [vmem:[%s5567_s1 + $0xe28] sm:$0xff]  ;;  %v539_v29 = vld [vmem:[%s5567_s1 + $0xf20] sm:$0xff]  ;;  %v525_v32 = vld [vmem:[%s5567_s1 + $0xeb0] sm:$0xff] }
  0xe8   :  { %3277 = vmatprep.subr.bf16.mxu1 %v3276_v17  ;;  %v540_v31 = vld [vmem:[%s5567_s1 + $0xf28] sm:$0xff]  ;;  %v526_v33 = vld [vmem:[%s5567_s1 + $0xeb8] sm:$0xff]  ;;  %1752 = vmatprep.mubr.f32.mxu0 %v44_v22  ;;  %v557_v34 = vld [vmem:[%s5567_s1 + $0xfb0] sm:$0xff]  ;;  %v3250_v36 = vpack.c.bf16 %v508_v28, %v507_v27 }
  0xe9   :  { %v558_v35 = vld [vmem:[%s5567_s1 + $0xfb8] sm:$0xff]  ;;  %1822 = vmatprep.mubr.f32.mxu1 %v46_v24  ;;  %v3282_v37 = vpack.c.bf16 %v540_v31, %v539_v29  ;;  %v3252_v38 = vpack.c.bf16 %v526_v33, %v525_v32  ;;  %v509_v39 = vld [vmem:[%s5567_s1 + $0xe30] sm:$0xff]  ;;  %v527_v44 = vld [vmem:[%s5567_s1 + $0xec0] sm:$0xff] }
  0xea   :  { %3247 = vmatpush3.bf16.msra.mxu0 %v3246_v23  ;;  %v510_v40 = vld [vmem:[%s5567_s1 + $0xe38] sm:$0xff]  ;;  %v541_v41 = vld [vmem:[%s5567_s1 + $0xf30] sm:$0xff]  ;;  %v3284_v42 = vpack.c.bf16 %v558_v35, %v557_v34  ;;  %v528_v45 = vld [vmem:[%s5567_s1 + $0xec8] sm:$0xff] }
  0xeb   :  { %3279 = vmatpush3.bf16.msra.mxu1 %v3278_v25  ;;  %3249 = vmatprep.subr.bf16.mxu0 %v3248_v26  ;;  %v542_v43 = vld [vmem:[%s5567_s1 + $0xf38] sm:$0xff]  ;;  %v559_v46 = vld [vmem:[%s5567_s1 + $0xfc0] sm:$0xff]  ;;  %v560_v47 = vld [vmem:[%s5567_s1 + $0xfc8] sm:$0xff]  ;;  %v3254_v48 = vpack.c.bf16 %v510_v40, %v509_v39  ;;  %v3256_v50 = vpack.c.bf16 %v528_v45, %v527_v44 }
  0xec   :  { %3281 = vmatprep.subr.bf16.mxu1 %v3280_v30  ;;  %v3286_v49 = vpack.c.bf16 %v542_v43, %v541_v41  ;;  %v511_v51 = vld [vmem:[%s5567_s1 + $0xe40] sm:$0xff]  ;;  %v512_v52 = vld [vmem:[%s5567_s1 + $0xe48] sm:$0xff]  ;;  %v3288_v54 = vpack.c.bf16 %v560_v47, %v559_v46  ;;  %v529_v56 = vld [vmem:[%s5567_s1 + $0xed0] sm:$0xff] }
  0xed   :  { %v543_v53 = vld [vmem:[%s5567_s1 + $0xf40] sm:$0xff]  ;;  %v544_v55 = vld [vmem:[%s5567_s1 + $0xf48] sm:$0xff]  ;;  %v530_v57 = vld [vmem:[%s5567_s1 + $0xed8] sm:$0xff]  ;;  %v3258_v60 = vpack.c.bf16 %v512_v52, %v511_v51 }
  0xee   :  { %3251 = vmatpush3.bf16.msra.mxu0 %v3250_v36  ;;  %v561_v58 = vld [vmem:[%s5567_s1 + $0xfd0] sm:$0xff]  ;;  %v562_v59 = vld [vmem:[%s5567_s1 + $0xfd8] sm:$0xff]  ;;  %v3290_v61 = vpack.c.bf16 %v544_v55, %v543_v53  ;;  %v3260_v62 = vpack.c.bf16 %v530_v57, %v529_v56  ;;  %v531_v4 = vld [vmem:[%s5567_s1 + $0xee0] sm:$0xff] }
  0xef   :  { %3283 = vmatpush3.bf16.msra.mxu1 %v3282_v37  ;;  %3253 = vmatprep.subr.bf16.mxu0 %v3252_v38  ;;  %v513_v63 = vld [vmem:[%s5567_s1 + $0xe50] sm:$0xff]  ;;  %v514_v0 = vld [vmem:[%s5567_s1 + $0xe58] sm:$0xff]  ;;  %v3292_v2 = vpack.c.bf16 %v562_v59, %v561_v58  ;;  %v532_v5 = vld [vmem:[%s5567_s1 + $0xee8] sm:$0xff] }
  0xf0   :  { %3285 = vmatprep.subr.bf16.mxu1 %v3284_v42  ;;  %v545_v1 = vld [vmem:[%s5567_s1 + $0xf50] sm:$0xff]  ;;  %v546_v3 = vld [vmem:[%s5567_s1 + $0xf58] sm:$0xff]  ;;  %v563_v6 = vld [vmem:[%s5567_s1 + $0xfe0] sm:$0xff]  ;;  %v3262_v8 = vpack.c.bf16 %v514_v0, %v513_v63  ;;  %v3264_v10 = vpack.c.bf16 %v532_v5, %v531_v4 }
  0xf1   :  { %v564_v7 = vld [vmem:[%s5567_s1 + $0xfe8] sm:$0xff]  ;;  %v3294_v9 = vpack.c.bf16 %v546_v3, %v545_v1  ;;  %v515_v11 = vld [vmem:[%s5567_s1 + $0xe60] sm:$0xff]  ;;  %v533_v17 = vld [vmem:[%s5567_s1 + $0xef0] sm:$0xff] }
  0xf2   :  { %3255 = vmatpush3.bf16.msra.mxu0 %v3254_v48  ;;  %v516_v12 = vld [vmem:[%s5567_s1 + $0xe68] sm:$0xff]  ;;  %v547_v13 = vld [vmem:[%s5567_s1 + $0xf60] sm:$0xff]  ;;  %v3296_v15 = vpack.c.bf16 %v564_v7, %v563_v6  ;;  %v534_v18 = vld [vmem:[%s5567_s1 + $0xef8] sm:$0xff] }
  0xf3   :  { %3287 = vmatpush3.bf16.msra.mxu1 %v3286_v49  ;;  %3257 = vmatprep.subr.bf16.mxu0 %v3256_v50  ;;  %v548_v16 = vld [vmem:[%s5567_s1 + $0xf68] sm:$0xff]  ;;  %v2124_v20 = vld [vmem:[%s5568_s2] ss:$0 sm:$0xff]  ;;  %v565_v22 = vld [vmem:[%s5567_s1 + $0xff0] sm:$0xff]  ;;  %v3266_v26 = vpack.c.bf16 %v516_v12, %v515_v11  ;;  %v3268_v29 = vpack.c.bf16 %v534_v18, %v533_v17 }
  0xf4   :  { %3289 = vmatprep.subr.bf16.mxu1 %v3288_v54  ;;  %v566_v23 = vld [vmem:[%s5567_s1 + $0xff8] sm:$0xff]  ;;  %v3298_v28 = vpack.c.bf16 %v548_v16, %v547_v13  ;;  %v517_v30 = vld [vmem:[%s5567_s1 + $0xe70] sm:$0xff]  ;;  %v583_v36 = vld [vmem:[%s5567_s1 + $0x1080] sm:$0xff] }
  0xf5   :  { %v518_v31 = vld [vmem:[%s5567_s1 + $0xe78] sm:$0xff]  ;;  %v549_v32 = vld [vmem:[%s5567_s1 + $0xf70] sm:$0xff]  ;;  %v3300_v34 = vpack.c.bf16 %v566_v23, %v565_v22  ;;  %v584_v37 = vld [vmem:[%s5567_s1 + $0x1088] sm:$0xff] }
  0xf6   :  { %3259 = vmatpush3.bf16.msra.mxu0 %v3258_v60  ;;  %v550_v35 = vld [vmem:[%s5567_s1 + $0xf78] sm:$0xff]  ;;  %v615_v38 = vld [vmem:[%s5567_s1 + $0x1180] sm:$0xff]  ;;  %v616_v39 = vld [vmem:[%s5567_s1 + $0x1188] sm:$0xff]  ;;  %v3270_v41 = vpack.c.bf16 %v518_v31, %v517_v30  ;;  %v3304_v43 = vpack.c.bf16 %v584_v37, %v583_v36 }
  0xf7   :  { %3291 = vmatpush3.bf16.msra.mxu1 %v3290_v61  ;;  %3261 = vmatprep.subr.bf16.mxu0 %v3260_v62  ;;  %v3302_v42 = vpack.c.bf16 %v550_v35, %v549_v32  ;;  %v567_v44 = vld [vmem:[%s5567_s1 + $0x1000] sm:$0xff]  ;;  %v568_v45 = vld [vmem:[%s5567_s1 + $0x1008] sm:$0xff]  ;;  %v3336_v47 = vpack.c.bf16 %v616_v39, %v615_v38  ;;  %v585_v49 = vld [vmem:[%s5567_s1 + $0x1090] sm:$0xff] }
  0xf8   :  { %v2159_v14 = vpop.f32.mrb[0].mxu0  ;;  %3293 = vmatprep.subr.bf16.mxu1 %v3292_v2  ;;  %v599_v46 = vld [vmem:[%s5567_s1 + $0x1100] sm:$0xff]  ;;  %v600_v48 = vld [vmem:[%s5567_s1 + $0x1108] sm:$0xff]  ;;  %v586_v50 = vld [vmem:[%s5567_s1 + $0x1098] sm:$0xff]  ;;  %v3306_v55 = vpack.c.bf16 %v568_v45, %v567_v44 }
  0xf9   :  { %v2194_v19 = vpop.f32.mrb[0].mxu1  ;;  %v2160_v21 = vpop.f32.mrb[1].mxu0  ;;  %v617_v51 = vld [vmem:[%s5567_s1 + $0x1190] sm:$0xff]  ;;  %v618_v52 = vld [vmem:[%s5567_s1 + $0x1198] sm:$0xff]  ;;  %v43_v53 = vld [vmem:[%s5566_s0 + $0xe0] sm:$0xff]  ;;  %v3338_v56 = vpack.c.bf16 %v600_v48, %v599_v46  ;;  %v3308_v57 = vpack.c.bf16 %v586_v50, %v585_v49 }
  0xfa   :  { %v2161_v24 = vadd.f32 %v2160_v21, %v2159_v14  ;;  %v2195_v25 = vpop.f32.mrb[1].mxu1  ;;  %3263 = vmatpush3.bf16.msra.mxu0 %v3262_v8  ;;  %v45_v54 = vld [vmem:[%s5566_s0 + $0xf0] sm:$0xff]  ;;  %v570_v59 = vld [vmem:[%s5567_s1 + $0x1018] sm:$0xff]  ;;  %v3340_v61 = vpack.c.bf16 %v618_v52, %v617_v51  ;;  %v587_v63 = vld [vmem:[%s5567_s1 + $0x10a0] sm:$0xff] }
  0xfb   :  { %v2196_v27 = vadd.f32 %v2195_v25, %v2194_v19  ;;  %3295 = vmatpush3.bf16.msra.mxu1 %v3294_v9  ;;  %3265 = vmatprep.subr.bf16.mxu0 %v3264_v10  ;;  %v569_v58 = vld [vmem:[%s5567_s1 + $0x1010] sm:$0xff]  ;;  %v602_v62 = vld [vmem:[%s5567_s1 + $0x1118] sm:$0xff]  ;;  %v588_v0 = vld [vmem:[%s5567_s1 + $0x10a8] sm:$0xff] }
  0xfc   :  { %v775_v33 = vadd.f32 %v2161_v24, %v2124_v20  ;;  %3297 = vmatprep.subr.bf16.mxu1 %v3296_v15  ;;  %v601_v60 = vld [vmem:[%s5567_s1 + $0x1110] sm:$0xff]  ;;  %v619_v1 = vld [vmem:[%s5567_s1 + $0x11a0] sm:$0xff]  ;;  %v620_v2 = vld [vmem:[%s5567_s1 + $0x11a8] sm:$0xff]  ;;  %v3310_v4 = vpack.c.bf16 %v570_v59, %v569_v58  ;;  %v3312_v7 = vpack.c.bf16 %v588_v0, %v587_v63 }
  0xfd   :  { %v48_v3 = vld [vmem:[%s5566_s0 + $0x108] sm:$0xff]  ;;  %v50_v5 = vld [vmem:[%s5566_s0 + $0x118] sm:$0xff]  ;;  %v3342_v6 = vpack.c.bf16 %v602_v62, %v601_v60  ;;  %v571_v8 = vld [vmem:[%s5567_s1 + $0x1020] sm:$0xff]  ;;  %v3344_v11 = vpack.c.bf16 %v620_v2, %v619_v1 }
  0xfe   :  { %v5137_v40 = vadd.f32 %v2196_v27, %v775_v33  ;;  %3267 = vmatpush3.bf16.msra.mxu0 %v3266_v26  ;;  %v572_v9 = vld [vmem:[%s5567_s1 + $0x1028] sm:$0xff]  ;;  %v603_v10 = vld [vmem:[%s5567_s1 + $0x1120] sm:$0xff]  ;;  %v589_v13 = vld [vmem:[%s5567_s1 + $0x10b0] sm:$0xff] }
  0xff   :  { %3299 = vmatpush3.bf16.msra.mxu1 %v3298_v28  ;;  %3269 = vmatprep.subr.bf16.mxu0 %v3268_v29  ;;  %v604_v12 = vld [vmem:[%s5567_s1 + $0x1128] sm:$0xff]  ;;  %v590_v14 = vld [vmem:[%s5567_s1 + $0x10b8] sm:$0xff]  ;;  %v621_v15 = vld [vmem:[%s5567_s1 + $0x11b0] sm:$0xff]  ;;  %v3314_v17 = vpack.c.bf16 %v572_v9, %v571_v8 }
 0x100   :  { %3301 = vmatprep.subr.bf16.mxu1 %v3300_v34  ;;  %v622_v16 = vld [vmem:[%s5567_s1 + $0x11b8] sm:$0xff]  ;;  %v3346_v18 = vpack.c.bf16 %v604_v12, %v603_v10  ;;  %v3316_v19 = vpack.c.bf16 %v590_v14, %v589_v13  ;;  %v573_v20 = vld [vmem:[%s5567_s1 + $0x1030] sm:$0xff]  ;;  %v591_v25 = vld [vmem:[%s5567_s1 + $0x10c0] sm:$0xff] }
 0x101   :  { %v574_v21 = vld [vmem:[%s5567_s1 + $0x1038] sm:$0xff]  ;;  %v605_v22 = vld [vmem:[%s5567_s1 + $0x1130] sm:$0xff]  ;;  %v3348_v23 = vpack.c.bf16 %v622_v16, %v621_v15  ;;  %v592_v26 = vld [vmem:[%s5567_s1 + $0x10c8] sm:$0xff] }
 0x102   :  { %3271 = vmatpush3.bf16.msra.mxu0 %v3270_v41  ;;  %v606_v24 = vld [vmem:[%s5567_s1 + $0x1138] sm:$0xff]  ;;  %v623_v27 = vld [vmem:[%s5567_s1 + $0x11c0] sm:$0xff]  ;;  %v624_v28 = vld [vmem:[%s5567_s1 + $0x11c8] sm:$0xff]  ;;  %v3318_v29 = vpack.c.bf16 %v574_v21, %v573_v20  ;;  %v3320_v31 = vpack.c.bf16 %v592_v26, %v591_v25 }
 0x103   :  { %3303 = vmatpush3.bf16.msra.mxu1 %v3302_v42  ;;  %3305 = vmatprep.subr.bf16.mxu0 %v3304_v43  ;;  %v3350_v30 = vpack.c.bf16 %v606_v24, %v605_v22  ;;  %v575_v32 = vld [vmem:[%s5567_s1 + $0x1040] sm:$0xff]  ;;  %v576_v33 = vld [vmem:[%s5567_s1 + $0x1048] sm:$0xff]  ;;  %v3352_v35 = vpack.c.bf16 %v624_v28, %v623_v27  ;;  %v593_v37 = vld [vmem:[%s5567_s1 + $0x10d0] sm:$0xff] }
 0x104   :  { %3337 = vmatprep.subr.bf16.mxu1 %v3336_v47  ;;  %v607_v34 = vld [vmem:[%s5567_s1 + $0x1140] sm:$0xff]  ;;  %v608_v36 = vld [vmem:[%s5567_s1 + $0x1148] sm:$0xff]  ;;  %v594_v38 = vld [vmem:[%s5567_s1 + $0x10d8] sm:$0xff]  ;;  %v3322_v42 = vpack.c.bf16 %v576_v33, %v575_v32 }
 0x105   :  { %1753 = vmatmul.mubr.f32.vlgmr.msra.gmra.mrb[14].mxu0 %v43_v53  ;;  %v625_v39 = vld [vmem:[%s5567_s1 + $0x11d0] sm:$0xff]  ;;  %v626_v41 = vld [vmem:[%s5567_s1 + $0x11d8] sm:$0xff]  ;;  %v3354_v43 = vpack.c.bf16 %v608_v36, %v607_v34  ;;  %v3324_v44 = vpack.c.bf16 %v594_v38, %v593_v37  ;;  %v595_v50 = vld [vmem:[%s5567_s1 + $0x10e0] sm:$0xff]  ;;  %v3473_v36 = vmov 0.0|0.0  }
 0x106   :  { %1823 = vmatmul.mubr.f32.vlgmr.msra.gmra.mrb[14].mxu1 %v45_v54  ;;  %3307 = vmatpush3.bf16.msra.mxu0 %v3306_v55  ;;  %v577_v45 = vld [vmem:[%s5567_s1 + $0x1050] sm:$0xff]  ;;  %v578_v46 = vld [vmem:[%s5567_s1 + $0x1058] sm:$0xff]  ;;  %v3356_v48 = vpack.c.bf16 %v626_v41, %v625_v39  ;;  %v596_v51 = vld [vmem:[%s5567_s1 + $0x10e8] sm:$0xff] }
 0x107   :  { %3339 = vmatpush3.bf16.msra.mxu1 %v3338_v56  ;;  %3309 = vmatprep.subr.bf16.mxu0 %v3308_v57  ;;  %v609_v47 = vld [vmem:[%s5567_s1 + $0x1150] sm:$0xff]  ;;  %v610_v49 = vld [vmem:[%s5567_s1 + $0x1158] sm:$0xff]  ;;  %v627_v52 = vld [vmem:[%s5567_s1 + $0x11e0] sm:$0xff]  ;;  %v3326_v54 = vpack.c.bf16 %v578_v46, %v577_v45  ;;  %v3328_v56 = vpack.c.bf16 %v596_v51, %v595_v50 }
 0x108   :  { %3341 = vmatprep.subr.bf16.mxu1 %v3340_v61  ;;  %1892 = vmatprep.mubr.f32.mxu0 %v48_v3  ;;  %v628_v53 = vld [vmem:[%s5567_s1 + $0x11e8] sm:$0xff]  ;;  %v3358_v55 = vpack.c.bf16 %v610_v49, %v609_v47  ;;  %v579_v57 = vld [vmem:[%s5567_s1 + $0x1060] sm:$0xff]  ;;  %v597_v63 = vld [vmem:[%s5567_s1 + $0x10f0] sm:$0xff] }
 0x109   :  { %1962 = vmatprep.mubr.f32.mxu1 %v50_v5  ;;  %v580_v58 = vld [vmem:[%s5567_s1 + $0x1068] sm:$0xff]  ;;  %v611_v59 = vld [vmem:[%s5567_s1 + $0x1160] sm:$0xff]  ;;  %v3360_v61 = vpack.c.bf16 %v628_v53, %v627_v52  ;;  %v598_v0 = vld [vmem:[%s5567_s1 + $0x10f8] sm:$0xff] }
 0x10a   :  { %3311 = vmatpush3.bf16.msra.mxu0 %v3310_v4  ;;  %v612_v62 = vld [vmem:[%s5567_s1 + $0x1168] sm:$0xff]  ;;  %v629_v3 = vld [vmem:[%s5567_s1 + $0x11f0] sm:$0xff]  ;;  %v630_v4 = vld [vmem:[%s5567_s1 + $0x11f8] sm:$0xff]  ;;  %v3332_v10 = vpack.c.bf16 %v598_v0, %v597_v63 }
 0x10b   :  { %3343 = vmatpush3.bf16.msra.mxu1 %v3342_v6  ;;  %3313 = vmatprep.subr.bf16.mxu0 %v3312_v7  ;;  %v3330_v7 = vpack.c.bf16 %v580_v58, %v579_v57  ;;  %v3362_v9 = vpack.c.bf16 %v612_v62, %v611_v59  ;;  %v582_v12 = vld [vmem:[%s5567_s1 + $0x1078] sm:$0xff]  ;;  %v613_v13 = vld [vmem:[%s5567_s1 + $0x1170] sm:$0xff]  ;;  %v3364_v15 = vpack.c.bf16 %v630_v4, %v629_v3  ;;  %v631_v22 = vld [vmem:[%s5567_s1 + $0x1200] sm:$0xff] }
 0x10c   :  { %3345 = vmatprep.subr.bf16.mxu1 %v3344_v11  ;;  %v581_v11 = vld [vmem:[%s5567_s1 + $0x1070] sm:$0xff]  ;;  %v614_v16 = vld [vmem:[%s5567_s1 + $0x1178] sm:$0xff]  ;;  %v663_v24 = vld [vmem:[%s5567_s1 + $0x1300] sm:$0xff] }
 0x10d   :  { %v3334_v20 = vpack.c.bf16 %v582_v12, %v581_v11  ;;  %v664_v25 = vld [vmem:[%s5567_s1 + $0x1308] sm:$0xff]  ;;  %v649_v26 = vld [vmem:[%s5567_s1 + $0x1290] sm:$0xff]  ;;  %v650_v27 = vld [vmem:[%s5567_s1 + $0x1298] sm:$0xff] }
 0x10e   :  { %3315 = vmatpush3.bf16.msra.mxu0 %v3314_v17  ;;  %v647_v17 = vld [vmem:[%s5567_s1 + $0x1280] sm:$0xff]  ;;  %v3372_v32 = vpack.c.bf16 %v650_v27, %v649_v26  ;;  %v633_v33 = vld [vmem:[%s5567_s1 + $0x1210] sm:$0xff]  ;;  %v634_v34 = vld [vmem:[%s5567_s1 + $0x1218] sm:$0xff] }
 0x10f   :  { %3347 = vmatpush3.bf16.msra.mxu1 %v3346_v18  ;;  %3317 = vmatprep.subr.bf16.mxu0 %v3316_v19  ;;  %v648_v18 = vld [vmem:[%s5567_s1 + $0x1288] sm:$0xff]  ;;  %v47_v28 = vld [vmem:[%s5566_s0 + $0x100] sm:$0xff]  ;;  %v666_v37 = vld [vmem:[%s5567_s1 + $0x1318] sm:$0xff] }
 0x110   :  { %3349 = vmatprep.subr.bf16.mxu1 %v3348_v23  ;;  %v3368_v21 = vpack.c.bf16 %v648_v18, %v647_v17  ;;  %v632_v23 = vld [vmem:[%s5567_s1 + $0x1208] sm:$0xff]  ;;  %v651_v38 = vld [vmem:[%s5567_s1 + $0x12a0] sm:$0xff]  ;;  %v653_v50 = vld [vmem:[%s5567_s1 + $0x12b0] sm:$0xff] }
 0x111   :  { %v652_v39 = vld [vmem:[%s5567_s1 + $0x12a8] sm:$0xff]  ;;  %v635_v46 = vld [vmem:[%s5567_s1 + $0x1220] sm:$0xff]  ;;  %v654_v51 = vld [vmem:[%s5567_s1 + $0x12b8] sm:$0xff] }
 0x112   :  { %3319 = vmatpush3.bf16.msra.mxu0 %v3318_v29  ;;  %v49_v29 = vld [vmem:[%s5566_s0 + $0x110] sm:$0xff]  ;;  %v52_v41 = vld [vmem:[%s5566_s0 + $0x128] sm:$0xff]  ;;  %v3376_v45 = vpack.c.bf16 %v652_v39, %v651_v38  ;;  %v670_v58 = vld [vmem:[%s5567_s1 + $0x1338] sm:$0xff] }
 0x113   :  { %3351 = vmatpush3.bf16.msra.mxu1 %v3350_v30  ;;  %3321 = vmatprep.subr.bf16.mxu0 %v3320_v31  ;;  %v3370_v30 = vpack.c.bf16 %v632_v23, %v631_v22  ;;  %v3401_v31 = vpack.c.bf16 %v664_v25, %v663_v24  ;;  %v636_v47 = vld [vmem:[%s5567_s1 + $0x1228] sm:$0xff]  ;;  %v669_v57 = vld [vmem:[%s5567_s1 + $0x1330] sm:$0xff]  ;;  %v655_v59 = vld [vmem:[%s5567_s1 + $0x12c0] sm:$0xff] }
 0x114   :  { %3353 = vmatprep.subr.bf16.mxu1 %v3352_v35  ;;  %v665_v35 = vld [vmem:[%s5567_s1 + $0x1310] sm:$0xff]  ;;  %v668_v49 = vld [vmem:[%s5567_s1 + $0x1328] sm:$0xff]  ;;  %v3378_v52 = vpack.c.bf16 %v636_v47, %v635_v46  ;;  %v3410_v62 = vpack.c.bf16 %v670_v58, %v669_v57  ;;  %v639_v0 = vld [vmem:[%s5567_s1 + $0x1240] sm:$0xff] }
 0x115   :  { %v672_v3 = vld [vmem:[%s5567_s1 + $0x1348] sm:$0xff]  ;;  %v657_v4 = vld [vmem:[%s5567_s1 + $0x12d0] sm:$0xff]  ;;  %v674_v12 = vld [vmem:[%s5567_s1 + $0x1358] sm:$0xff] }
 0x116   :  { %3323 = vmatpush3.bf16.msra.mxu0 %v3322_v42  ;;  %v3374_v42 = vpack.c.bf16 %v634_v34, %v633_v33  ;;  %v673_v11 = vld [vmem:[%s5567_s1 + $0x1350] sm:$0xff]  ;;  %v643_v18 = vld [vmem:[%s5567_s1 + $0x1260] sm:$0xff]  ;;  %v676_v22 = vld [vmem:[%s5567_s1 + $0x1368] sm:$0xff] }
 0x117   :  { %3355 = vmatpush3.bf16.msra.mxu1 %v3354_v43  ;;  %3325 = vmatprep.subr.bf16.mxu0 %v3324_v44  ;;  %v54_v43 = vld [vmem:[%s5566_s0 + $0x138] sm:$0xff]  ;;  %v3404_v44 = vpack.c.bf16 %v666_v37, %v665_v35  ;;  %v661_v23 = vld [vmem:[%s5567_s1 + $0x12f0] sm:$0xff]  ;;  %vm3444_vm3 = vmpackc.low %vm704_vm1, %vm3474_vm2 }
 0x118   :  { %v2229_v60 = vpop.f32.mrb[2].mxu0  ;;  %3357 = vmatprep.subr.bf16.mxu1 %v3356_v48  ;;  %v667_v48 = vld [vmem:[%s5567_s1 + $0x1320] sm:$0xff]  ;;  %v662_v24 = vld [vmem:[%s5567_s1 + $0x12f8] sm:$0xff]  ;;  %v645_v33 = vld [vmem:[%s5567_s1 + $0x1270] sm:$0xff] }
 0x119   :  { %v2264_v1 = vpop.f32.mrb[2].mxu1  ;;  %v2230_v2 = vpop.f32.mrb[3].mxu0  ;;  %v3407_v53 = vpack.c.bf16 %v668_v49, %v667_v48  ;;  %v646_v34 = vld [vmem:[%s5567_s1 + $0x1278] sm:$0xff]  ;;  %v677_v37 = vld [vmem:[%s5567_s1 + $0x1370] sm:$0xff]  ;;  %v683_v49 = vld [vmem:[%s5567_s1 + $0x13a0] sm:$0xff] }
 0x11a   :  { %v2231_v5 = vadd.f32 %v2230_v2, %v2229_v60  ;;  %v2265_v6 = vpop.f32.mrb[3].mxu1  ;;  %3327 = vmatpush3.bf16.msra.mxu0 %v3326_v54  ;;  %v3380_v54 = vpack.c.bf16 %v654_v51, %v653_v50  ;;  %v656_v60 = vld [vmem:[%s5567_s1 + $0x12c8] sm:$0xff]  ;;  %v671_v2 = vld [vmem:[%s5567_s1 + $0x1340] sm:$0xff]  ;;  %v678_v38 = vld [vmem:[%s5567_s1 + $0x1378] sm:$0xff] }
 0x11b   :  { %v2266_v8 = vadd.f32 %v2265_v6, %v2264_v1  ;;  %3359 = vmatpush3.bf16.msra.mxu1 %v3358_v55  ;;  %3329 = vmatprep.subr.bf16.mxu0 %v3328_v56  ;;  %v637_v55 = vld [vmem:[%s5567_s1 + $0x1230] sm:$0xff]  ;;  %v638_v56 = vld [vmem:[%s5567_s1 + $0x1238] sm:$0xff]  ;;  %v3384_v63 = vpack.c.bf16 %v656_v60, %v655_v59  ;;  %v640_v1 = vld [vmem:[%s5567_s1 + $0x1248] sm:$0xff] }
 0x11c   :  { %v915_v14 = vadd.f32 %v2231_v5, %v5137_v40  ;;  %3361 = vmatprep.subr.bf16.mxu1 %v3360_v61  ;;  %v3366_v40 = vpack.c.bf16 %v614_v16, %v613_v13  ;;  %v3382_v61 = vpack.c.bf16 %v638_v56, %v637_v55  ;;  %v658_v5 = vld [vmem:[%s5567_s1 + $0x12d8] sm:$0xff]  ;;  %v3386_v6 = vpack.c.bf16 %v640_v1, %v639_v0  ;;  %v659_v13 = vld [vmem:[%s5567_s1 + $0x12e0] sm:$0xff]  ;;  %v681_v46 = vld [vmem:[%s5567_s1 + $0x1390] sm:$0xff] }
 0x11d   :  { %v3416_v16 = vpack.c.bf16 %v674_v12, %v673_v11  ;;  %v682_v47 = vld [vmem:[%s5567_s1 + $0x1398] sm:$0xff]  ;;  %v684_v50 = vld [vmem:[%s5567_s1 + $0x13a8] sm:$0xff]  ;;  %v687_v55 = vld [vmem:[%s5567_s1 + $0x13c0] sm:$0xff] }
 0x11e   :  { %v5338_v19 = vadd.f32 %v2266_v8, %v915_v14  ;;  %3331 = vmatpush3.bf16.msra.mxu0 %v3330_v7  ;;  %v3413_v7 = vpack.c.bf16 %v672_v3, %v671_v2  ;;  %v3388_v8 = vpack.c.bf16 %v658_v5, %v657_v4  ;;  %v660_v14 = vld [vmem:[%s5567_s1 + $0x12e8] sm:$0xff]  ;;  %v3428_v48 = vpack.c.bf16 %v682_v47, %v681_v46  ;;  %v689_v58 = vld [vmem:[%s5567_s1 + $0x13d0] sm:$0xff]  ;;  %v690_v59 = vld [vmem:[%s5567_s1 + $0x13d8] sm:$0xff] }
 0x11f   :  { %3363 = vmatpush3.bf16.msra.mxu1 %v3362_v9  ;;  %3333 = vmatprep.subr.bf16.mxu0 %v3332_v10  ;;  %v641_v9 = vld [vmem:[%s5567_s1 + $0x1250] sm:$0xff]  ;;  %v642_v10 = vld [vmem:[%s5567_s1 + $0x1258] sm:$0xff]  ;;  %v3392_v17 = vpack.c.bf16 %v660_v14, %v659_v13  ;;  %v3431_v51 = vpack.c.bf16 %v684_v50, %v683_v49  ;;  %v688_v56 = vld [vmem:[%s5567_s1 + $0x13c8] sm:$0xff]  ;;  %v3440_v60 = vpack.c.bf16 %v690_v59, %v689_v58 }
 0x120   :  { %3365 = vmatprep.subr.bf16.mxu1 %v3364_v15  ;;  %v3390_v15 = vpack.c.bf16 %v642_v10, %v641_v9  ;;  %v3437_v57 = vpack.c.bf16 %v688_v56, %v687_v55 }
 0x122   :  { %3335 = vmatpush3.bf16.msra.mxu0 %v3334_v20  ;;  %v644_v20 = vld [vmem:[%s5567_s1 + $0x1268] sm:$0xff] }
 0x123   :  { %3367 = vmatpush3.bf16.msra.mxu1 %v3366_v40  ;;  %3369 = vmatprep.subr.bf16.mxu0 %v3368_v21  ;;  %v675_v40 = vld [vmem:[%s5567_s1 + $0x1360] sm:$0xff] }
 0x124   :  { %3400 = vmatprep.subr.bf16.mxu1 %v3473_v36 }
 0x125   :  { %1893 = vmatmul.mubr.f32.vlgmr.msra.gmra.mrb[16].mxu0 %v47_v28 }
 0x126   :  { %1963 = vmatmul.mubr.f32.vlgmr.msra.gmra.mrb[16].mxu1 %v49_v29  ;;  %3371 = vmatpush3.bf16.msra.mxu0 %v3370_v30  ;;  %v3394_v29 = vpack.c.bf16 %v644_v20, %v643_v18 }
 0x127   :  { %3402 = vmatpush1.bf16.msra.mxu1 %v3401_v31  ;;  %3373 = vmatprep.subr.bf16.mxu0 %v3372_v32  ;;  %v3419_v31 = vpack.c.bf16 %v676_v22, %v675_v40  ;;  %v3396_v32 = vpack.c.bf16 %v662_v24, %v661_v23 }
 0x128   :  { %3403 = vmatprep.subr.bf16.mxu1 %v3473_v36  ;;  %2032 = vmatprep.mubr.f32.mxu0 %v52_v41  ;;  %v3398_v41 = vpack.c.bf16 %v646_v34, %v645_v33 }
 0x129   :  { %2126 = vmatprep.mubr.msk.f32.mxu1 %vm700_vm0, %v54_v43  ;;  %v680_v43 = vld [vmem:[%s5567_s1 + $0x1388] sm:$0xff] }
 0x12a   :  { %3375 = vmatpush3.bf16.msra.mxu0 %v3374_v42  ;;  %v3422_v42 = vpack.c.bf16 %v678_v38, %v677_v37 }
 0x12b   :  { %3405 = vmatpush1.bf16.msra.mxu1 %v3404_v44  ;;  %3377 = vmatprep.subr.bf16.mxu0 %v3376_v45  ;;  %v51_v44 = vld [vmem:[%s5566_s0 + $0x120] sm:$0xff] }
 0x12c   :  { %3406 = vmatprep.subr.bf16.mxu1 %v3473_v36 }
 0x12e   :  { %3379 = vmatpush3.bf16.msra.mxu0 %v3378_v52  ;;  %v685_v52 = vld [vmem:[%s5567_s1 + $0x13b0] sm:$0xff] }
 0x12f   :  { %3408 = vmatpush1.bf16.msra.mxu1 %v3407_v53  ;;  %3381 = vmatprep.subr.bf16.mxu0 %v3380_v54  ;;  %v686_v53 = vld [vmem:[%s5567_s1 + $0x13b8] sm:$0xff] }
 0x130   :  { %3409 = vmatprep.subr.bf16.mxu1 %v3473_v36  ;;  %v3434_v54 = vpack.c.bf16 %v686_v53, %v685_v52 }
 0x132   :  { %3383 = vmatpush3.bf16.msra.mxu0 %v3382_v61 }
 0x133   :  { %3411 = vmatpush1.bf16.msra.mxu1 %v3410_v62  ;;  %3385 = vmatprep.subr.bf16.mxu0 %v3384_v63  ;;  %v691_v62 = vld [vmem:[%s5567_s1 + $0x13e0] sm:$0xff]  ;;  %v692_v63 = vld [vmem:[%s5567_s1 + $0x13e8] sm:$0xf] }
 0x134   :  { %3412 = vmatprep.subr.bf16.mxu1 %v3473_v36  ;;  %v3443_v5 = vpack.c.bf16 %v692_v63, %v691_v62 }
 0x136   :  { %3387 = vmatpush3.bf16.msra.mxu0 %v3386_v6 }
 0x137   :  { %3414 = vmatpush1.bf16.msra.mxu1 %v3413_v7  ;;  %3389 = vmatprep.subr.bf16.mxu0 %v3388_v8  ;;  %v53_v8 = vld [vmem:[%s5566_s0 + $0x130] sm:$0xff]  ;;  %s3475_s0 = smov [#allocation2]  }
 0x138   :  { %v2299_v21 = vpop.f32.mrb[4].mxu0  ;;  %3415 = vmatprep.subr.bf16.mxu1 %v3473_v36 }
 0x139   :  { %v2334_v25 = vpop.f32.mrb[4].mxu1  ;;  %v2300_v26 = vpop.f32.mrb[5].mxu0 }
 0x13a   :  { %v2301_v27 = vadd.f32 %v2300_v26, %v2299_v21  ;;  %v2335_v28 = vpop.f32.mrb[5].mxu1  ;;  %3391 = vmatpush3.bf16.msra.mxu0 %v3390_v15 }
 0x13b   :  { %v2336_v30 = vadd.f32 %v2335_v28, %v2334_v25  ;;  %3417 = vmatpush1.bf16.msra.mxu1 %v3416_v16  ;;  %3393 = vmatprep.subr.bf16.mxu0 %v3392_v17 }
 0x13c   :  { %v1055_v35 = vadd.f32 %v2301_v27, %v5338_v19  ;;  %3418 = vmatprep.subr.bf16.mxu1 %v3473_v36  ;;  %v679_v19 = vld [vmem:[%s5567_s1 + $0x1380] sm:$0xff]  ;;  %s2116_s1 = sshll.u32 %s3475_s0, 4  ;;  %s2117_s1 = int_to_ptr.vmem [resolvable:$true] %s2116_s1 }
 0x13d   :  { %v3425_v45 = vpack.c.bf16 %v680_v43, %v679_v19  ;;  %s3449_s10 = scalar_lea.vmem %s2117_s1, 128  ;;  %p3454_p1 = scmp.lt.s32.totalorder %s2117_s1, %s2117_s1 }
 0x13e   :  { %v1125_v39 = vadd.f32 %v2336_v30, %v1055_v35  ;;  %3395 = vmatpush3.bf16.msra.mxu0 %v3394_v29  ;;  %p3450_p0 = scmp.ne.s32.totalorder %s2117_s1, %s3449_s10  ;;  %p3455_p2 = scmp.lt.s32.totalorder %s3449_s10, %s3449_s10 }
 0x13f   :  { %3420 = vmatpush1.bf16.msra.mxu1 %v3419_v31  ;;  %3397 = vmatprep.subr.bf16.mxu0 %v3396_v32 }
 0x140   :  { %3421 = vmatprep.subr.bf16.mxu1 %v3473_v36  ;;  %p3456_p3 = por %p3455_p2, %p3454_p1 }
 0x142   :  { %3399 = vmatpush3.bf16.msra.mxu0 %v3398_v41  ;;  %p3457_p4 = pnand %p3456_p3, %p3450_p0 }
 0x143   :  { %3423 = vmatpush1.bf16.msra.mxu1 %v3422_v42 }
 0x144   :  { %3424 = vmatprep.subr.bf16.mxu1 %v3473_v36 }
 0x145   :  { %2033 = vmatmul.mubr.f32.vlgmr.msra.gmra.mrb[18].mxu0 %v51_v44 }
 0x147   :  { %3426 = vmatpush1.bf16.msra.mxu1 %v3425_v45 }
 0x148   :  { %3427 = vmatprep.subr.bf16.mxu1 %v3473_v36 }
 0x14b   :  { %3429 = vmatpush1.bf16.msra.mxu1 %v3428_v48 }
 0x14c   :  { %3430 = vmatprep.subr.bf16.mxu1 %v3473_v36 }
 0x14f   :  { %3432 = vmatpush1.bf16.msra.mxu1 %v3431_v51 }
 0x150   :  { %3433 = vmatprep.subr.bf16.mxu1 %v3473_v36 }
 0x153   :  { %3435 = vmatpush1.bf16.msra.mxu1 %v3434_v54 }
 0x154   :  { %3436 = vmatprep.subr.bf16.mxu1 %v3473_v36 }
 0x157   :  { %3438 = vmatpush1.bf16.msra.mxu1 %v3437_v57 }
 0x158   :  { %v2369_v61 = vpop.f32.mrb[6].mxu0  ;;  %3439 = vmatprep.subr.bf16.mxu1 %v3473_v36 }
 0x159   :  { %v2404_v0 = vpop.f32.mrb[6].mxu1  ;;  %v2370_v1 = vpop.f32.mrb[7].mxu0 }
 0x15a   :  { %v2371_v2 = vadd.f32 %v2370_v1, %v2369_v61  ;;  %v2405_v3 = vpop.f32.mrb[7].mxu1 }
 0x15b   :  { %v2406_v4 = vadd.f32 %v2405_v3, %v2404_v0  ;;  %3441 = vmatpush1.bf16.msra.mxu1 %v3440_v60 }
 0x15c   :  { %v1195_v6 = vadd.f32 %v2371_v2, %v1125_v39  ;;  %3442 = vmatprep.subr.bf16.mxu1 %v3473_v36 }
 0x15e   :  { %v1265_v7 = vadd.f32 %v2406_v4, %v1195_v6 }
 0x15f   :  { %3445 = vmatpush1.bf16.msk.msra.mxu1 %vm3444_vm3, %v3443_v5 }
 0x162   :  { %2103 = vmatmul.mubr.f32.vlgmr.msra.gmra.mrb[18].mxu1 %v53_v8 }
 0x178   :  { %v2439_v9 = vpop.f32.mrb[8].mxu0 }
 0x179   :  { %v2474_v10 = vpop.f32.mrb[8].mxu1  ;;  %v2440_v11 = vpop.f32.mrb[9].mxu0 }
 0x17a   :  { %v2441_v12 = vadd.f32 %v2440_v11, %v2439_v9  ;;  %v2475_v13 = vpop.f32.mrb[9].mxu1 }
 0x17b   :  { %v2476_v14 = vadd.f32 %v2475_v13, %v2474_v10 }
 0x17c   :  { %v1335_v15 = vadd.f32 %v2441_v12, %v1265_v7 }
 0x17e   :  { %v1405_v16 = vadd.f32 %v2476_v14, %v1335_v15 }
 0x198   :  { %v2509_v17 = vpop.f32.mrb[10].mxu0 }
 0x199   :  { %v2544_v18 = vpop.f32.mrb[10].mxu1  ;;  %v2510_v36 = vpop.f32.mrb[11].mxu0 }
 0x19a   :  { %v2511_v20 = vadd.f32 %v2510_v36, %v2509_v17  ;;  %v2545_v40 = vpop.f32.mrb[11].mxu1 }
 0x19b   :  { %v2546_v21 = vadd.f32 %v2545_v40, %v2544_v18 }
 0x19c   :  { %v1475_v22 = vadd.f32 %v2511_v20, %v1405_v16 }
 0x19e   :  { %v1545_v23 = vadd.f32 %v2546_v21, %v1475_v22 }
 0x1b8   :  { %v2579_v24 = vpop.f32.mrb[12].mxu0 }
 0x1b9   :  { %v2614_v25 = vpop.f32.mrb[12].mxu1  ;;  %v2580_v26 = vpop.f32.mrb[13].mxu0 }
 0x1ba   :  { %v2581_v27 = vadd.f32 %v2580_v26, %v2579_v24  ;;  %v2615_v28 = vpop.f32.mrb[13].mxu1 }
 0x1bb   :  { %v2616_v29 = vadd.f32 %v2615_v28, %v2614_v25 }
 0x1bc   :  { %v1615_v30 = vadd.f32 %v2581_v27, %v1545_v23 }
 0x1be   :  { %v1685_v31 = vadd.f32 %v2616_v29, %v1615_v30 }
 0x1d8   :  { %v2649_v32 = vpop.f32.mrb[14].mxu0 }
 0x1d9   :  { %v2684_v33 = vpop.f32.mrb[14].mxu1  ;;  %v2650_v34 = vpop.f32.mrb[15].mxu0 }
 0x1da   :  { %v2651_v35 = vadd.f32 %v2650_v34, %v2649_v32  ;;  %v2685_v37 = vpop.f32.mrb[15].mxu1 }
 0x1db   :  { %v2686_v38 = vadd.f32 %v2685_v37, %v2684_v33 }
 0x1dc   :  { %v1755_v39 = vadd.f32 %v2651_v35, %v1685_v31 }
 0x1de   :  { %v1825_v41 = vadd.f32 %v2686_v38, %v1755_v39 }
 0x1f8   :  { %v2719_v42 = vpop.f32.mrb[16].mxu0 }
 0x1f9   :  { %v2754_v19 = vpop.f32.mrb[16].mxu1  ;;  %v2720_v43 = vpop.f32.mrb[17].mxu0 }
 0x1fa   :  { %v2721_v44 = vadd.f32 %v2720_v43, %v2719_v42  ;;  %v2755_v45 = vpop.f32.mrb[17].mxu1 }
 0x1fb   :  { %v2756_v46 = vadd.f32 %v2755_v45, %v2754_v19 }
 0x1fc   :  { %v1895_v47 = vadd.f32 %v2721_v44, %v1825_v41 }
 0x1fe   :  { %v1965_v48 = vadd.f32 %v2756_v46, %v1895_v47 }
 0x218   :  { %v2789_v49 = vpop.f32.mrb[18].mxu0 }
 0x219   :  { %v2790_v50 = vpop.f32.mrb[19].mxu0 }
 0x21a   :  { %v2791_v51 = vadd.f32 %v2790_v50, %v2789_v49 }
 0x21c   :  { %v2035_v52 = vadd.f32 %v2791_v51, %v1965_v48 }
 0x235   :  { %v2104_v53 = vpop.f32.mrb[18].mxu1 }
 0x236   :  { %v2105_v54 = vadd.f32 %v2104_v53, %v2035_v52  ;;  %v2106_v55 = vpop.f32.mrb[19].mxu1 }
 0x238   :  { %2109 = vst.msk [vmem:[#allocation2] sm:$0xff] %vm2108_vm4, %v2105_v54 }
 0x239   :  { %3460 = shalt.err (!%p3457_p4)
}
 0x23a   :  { %s3461_s12 = scalar_lea.hbm %s5569_s3, 128 }
 0x23b   :  { %p3462_p5 = scmp.ne.s32.totalorder %s5569_s3, %s3461_s12  ;;  %p3465_p6 = scmp.lt.u32.totalorder %s3461_s12, %s5569_s3 }
 0x23d   :  { %p3467_p7 = pnand %p3465_p6, %p3462_p5 }
 0x23f   :  { %3470 = shalt.err (!%p3467_p7)
}
 0x240   :  { %2119 = dma.vmem_to_hbm [thread:$0]  %s2117_s1, 128, %s5569_s3, [#allocation3]  }
 0x241   :  { %3471 = dma.done.wait [#allocation3], 128  }
 0x242   :  { %3472 = vsyncadd [#allocation3], 4294967168 }
 0x243   :  { %2123 = vsyncpa [#allocation3], 1 }

</bundles_post_ra>
